<compile_context>
chip_gen: v7x
topology: tpu7x:2x2x1
jax: 0.10.0
libtpu: 0.0.40
codegen_flags: <defaults>
</compile_context>

<pallas_src>
import functools
import math

import jax
import jax.numpy as jnp
from jax import lax
from jax.experimental import pallas as pl
from jax.experimental.pallas import tpu as pltpu


# ---------------------------------------------------------------------------
# Pallas kernels: (M, K)bf16 @ (K, N)bf16 + bias[f32] (+ LeakyReLU) (+ residual)
# ---------------------------------------------------------------------------
def _mm_kernel(a_ref, b_ref, bias_ref, o_ref, *, act):
    y = jnp.dot(a_ref[...], b_ref[...], preferred_element_type=jnp.float32)
    y = y + bias_ref[...]
    if act:
        y = jnp.where(y >= 0, y, 0.2 * y)
    o_ref[...] = y


def _mm_res_kernel(a_ref, b_ref, bias_ref, r_ref, o_ref, *, act):
    y = jnp.dot(a_ref[...], b_ref[...], preferred_element_type=jnp.float32)
    y = y + bias_ref[...]
    if act:
        y = jnp.where(y >= 0, y, 0.2 * y)
    o_ref[...] = y + r_ref[...]


def _round_up(x, m):
    return ((x + m - 1) // m) * m


def matmul_fused(a, w_p, bias_p, *, n_out, act=False, residual=None):
    """a: (M, K) f32/bf16; w_p: (Kp, Np) bf16 pre-padded; bias_p: (1, Np) f32.
    Optional residual: (M, n_out) f32 added after bias/activation."""
    M, K = a.shape
    Kp, Np = w_p.shape
    Mp = _round_up(M, 8)
    a_bf = a.astype(jnp.bfloat16)
    if Mp != M or Kp != K:
        a_bf = jnp.pad(a_bf, ((0, Mp - M), (0, Kp - K)))

    # Tile M: 256-wide tiles with >=2 grid steps when M is large (v6e/v7x),
    # 128-aligned otherwise (v5e-friendly), single full tile for tiny M.
    if Mp % 256 == 0 and Mp >= 512:
        tm = 256
    elif Mp % 128 == 0:
        tm = 128
    else:
        tm = Mp
    grid = (Mp // tm,)

    in_specs = [
        pl.BlockSpec((tm, Kp), lambda i: (i, 0)),
        pl.BlockSpec((Kp, Np), lambda i: (0, 0)),   # grid-invariant weight block
        pl.BlockSpec((1, Np), lambda i: (0, 0)),    # grid-invariant bias block
    ]
    args = [a_bf, w_p, bias_p]
    if residual is not None:
        r = residual.astype(jnp.float32)
        if Mp != M or Np != n_out:
            r = jnp.pad(r, ((0, Mp - M), (0, Np - n_out)))
        in_specs.append(pl.BlockSpec((tm, Np), lambda i: (i, 0)))
        args.append(r)
        kern = functools.partial(_mm_res_kernel, act=act)
    else:
        kern = functools.partial(_mm_kernel, act=act)

    out = pl.pallas_call(
        kern,
        out_shape=jax.ShapeDtypeStruct((Mp, Np), jnp.float32),
        grid=grid,
        in_specs=in_specs,
        out_specs=pl.BlockSpec((tm, Np), lambda i: (i, 0)),
        compiler_params=pltpu.CompilerParams(
            dimension_semantics=("parallel",),
            vmem_limit_bytes=32 * 1024 * 1024),
    )(*args)
    return out[:M, :n_out]


# ---------------------------------------------------------------------------
# im2col (channels-last, so the K axis layout is (kh, kw, cin) and no transposes)
# ---------------------------------------------------------------------------
def im2col_nhwc(x, KH, KW, stride, dilation, padding):
    B, H, W, C = x.shape
    OH = (H + 2 * padding - dilation * (KH - 1) - 1) // stride + 1
    OW = (W + 2 * padding - dilation * (KW - 1) - 1) // stride + 1
    if KH == 1 and KW == 1 and stride == 1 and padding == 0:
        return x.reshape(B * H * W, C), H, W
    xp = jnp.pad(x, ((0, 0), (padding, padding), (padding, padding), (0, 0)))
    cols = []
    for i in range(KH):
        for j in range(KW):
            cols.append(lax.slice(
                xp,
                (0, i * dilation, j * dilation, 0),
                (B, i * dilation + (OH - 1) * stride + 1,
                 j * dilation + (OW - 1) * stride + 1, C),
                (1, stride, stride, 1)))
    patches = jnp.concatenate(cols, axis=-1)             # (B, OH, OW, KH*KW*C)
    return patches.reshape(B * OH * OW, KH * KW * C), OH, OW


def conv2d_fused(x, cp, *, stride=1, dilation=1, padding=0, act=False, residual=None):
    """x: (B, H, W, Cin) f32 -> (B, OH, OW, Cout) f32. BN already folded in cp."""
    B, H, W, C = x.shape
    A, OH, OW = im2col_nhwc(x, cp["kh"], cp["kw"], stride, dilation, padding)
    res_flat = residual.reshape(-1, cp["n"]) if residual is not None else None
    out = matmul_fused(A, cp["w"], cp["b"], n_out=cp["n"], act=act, residual=res_flat)
    return out.reshape(B, OH, OW, cp["n"])


# ---------------------------------------------------------------------------
# Elementwise / pooling / attention glue (plain JAX, lane-dense NHWC).
# ---------------------------------------------------------------------------
def leaky_relu(x, slope=0.2):
    return jnp.where(x >= 0, x, slope * x)


def max_pool_nhwc(x, k=3, stride=1, padding=1):
    return lax.reduce_window(
        x, -jnp.inf, lax.max, (1, k, k, 1), (1, stride, stride, 1),
        ((0, 0), (padding, padding), (padding, padding), (0, 0)))


def avg_pool_nhwc(x, k=3, stride=1, padding=1):
    # torch AvgPool2d default count_include_pad=True -> always divide by k*k.
    s = lax.reduce_window(
        x, 0.0, lax.add, (1, k, k, 1), (1, stride, stride, 1),
        ((0, 0), (padding, padding), (padding, padding), (0, 0)))
    return s / float(k * k)


def eca(x, p):
    # Canonical ECA: avg-pool over HxW -> 1D conv over channel axis -> sigmoid -> scale.
    B, H, W, C = x.shape
    y = x.mean(axis=(1, 2))                              # (B, C)
    w = p["w"]
    k = w.shape[0]
    pad = (k - 1) // 2
    yp = jnp.pad(y, ((0, 0), (pad, pad)))
    conv = sum(w[i] * yp[:, i:i + C] for i in range(k))
    return x * jax.nn.sigmoid(conv)[:, None, None, :]


# ---------------------------------------------------------------------------
# Module forwards (operate on prepared / BN-folded params).
# ---------------------------------------------------------------------------
def res_block(x, pp):
    h = conv2d_fused(x, pp["conv1"], stride=1, padding=1, act=True)       # fused LeakyReLU
    return conv2d_fused(h, pp["conv2"], stride=1, padding=1, residual=x)  # fused +x


def conv_block(x, pp, *, stride, activation):
    if activation:
        x = leaky_relu(x)
    y = conv2d_fused(x, pp["conv"], stride=stride, padding=1)             # BN folded
    # TODO(synk): torch Dropout is stochastic in train mode; modeled as identity here.
    for rp in pp["res"]:
        y = res_block(y, rp)
    if "atten" in pp:
        y = eca(y, pp["atten"]) + y                                       # ResAttenBlock (ECA)
    return y


def aspp_block(x, pp, *, activation):
    """Returns ASPP_ConvBlock(x) + x (the outer residual is fused into conv_cat)."""
    B, H, W, C = x.shape
    x_in_flat = x.reshape(B * H * W, C)
    xa = leaky_relu(x) if activation else x
    # 4 dilated 3x3 branches -> one block-diagonal matmul (BN + branch weight folded).
    pats = [im2col_nhwc(xa, 3, 3, 1, d, d)[0] for d in (1, 6, 12, 18)]
    A = jnp.concatenate(pats, axis=-1)                    # (M, 4*9*C)
    branches = matmul_fused(A, pp["branch_w"], pp["branch_b"], n_out=4 * C)
    x5 = max_pool_nhwc(xa).reshape(-1, C) * pp["w4"]      # in_dim == out_dim -> no conv5/conv6
    x6 = avg_pool_nhwc(xa).reshape(-1, C) * pp["w5"]
    cat = jnp.concatenate([branches, x5, x6], axis=-1)    # (M, 6C), lane-axis concat
    out = matmul_fused(cat, pp["cat"]["w"], pp["cat"]["b"], n_out=C,
                       residual=x_in_flat)                # conv_cat + folded BN + residual
    return out.reshape(B, H, W, C)


def unet_encode_fwd(x, pp, *, layer, aspp):
    x = conv_block(x, pp["conv0"], stride=1, activation=False)
    outs = []
    for i in range(layer):
        x = conv_block(x, pp["convs"][i], stride=2, activation=True)
        outs.append(x)
    if aspp == 0:
        return outs
    final = []
    for i in range(layer):
        xi = outs[i]
        for j in range(aspp):
            xi = aspp_block(xi, pp["aspp"][i][j], activation=(j != 0))
        final.append(xi)
    return final


def compose_more_encode_fwd(X_list, pp, *, layer, encode_num, aspp, compose_type="cat"):
    # Convert NCHW -> NHWC once at the boundary; stay lane-dense end-to-end.
    Xs = [jnp.transpose(x, (0, 2, 3, 1)) for x in X_list]
    all_out = [unet_encode_fwd(Xs[i], pp["encodes"][i], layer=layer, aspp=aspp)
               for i in range(encode_num)]
    single_out = []
    if compose_type == "add":
        for i in range(layer):
            acc = all_out[0][i]
            for j in range(1, encode_num):
                acc = acc + all_out[j][i]
            single_out.append(jnp.transpose(acc, (0, 3, 1, 2)))
        return single_out
    for i in range(layer):
        cat = jnp.concatenate([all_out[j][i] for j in range(encode_num)], axis=-1)
        out = conv_block(cat, pp["compose"][i], stride=1, activation=True)
        single_out.append(jnp.transpose(out, (0, 3, 1, 2)))   # back to NCHW
    return single_out


# ---------------------------------------------------------------------------
# Parameter preparation (run ONCE): fold BN, transpose/pad/cast weights to
# matmul-ready (Kp, Np) bf16 + (1, Np) f32 bias, build block-diag ASPP weights.
# ---------------------------------------------------------------------------
def prep_conv(conv_p, bn_p=None, eps=1e-5):
    w = conv_p["w"].astype(jnp.float32)
    b = conv_p["b"].astype(jnp.float32)
    Cout, Cin, KH, KW = w.shape
    if bn_p is not None:
        s = bn_p["gamma"] / jnp.sqrt(bn_p["var"] + eps)
        b = (b - bn_p["mean"]) * s + bn_p["beta"]
        w = w * s[:, None, None, None]
    wmat = jnp.transpose(w, (2, 3, 1, 0)).reshape(KH * KW * Cin, Cout)   # K layout (kh,kw,cin)
    K, N = wmat.shape
    Kp, Np = _round_up(K, 128), _round_up(N, 128)
    return {"w": jnp.pad(wmat, ((0, Kp - K), (0, Np - N))).astype(jnp.bfloat16),
            "b": jnp.pad(b, (0, Np - N)).reshape(1, Np).astype(jnp.float32),
            "n": N, "kh": KH, "kw": KW}


def prep_convblock(p):
    q = {"conv": prep_conv(p["conv"], p.get("bn")),
         "res": [{"conv1": prep_conv(rp["conv1"]), "conv2": prep_conv(rp["conv2"])}
                 for rp in p["res"]]}
    if "atten" in p:
        q["atten"] = p["atten"]
    return q


def prep_aspp(p, eps=1e-5):
    C = p["conv1"]["w"].shape[0]
    K1 = 9 * C
    wmats, biases = [], []
    for idx in range(4):
        conv, bn = p[f"conv{idx + 1}"], p[f"bn{idx + 1}"]
        bw = p["weights"][idx]
        s = bn["gamma"] / jnp.sqrt(bn["var"] + eps)
        w = conv["w"] * (s * bw)[:, None, None, None]
        b = ((conv["b"] - bn["mean"]) * s + bn["beta"]) * bw
        wmats.append(jnp.transpose(w, (2, 3, 1, 0)).reshape(K1, C))
        biases.append(b)
    Wbig = jnp.zeros((4 * K1, 4 * C), jnp.float32)
    for i in range(4):
        Wbig = Wbig.at[i * K1:(i + 1) * K1, i * C:(i + 1) * C].set(wmats[i])
    bbig = jnp.concatenate(biases)
    Kp, Np = _round_up(4 * K1, 128), _round_up(4 * C, 128)
    return {"branch_w": jnp.pad(Wbig, ((0, Kp - 4 * K1), (0, Np - 4 * C))).astype(jnp.bfloat16),
            "branch_b": jnp.pad(bbig, (0, Np - 4 * C)).reshape(1, Np).astype(jnp.float32),
            "w4": p["weights"][4], "w5": p["weights"][5],
            "cat": prep_conv(p["conv_cat"], p["bn"])}


def prepare_unet_encode(p, aspp):
    q = {"conv0": prep_convblock(p["conv0"]),
         "convs": [prep_convblock(cp) for cp in p["convs"]]}
    if aspp != 0:
        q["aspp"] = [[prep_aspp(ap) for ap in layer_aspp] for layer_aspp in p["aspp"]]
    return q


def prepare_compose(p, aspp):
    return {"encodes": [prepare_unet_encode(ep, aspp) for ep in p["encodes"]],
            "compose": [prep_convblock(cp) for cp in p["compose"]]}


# ---------------------------------------------------------------------------
# Deterministic parameter init (shapes follow the torch module __init__).
# ---------------------------------------------------------------------------
def init_conv(key, cin, cout, k):
    kw, kb = jax.random.split(key)
    scale = 1.0 / math.sqrt(cin * k * k)
    return {"w": jax.random.normal(kw, (cout, cin, k, k), jnp.float32) * scale,
            "b": jax.random.normal(kb, (cout,), jnp.float32) * 0.02}


def init_bn(key, c):
    k1, k2, k3, k4 = jax.random.split(key, 4)
    return {"gamma": 1.0 + 0.1 * jax.random.normal(k1, (c,), jnp.float32),
            "beta": 0.1 * jax.random.normal(k2, (c,), jnp.float32),
            "mean": 0.1 * jax.random.normal(k3, (c,), jnp.float32),
            "var": 1.0 + 0.1 * jax.random.uniform(k4, (c,), jnp.float32)}


def init_eca(key, c, k_size=3):
    return {"w": jax.random.normal(key, (k_size,), jnp.float32) * 0.5}


def init_resblock(key, dim):
    k1, k2 = jax.random.split(key)
    return {"conv1": init_conv(k1, dim, dim, 3), "conv2": init_conv(k2, dim, dim, 3)}


def init_convblock(key, cin, cout, *, batch_norm=True, res=0, atten=False, k=3):
    keys = jax.random.split(key, 3 + max(res, 1))
    p = {"conv": init_conv(keys[0], cin, cout, k), "res": []}
    if batch_norm:
        p["bn"] = init_bn(keys[1], cout)
    p["res"] = [init_resblock(keys[3 + i], cout) for i in range(res)]
    if atten:
        p["atten"] = init_eca(keys[2], cout)
    return p


def init_asppblock(key, cin, cout):
    assert cin == cout  # UnetEncode always builds ASPP blocks with in_dim == out_dim
    ks = jax.random.split(key, 10)
    p = {}
    for i in range(4):
        p[f"conv{i + 1}"] = init_conv(ks[2 * i], cin, cout, 3)
        p[f"bn{i + 1}"] = init_bn(ks[2 * i + 1], cout)
    p["weights"] = jnp.ones((6,), jnp.float32)           # torch.nn.Parameter(torch.ones(6))
    p["conv_cat"] = init_conv(ks[8], 6 * cout, cout, 1)
    p["bn"] = init_bn(ks[9], cout)
    return p


def init_unet_encode(key, in_dim, base_dim, layer, aspp):
    k0, kc, ka = jax.random.split(key, 3)
    p = {"conv0": init_convblock(k0, in_dim, base_dim, batch_norm=True, res=0, atten=False)}
    ck = jax.random.split(kc, layer)
    convs, dims = [], []
    out_dim = base_dim
    for i in range(layer):
        if i == 0:
            cin, out_dim = base_dim, base_dim
        else:
            cin, out_dim = out_dim, out_dim * 2
        dims.append(out_dim)
        convs.append(init_convblock(ck[i], cin, out_dim, batch_norm=True, res=1, atten=True))
    p["convs"] = convs
    if aspp != 0:
        ak = jax.random.split(ka, layer)
        p["aspp"] = [[init_asppblock(jk, dims[i], dims[i])
                      for jk in jax.random.split(ak[i], aspp)]
                     for i in range(layer)]
    return p


def init_compose_more_encode(key, in_dim_list, encode_num, base_dim, layer, aspp):
    ke, kc = jax.random.split(key)
    eks = jax.random.split(ke, encode_num)
    p = {"encodes": [init_unet_encode(eks[i], in_dim_list[i], base_dim, layer, aspp)
                     for i in range(encode_num)]}
    cks = jax.random.split(kc, layer)
    p["compose"] = [init_convblock(cks[i], encode_num * base_dim * 2 ** i, base_dim * 2 ** i,
                                   batch_norm=True, res=2, atten=True)
                    for i in range(layer)]
    return p


# ---------------------------------------------------------------------------
if __name__ == "__main__":
    B, H, W = 2, 16, 16
    in_dim_list = [3, 2]
    encode_num, base_dim, layer, aspp = 2, 8, 2, 2

    root = jax.random.PRNGKey(0)
    pkey, xk1, xk2 = jax.random.split(root, 3)
    params = init_compose_more_encode(pkey, in_dim_list, encode_num, base_dim, layer, aspp)
    # One-time prep: fold BN / ASPP branch scales, transpose + pad + bf16-cast weights.
    plan = prepare_compose(params, aspp)

    X_list = [
        jax.random.normal(xk1, (B, in_dim_list[0], H, W), jnp.float32),
        jax.random.normal(xk2, (B, in_dim_list[1], H, W), jnp.float32),
    ]

    fwd = jax.jit(lambda x0, x1: compose_more_encode_fwd(
        [x0, x1], plan, layer=layer, encode_num=encode_num, aspp=aspp, compose_type="cat"))
    outs = jax.block_until_ready(fwd(X_list[0], X_list[1]))

    for i, o in enumerate(outs):
        expect = (B, base_dim * 2 ** i, H // 2 ** (i + 1), W // 2 ** (i + 1))
        assert o.shape == expect, (o.shape, expect)
        assert bool(jnp.all(jnp.isfinite(o))), f"non-finite output at layer {i}"
    print("KERNEL_OK")
</pallas_src>

<mosaic_0001>
module attributes {stable_mosaic.version = 11 : i64} {
  func.func @_mm_kernel(%arg0: i32, %arg1: memref<256x128xbf16, #tpu.memory_space<vmem>>, %arg2: memref<128x128xbf16, #tpu.memory_space<vmem>>, %arg3: memref<1x128xf32, #tpu.memory_space<vmem>>, %arg4: memref<256x128xf32, #tpu.memory_space<vmem>>) attributes {dimension_semantics = [#tpu.dimension_semantics<parallel>], iteration_bounds = array<i64: 2>, scalar_prefetch = 0 : i64, scratch_operands = 0 : i64, tpu.core_type = #tpu.core_type<tc>, window_params = [{transform_indices = @transform_0, window_bounds = array<i64: 256, 128>}, {pipeline_mode = #tpu.pipeline_mode<synchronous>, transform_indices = @transform_1, window_bounds = array<i64: 128, 128>}, {pipeline_mode = #tpu.pipeline_mode<synchronous>, transform_indices = @transform_2, window_bounds = array<i64: 1, 128>}, {transform_indices = @transform_3, window_bounds = array<i64: 256, 128>}]} {
    %c0 = arith.constant 0 : index
    %c0_0 = arith.constant 0 : index
    %0 = vector.load %arg1[%c0, %c0_0] : memref<256x128xbf16, #tpu.memory_space<vmem>>, vector<256x128xbf16>
    %c0_1 = arith.constant 0 : index
    %c0_2 = arith.constant 0 : index
    %1 = vector.load %arg2[%c0_1, %c0_2] : memref<128x128xbf16, #tpu.memory_space<vmem>>, vector<128x128xbf16>
    %cst = arith.constant dense<0.000000e+00> : vector<256x128xf32>
    %2 = tpu.matmul %0, %1, %cst {dimension_numbers = #tpu.dot_dimension_numbers<[1], [0], [0], [1], [0, 0, 1, 1], [], []>} : vector<256x128xbf16>, vector<128x128xbf16>, vector<256x128xf32> -> vector<256x128xf32>
    %c0_3 = arith.constant 0 : index
    %c0_4 = arith.constant 0 : index
    %3 = vector.load %arg3[%c0_3, %c0_4] : memref<1x128xf32, #tpu.memory_space<vmem>>, vector<1x128xf32>
    %4 = vector.broadcast %3 : vector<1x128xf32> to vector<256x128xf32>
    %5 = arith.addf %2, %4 : vector<256x128xf32>
    %c0_5 = arith.constant 0 : index
    %c0_6 = arith.constant 0 : index
    %6 = vector.load %arg4[%c0_5, %c0_6] : memref<256x128xf32, #tpu.memory_space<vmem>>, vector<256x128xf32>
    tpu.vector_store %arg4[%c0_5, %c0_6], %5 {strides = array<i32>} : memref<256x128xf32, #tpu.memory_space<vmem>>, vector<256x128xf32>,
    return
  }
  func.func @transform_0(%arg0: i32) -> (i32, i32) {
    %c0_i32 = arith.constant 0 : i32
    %c0_i32_0 = arith.constant 0 : i32
    return %arg0, %c0_i32 : i32, i32
  }
  func.func @transform_1(%arg0: i32) -> (i32, i32) {
    %c0_i32 = arith.constant 0 : i32
    %c0_i32_0 = arith.constant 0 : i32
    %c0_i32_1 = arith.constant 0 : i32
    return %c0_i32, %c0_i32_0 : i32, i32
  }
  func.func @transform_2(%arg0: i32) -> (i32, i32) {
    %c0_i32 = arith.constant 0 : i32
    %c0_i32_0 = arith.constant 0 : i32
    %c0_i32_1 = arith.constant 0 : i32
    return %c0_i32, %c0_i32_0 : i32, i32
  }
  func.func @transform_3(%arg0: i32) -> (i32, i32) {
    %c0_i32 = arith.constant 0 : i32
    %c0_i32_0 = arith.constant 0 : i32
    return %arg0, %c0_i32 : i32, i32
  }
}

module attributes {stable_mosaic.version = 11 : i64} {
  func.func @_mm_kernel(%arg0: i32, %arg1: memref<128x128xbf16, #tpu.memory_space<vmem>>, %arg2: memref<128x128xbf16, #tpu.memory_space<vmem>>, %arg3: memref<1x128xf32, #tpu.memory_space<vmem>>, %arg4: memref<128x128xf32, #tpu.memory_space<vmem>>) attributes {dimension_semantics = [#tpu.dimension_semantics<parallel>], iteration_bounds = array<i64: 1>, scalar_prefetch = 0 : i64, scratch_operands = 0 : i64, tpu.core_type = #tpu.core_type<tc>, window_params = [{transform_indices = @transform_0, window_bounds = array<i64: 128, 128>}, {pipeline_mode = #tpu.pipeline_mode<synchronous>, transform_indices = @transform_1, window_bounds = array<i64: 128, 128>}, {pipeline_mode = #tpu.pipeline_mode<synchronous>, transform_indices = @transform_2, window_bounds = array<i64: 1, 128>}, {transform_indices = @transform_3, window_bounds = array<i64: 128, 128>}]} {
    %c0 = arith.constant 0 : index
    %c0_0 = arith.constant 0 : index
    %0 = vector.load %arg1[%c0, %c0_0] : memref<128x128xbf16, #tpu.memory_space<vmem>>, vector<128x128xbf16>
    %c0_1 = arith.constant 0 : index
    %c0_2 = arith.constant 0 : index
    %1 = vector.load %arg2[%c0_1, %c0_2] : memref<128x128xbf16, #tpu.memory_space<vmem>>, vector<128x128xbf16>
    %cst = arith.constant dense<0.000000e+00> : vector<128x128xf32>
    %2 = tpu.matmul %0, %1, %cst {dimension_numbers = #tpu.dot_dimension_numbers<[1], [0], [0], [1], [0, 0, 1, 1], [], []>} : vector<128x128xbf16>, vector<128x128xbf16>, vector<128x128xf32> -> vector<128x128xf32>
    %c0_3 = arith.constant 0 : index
    %c0_4 = arith.constant 0 : index
    %3 = vector.load %arg3[%c0_3, %c0_4] : memref<1x128xf32, #tpu.memory_space<vmem>>, vector<1x128xf32>
    %4 = vector.broadcast %3 : vector<1x128xf32> to vector<128x128xf32>
    %5 = arith.addf %2, %4 : vector<128x128xf32>
    %c0_5 = arith.constant 0 : index
    %c0_6 = arith.constant 0 : index
    %6 = vector.load %arg4[%c0_5, %c0_6] : memref<128x128xf32, #tpu.memory_space<vmem>>, vector<128x128xf32>
    tpu.vector_store %arg4[%c0_5, %c0_6], %5 {strides = array<i32>} : memref<128x128xf32, #tpu.memory_space<vmem>>, vector<128x128xf32>,
    return
  }
  func.func @transform_0(%arg0: i32) -> (i32, i32) {
    %c0_i32 = arith.constant 0 : i32
    %c0_i32_0 = arith.constant 0 : i32
    return %arg0, %c0_i32 : i32, i32
  }
  func.func @transform_1(%arg0: i32) -> (i32, i32) {
    %c0_i32 = arith.constant 0 : i32
    %c0_i32_0 = arith.constant 0 : i32
    %c0_i32_1 = arith.constant 0 : i32
    return %c0_i32, %c0_i32_0 : i32, i32
  }
  func.func @transform_2(%arg0: i32) -> (i32, i32) {
    %c0_i32 = arith.constant 0 : i32
    %c0_i32_0 = arith.constant 0 : i32
    %c0_i32_1 = arith.constant 0 : i32
    return %c0_i32, %c0_i32_0 : i32, i32
  }
  func.func @transform_3(%arg0: i32) -> (i32, i32) {
    %c0_i32 = arith.constant 0 : i32
    %c0_i32_0 = arith.constant 0 : i32
    return %arg0, %c0_i32 : i32, i32
  }
}

module attributes {stable_mosaic.version = 11 : i64} {
  func.func @_mm_res_kernel(%arg0: i32, %arg1: memref<128x128xbf16, #tpu.memory_space<vmem>>, %arg2: memref<128x128xbf16, #tpu.memory_space<vmem>>, %arg3: memref<1x128xf32, #tpu.memory_space<vmem>>, %arg4: memref<128x128xf32, #tpu.memory_space<vmem>>, %arg5: memref<128x128xf32, #tpu.memory_space<vmem>>) attributes {dimension_semantics = [#tpu.dimension_semantics<parallel>], iteration_bounds = array<i64: 1>, scalar_prefetch = 0 : i64, scratch_operands = 0 : i64, tpu.core_type = #tpu.core_type<tc>, window_params = [{transform_indices = @transform_0, window_bounds = array<i64: 128, 128>}, {pipeline_mode = #tpu.pipeline_mode<synchronous>, transform_indices = @transform_1, window_bounds = array<i64: 128, 128>}, {pipeline_mode = #tpu.pipeline_mode<synchronous>, transform_indices = @transform_2, window_bounds = array<i64: 1, 128>}, {transform_indices = @transform_3, window_bounds = array<i64: 128, 128>}, {transform_indices = @transform_4, window_bounds = array<i64: 128, 128>}]} {
    %c0 = arith.constant 0 : index
    %c0_0 = arith.constant 0 : index
    %0 = vector.load %arg1[%c0, %c0_0] : memref<128x128xbf16, #tpu.memory_space<vmem>>, vector<128x128xbf16>
    %c0_1 = arith.constant 0 : index
    %c0_2 = arith.constant 0 : index
    %1 = vector.load %arg2[%c0_1, %c0_2] : memref<128x128xbf16, #tpu.memory_space<vmem>>, vector<128x128xbf16>
    %cst = arith.constant dense<0.000000e+00> : vector<128x128xf32>
    %2 = tpu.matmul %0, %1, %cst {dimension_numbers = #tpu.dot_dimension_numbers<[1], [0], [0], [1], [0, 0, 1, 1], [], []>} : vector<128x128xbf16>, vector<128x128xbf16>, vector<128x128xf32> -> vector<128x128xf32>
    %c0_3 = arith.constant 0 : index
    %c0_4 = arith.constant 0 : index
    %3 = vector.load %arg3[%c0_3, %c0_4] : memref<1x128xf32, #tpu.memory_space<vmem>>, vector<1x128xf32>
    %4 = vector.broadcast %3 : vector<1x128xf32> to vector<128x128xf32>
    %5 = arith.addf %2, %4 : vector<128x128xf32>
    %c0_5 = arith.constant 0 : index
    %c0_6 = arith.constant 0 : index
    %6 = vector.load %arg4[%c0_5, %c0_6] : memref<128x128xf32, #tpu.memory_space<vmem>>, vector<128x128xf32>
    %7 = arith.addf %5, %6 : vector<128x128xf32>
    %c0_7 = arith.constant 0 : index
    %c0_8 = arith.constant 0 : index
    %8 = vector.load %arg5[%c0_7, %c0_8] : memref<128x128xf32, #tpu.memory_space<vmem>>, vector<128x128xf32>
    tpu.vector_store %arg5[%c0_7, %c0_8], %7 {strides = array<i32>} : memref<128x128xf32, #tpu.memory_space<vmem>>, vector<128x128xf32>,
    return
  }
  func.func @transform_0(%arg0: i32) -> (i32, i32) {
    %c0_i32 = arith.constant 0 : i32
    %c0_i32_0 = arith.constant 0 : i32
    return %arg0, %c0_i32 : i32, i32
  }
  func.func @transform_1(%arg0: i32) -> (i32, i32) {
    %c0_i32 = arith.constant 0 : i32
    %c0_i32_0 = arith.constant 0 : i32
    %c0_i32_1 = arith.constant 0 : i32
    return %c0_i32, %c0_i32_0 : i32, i32
  }
  func.func @transform_2(%arg0: i32) -> (i32, i32) {
    %c0_i32 = arith.constant 0 : i32
    %c0_i32_0 = arith.constant 0 : i32
    %c0_i32_1 = arith.constant 0 : i32
    return %c0_i32, %c0_i32_0 : i32, i32
  }
  func.func @transform_3(%arg0: i32) -> (i32, i32) {
    %c0_i32 = arith.constant 0 : i32
    %c0_i32_0 = arith.constant 0 : i32
    return %arg0, %c0_i32 : i32, i32
  }
  func.func @transform_4(%arg0: i32) -> (i32, i32) {
    %c0_i32 = arith.constant 0 : i32
    %c0_i32_0 = arith.constant 0 : i32
    return %arg0, %c0_i32 : i32, i32
  }
}

module attributes {stable_mosaic.version = 11 : i64} {
  func.func @_mm_kernel(%arg0: i32, %arg1: memref<128x128xbf16, #tpu.memory_space<vmem>>, %arg2: memref<128x128xbf16, #tpu.memory_space<vmem>>, %arg3: memref<1x128xf32, #tpu.memory_space<vmem>>, %arg4: memref<128x128xf32, #tpu.memory_space<vmem>>) attributes {dimension_semantics = [#tpu.dimension_semantics<parallel>], iteration_bounds = array<i64: 1>, scalar_prefetch = 0 : i64, scratch_operands = 0 : i64, tpu.core_type = #tpu.core_type<tc>, window_params = [{transform_indices = @transform_0, window_bounds = array<i64: 128, 128>}, {pipeline_mode = #tpu.pipeline_mode<synchronous>, transform_indices = @transform_1, window_bounds = array<i64: 128, 128>}, {pipeline_mode = #tpu.pipeline_mode<synchronous>, transform_indices = @transform_2, window_bounds = array<i64: 1, 128>}, {transform_indices = @transform_3, window_bounds = array<i64: 128, 128>}]} {
    %c0 = arith.constant 0 : index
    %c0_0 = arith.constant 0 : index
    %0 = vector.load %arg1[%c0, %c0_0] : memref<128x128xbf16, #tpu.memory_space<vmem>>, vector<128x128xbf16>
    %c0_1 = arith.constant 0 : index
    %c0_2 = arith.constant 0 : index
    %1 = vector.load %arg2[%c0_1, %c0_2] : memref<128x128xbf16, #tpu.memory_space<vmem>>, vector<128x128xbf16>
    %cst = arith.constant dense<0.000000e+00> : vector<128x128xf32>
    %2 = tpu.matmul %0, %1, %cst {dimension_numbers = #tpu.dot_dimension_numbers<[1], [0], [0], [1], [0, 0, 1, 1], [], []>} : vector<128x128xbf16>, vector<128x128xbf16>, vector<128x128xf32> -> vector<128x128xf32>
    %c0_3 = arith.constant 0 : index
    %c0_4 = arith.constant 0 : index
    %3 = vector.load %arg3[%c0_3, %c0_4] : memref<1x128xf32, #tpu.memory_space<vmem>>, vector<1x128xf32>
    %4 = vector.broadcast %3 : vector<1x128xf32> to vector<128x128xf32>
    %5 = arith.addf %2, %4 : vector<128x128xf32>
    %cst_5 = arith.constant 0.000000e+00 : f32
    %6 = vector.broadcast %cst_5 : f32 to vector<128x128xf32>
    %7 = arith.cmpf oge, %5, %6 : vector<128x128xf32>
    %cst_6 = arith.constant 2.000000e-01 : f32
    %8 = vector.broadcast %cst_6 : f32 to vector<128x128xf32>
    %9 = arith.mulf %8, %5 : vector<128x128xf32>
    %10 = arith.select %7, %5, %9 : vector<128x128xi1>, vector<128x128xf32>
    %c0_7 = arith.constant 0 : index
    %c0_8 = arith.constant 0 : index
    %11 = vector.load %arg4[%c0_7, %c0_8] : memref<128x128xf32, #tpu.memory_space<vmem>>, vector<128x128xf32>
    tpu.vector_store %arg4[%c0_7, %c0_8], %10 {strides = array<i32>} : memref<128x128xf32, #tpu.memory_space<vmem>>, vector<128x128xf32>,
    return
  }
  func.func @transform_0(%arg0: i32) -> (i32, i32) {
    %c0_i32 = arith.constant 0 : i32
    %c0_i32_0 = arith.constant 0 : i32
    return %arg0, %c0_i32 : i32, i32
  }
  func.func @transform_1(%arg0: i32) -> (i32, i32) {
    %c0_i32 = arith.constant 0 : i32
    %c0_i32_0 = arith.constant 0 : i32
    %c0_i32_1 = arith.constant 0 : i32
    return %c0_i32, %c0_i32_0 : i32, i32
  }
  func.func @transform_2(%arg0: i32) -> (i32, i32) {
    %c0_i32 = arith.constant 0 : i32
    %c0_i32_0 = arith.constant 0 : i32
    %c0_i32_1 = arith.constant 0 : i32
    return %c0_i32, %c0_i32_0 : i32, i32
  }
  func.func @transform_3(%arg0: i32) -> (i32, i32) {
    %c0_i32 = arith.constant 0 : i32
    %c0_i32_0 = arith.constant 0 : i32
    return %arg0, %c0_i32 : i32, i32
  }
}

module attributes {stable_mosaic.version = 11 : i64} {
  func.func @_mm_kernel(%arg0: i32, %arg1: memref<32x128xbf16, #tpu.memory_space<vmem>>, %arg2: memref<128x128xbf16, #tpu.memory_space<vmem>>, %arg3: memref<1x128xf32, #tpu.memory_space<vmem>>, %arg4: memref<32x128xf32, #tpu.memory_space<vmem>>) attributes {dimension_semantics = [#tpu.dimension_semantics<parallel>], iteration_bounds = array<i64: 1>, scalar_prefetch = 0 : i64, scratch_operands = 0 : i64, tpu.core_type = #tpu.core_type<tc>, window_params = [{transform_indices = @transform_0, window_bounds = array<i64: 32, 128>}, {pipeline_mode = #tpu.pipeline_mode<synchronous>, transform_indices = @transform_1, window_bounds = array<i64: 128, 128>}, {pipeline_mode = #tpu.pipeline_mode<synchronous>, transform_indices = @transform_2, window_bounds = array<i64: 1, 128>}, {transform_indices = @transform_3, window_bounds = array<i64: 32, 128>}]} {
    %c0 = arith.constant 0 : index
    %c0_0 = arith.constant 0 : index
    %0 = vector.load %arg1[%c0, %c0_0] : memref<32x128xbf16, #tpu.memory_space<vmem>>, vector<32x128xbf16>
    %c0_1 = arith.constant 0 : index
    %c0_2 = arith.constant 0 : index
    %1 = vector.load %arg2[%c0_1, %c0_2] : memref<128x128xbf16, #tpu.memory_space<vmem>>, vector<128x128xbf16>
    %cst = arith.constant dense<0.000000e+00> : vector<32x128xf32>
    %2 = tpu.matmul %0, %1, %cst {dimension_numbers = #tpu.dot_dimension_numbers<[1], [0], [0], [1], [0, 0, 1, 1], [], []>} : vector<32x128xbf16>, vector<128x128xbf16>, vector<32x128xf32> -> vector<32x128xf32>
    %c0_3 = arith.constant 0 : index
    %c0_4 = arith.constant 0 : index
    %3 = vector.load %arg3[%c0_3, %c0_4] : memref<1x128xf32, #tpu.memory_space<vmem>>, vector<1x128xf32>
    %4 = vector.broadcast %3 : vector<1x128xf32> to vector<32x128xf32>
    %5 = arith.addf %2, %4 : vector<32x128xf32>
    %c0_5 = arith.constant 0 : index
    %c0_6 = arith.constant 0 : index
    %6 = vector.load %arg4[%c0_5, %c0_6] : memref<32x128xf32, #tpu.memory_space<vmem>>, vector<32x128xf32>
    tpu.vector_store %arg4[%c0_5, %c0_6], %5 {strides = array<i32>} : memref<32x128xf32, #tpu.memory_space<vmem>>, vector<32x128xf32>,
    return
  }
  func.func @transform_0(%arg0: i32) -> (i32, i32) {
    %c0_i32 = arith.constant 0 : i32
    %c0_i32_0 = arith.constant 0 : i32
    return %arg0, %c0_i32 : i32, i32
  }
  func.func @transform_1(%arg0: i32) -> (i32, i32) {
    %c0_i32 = arith.constant 0 : i32
    %c0_i32_0 = arith.constant 0 : i32
    %c0_i32_1 = arith.constant 0 : i32
    return %c0_i32, %c0_i32_0 : i32, i32
  }
  func.func @transform_2(%arg0: i32) -> (i32, i32) {
    %c0_i32 = arith.constant 0 : i32
    %c0_i32_0 = arith.constant 0 : i32
    %c0_i32_1 = arith.constant 0 : i32
    return %c0_i32, %c0_i32_0 : i32, i32
  }
  func.func @transform_3(%arg0: i32) -> (i32, i32) {
    %c0_i32 = arith.constant 0 : i32
    %c0_i32_0 = arith.constant 0 : i32
    return %arg0, %c0_i32 : i32, i32
  }
}

module attributes {stable_mosaic.version = 11 : i64} {
  func.func @_mm_res_kernel(%arg0: i32, %arg1: memref<32x256xbf16, #tpu.memory_space<vmem>>, %arg2: memref<256x128xbf16, #tpu.memory_space<vmem>>, %arg3: memref<1x128xf32, #tpu.memory_space<vmem>>, %arg4: memref<32x128xf32, #tpu.memory_space<vmem>>, %arg5: memref<32x128xf32, #tpu.memory_space<vmem>>) attributes {dimension_semantics = [#tpu.dimension_semantics<parallel>], iteration_bounds = array<i64: 1>, scalar_prefetch = 0 : i64, scratch_operands = 0 : i64, tpu.core_type = #tpu.core_type<tc>, window_params = [{transform_indices = @transform_0, window_bounds = array<i64: 32, 256>}, {pipeline_mode = #tpu.pipeline_mode<synchronous>, transform_indices = @transform_1, window_bounds = array<i64: 256, 128>}, {pipeline_mode = #tpu.pipeline_mode<synchronous>, transform_indices = @transform_2, window_bounds = array<i64: 1, 128>}, {transform_indices = @transform_3, window_bounds = array<i64: 32, 128>}, {transform_indices = @transform_4, window_bounds = array<i64: 32, 128>}]} {
    %c0 = arith.constant 0 : index
    %c0_0 = arith.constant 0 : index
    %0 = vector.load %arg1[%c0, %c0_0] : memref<32x256xbf16, #tpu.memory_space<vmem>>, vector<32x256xbf16>
    %c0_1 = arith.constant 0 : index
    %c0_2 = arith.constant 0 : index
    %1 = vector.load %arg2[%c0_1, %c0_2] : memref<256x128xbf16, #tpu.memory_space<vmem>>, vector<256x128xbf16>
    %cst = arith.constant dense<0.000000e+00> : vector<32x128xf32>
    %2 = tpu.matmul %0, %1, %cst {dimension_numbers = #tpu.dot_dimension_numbers<[1], [0], [0], [1], [0, 0, 1, 1], [], []>} : vector<32x256xbf16>, vector<256x128xbf16>, vector<32x128xf32> -> vector<32x128xf32>
    %c0_3 = arith.constant 0 : index
    %c0_4 = arith.constant 0 : index
    %3 = vector.load %arg3[%c0_3, %c0_4] : memref<1x128xf32, #tpu.memory_space<vmem>>, vector<1x128xf32>
    %4 = vector.broadcast %3 : vector<1x128xf32> to vector<32x128xf32>
    %5 = arith.addf %2, %4 : vector<32x128xf32>
    %c0_5 = arith.constant 0 : index
    %c0_6 = arith.constant 0 : index
    %6 = vector.load %arg4[%c0_5, %c0_6] : memref<32x128xf32, #tpu.memory_space<vmem>>, vector<32x128xf32>
    %7 = arith.addf %5, %6 : vector<32x128xf32>
    %c0_7 = arith.constant 0 : index
    %c0_8 = arith.constant 0 : index
    %8 = vector.load %arg5[%c0_7, %c0_8] : memref<32x128xf32, #tpu.memory_space<vmem>>, vector<32x128xf32>
    tpu.vector_store %arg5[%c0_7, %c0_8], %7 {strides = array<i32>} : memref<32x128xf32, #tpu.memory_space<vmem>>, vector<32x128xf32>,
    return
  }
  func.func @transform_0(%arg0: i32) -> (i32, i32) {
    %c0_i32 = arith.constant 0 : i32
    %c0_i32_0 = arith.constant 0 : i32
    return %arg0, %c0_i32 : i32, i32
  }
  func.func @transform_1(%arg0: i32) -> (i32, i32) {
    %c0_i32 = arith.constant 0 : i32
    %c0_i32_0 = arith.constant 0 : i32
    %c0_i32_1 = arith.constant 0 : i32
    return %c0_i32, %c0_i32_0 : i32, i32
  }
  func.func @transform_2(%arg0: i32) -> (i32, i32) {
    %c0_i32 = arith.constant 0 : i32
    %c0_i32_0 = arith.constant 0 : i32
    %c0_i32_1 = arith.constant 0 : i32
    return %c0_i32, %c0_i32_0 : i32, i32
  }
  func.func @transform_3(%arg0: i32) -> (i32, i32) {
    %c0_i32 = arith.constant 0 : i32
    %c0_i32_0 = arith.constant 0 : i32
    return %arg0, %c0_i32 : i32, i32
  }
  func.func @transform_4(%arg0: i32) -> (i32, i32) {
    %c0_i32 = arith.constant 0 : i32
    %c0_i32_0 = arith.constant 0 : i32
    return %arg0, %c0_i32 : i32, i32
  }
}

module attributes {stable_mosaic.version = 11 : i64} {
  func.func @_mm_kernel(%arg0: i32, %arg1: memref<32x256xbf16, #tpu.memory_space<vmem>>, %arg2: memref<256x128xbf16, #tpu.memory_space<vmem>>, %arg3: memref<1x128xf32, #tpu.memory_space<vmem>>, %arg4: memref<32x128xf32, #tpu.memory_space<vmem>>) attributes {dimension_semantics = [#tpu.dimension_semantics<parallel>], iteration_bounds = array<i64: 1>, scalar_prefetch = 0 : i64, scratch_operands = 0 : i64, tpu.core_type = #tpu.core_type<tc>, window_params = [{transform_indices = @transform_0, window_bounds = array<i64: 32, 256>}, {pipeline_mode = #tpu.pipeline_mode<synchronous>, transform_indices = @transform_1, window_bounds = array<i64: 256, 128>}, {pipeline_mode = #tpu.pipeline_mode<synchronous>, transform_indices = @transform_2, window_bounds = array<i64: 1, 128>}, {transform_indices = @transform_3, window_bounds = array<i64: 32, 128>}]} {
    %c0 = arith.constant 0 : index
    %c0_0 = arith.constant 0 : index
    %0 = vector.load %arg1[%c0, %c0_0] : memref<32x256xbf16, #tpu.memory_space<vmem>>, vector<32x256xbf16>
    %c0_1 = arith.constant 0 : index
    %c0_2 = arith.constant 0 : index
    %1 = vector.load %arg2[%c0_1, %c0_2] : memref<256x128xbf16, #tpu.memory_space<vmem>>, vector<256x128xbf16>
    %cst = arith.constant dense<0.000000e+00> : vector<32x128xf32>
    %2 = tpu.matmul %0, %1, %cst {dimension_numbers = #tpu.dot_dimension_numbers<[1], [0], [0], [1], [0, 0, 1, 1], [], []>} : vector<32x256xbf16>, vector<256x128xbf16>, vector<32x128xf32> -> vector<32x128xf32>
    %c0_3 = arith.constant 0 : index
    %c0_4 = arith.constant 0 : index
    %3 = vector.load %arg3[%c0_3, %c0_4] : memref<1x128xf32, #tpu.memory_space<vmem>>, vector<1x128xf32>
    %4 = vector.broadcast %3 : vector<1x128xf32> to vector<32x128xf32>
    %5 = arith.addf %2, %4 : vector<32x128xf32>
    %cst_5 = arith.constant 0.000000e+00 : f32
    %6 = vector.broadcast %cst_5 : f32 to vector<32x128xf32>
    %7 = arith.cmpf oge, %5, %6 : vector<32x128xf32>
    %cst_6 = arith.constant 2.000000e-01 : f32
    %8 = vector.broadcast %cst_6 : f32 to vector<32x128xf32>
    %9 = arith.mulf %8, %5 : vector<32x128xf32>
    %10 = arith.select %7, %5, %9 : vector<32x128xi1>, vector<32x128xf32>
    %c0_7 = arith.constant 0 : index
    %c0_8 = arith.constant 0 : index
    %11 = vector.load %arg4[%c0_7, %c0_8] : memref<32x128xf32, #tpu.memory_space<vmem>>, vector<32x128xf32>
    tpu.vector_store %arg4[%c0_7, %c0_8], %10 {strides = array<i32>} : memref<32x128xf32, #tpu.memory_space<vmem>>, vector<32x128xf32>,
    return
  }
  func.func @transform_0(%arg0: i32) -> (i32, i32) {
    %c0_i32 = arith.constant 0 : i32
    %c0_i32_0 = arith.constant 0 : i32
    return %arg0, %c0_i32 : i32, i32
  }
  func.func @transform_1(%arg0: i32) -> (i32, i32) {
    %c0_i32 = arith.constant 0 : i32
    %c0_i32_0 = arith.constant 0 : i32
    %c0_i32_1 = arith.constant 0 : i32
    return %c0_i32, %c0_i32_0 : i32, i32
  }
  func.func @transform_2(%arg0: i32) -> (i32, i32) {
    %c0_i32 = arith.constant 0 : i32
    %c0_i32_0 = arith.constant 0 : i32
    %c0_i32_1 = arith.constant 0 : i32
    return %c0_i32, %c0_i32_0 : i32, i32
  }
  func.func @transform_3(%arg0: i32) -> (i32, i32) {
    %c0_i32 = arith.constant 0 : i32
    %c0_i32_0 = arith.constant 0 : i32
    return %arg0, %c0_i32 : i32, i32
  }
}

module attributes {stable_mosaic.version = 11 : i64} {
  func.func @_mm_kernel(%arg0: i32, %arg1: memref<32x640xbf16, #tpu.memory_space<vmem>>, %arg2: memref<640x128xbf16, #tpu.memory_space<vmem>>, %arg3: memref<1x128xf32, #tpu.memory_space<vmem>>, %arg4: memref<32x128xf32, #tpu.memory_space<vmem>>) attributes {dimension_semantics = [#tpu.dimension_semantics<parallel>], iteration_bounds = array<i64: 1>, scalar_prefetch = 0 : i64, scratch_operands = 0 : i64, tpu.core_type = #tpu.core_type<tc>, window_params = [{transform_indices = @transform_0, window_bounds = array<i64: 32, 640>}, {pipeline_mode = #tpu.pipeline_mode<synchronous>, transform_indices = @transform_1, window_bounds = array<i64: 640, 128>}, {pipeline_mode = #tpu.pipeline_mode<synchronous>, transform_indices = @transform_2, window_bounds = array<i64: 1, 128>}, {transform_indices = @transform_3, window_bounds = array<i64: 32, 128>}]} {
    %c0 = arith.constant 0 : index
    %c0_0 = arith.constant 0 : index
    %0 = vector.load %arg1[%c0, %c0_0] : memref<32x640xbf16, #tpu.memory_space<vmem>>, vector<32x640xbf16>
    %c0_1 = arith.constant 0 : index
    %c0_2 = arith.constant 0 : index
    %1 = vector.load %arg2[%c0_1, %c0_2] : memref<640x128xbf16, #tpu.memory_space<vmem>>, vector<640x128xbf16>
    %cst = arith.constant dense<0.000000e+00> : vector<32x128xf32>
    %2 = tpu.matmul %0, %1, %cst {dimension_numbers = #tpu.dot_dimension_numbers<[1], [0], [0], [1], [0, 0, 1, 1], [], []>} : vector<32x640xbf16>, vector<640x128xbf16>, vector<32x128xf32> -> vector<32x128xf32>
    %c0_3 = arith.constant 0 : index
    %c0_4 = arith.constant 0 : index
    %3 = vector.load %arg3[%c0_3, %c0_4] : memref<1x128xf32, #tpu.memory_space<vmem>>, vector<1x128xf32>
    %4 = vector.broadcast %3 : vector<1x128xf32> to vector<32x128xf32>
    %5 = arith.addf %2, %4 : vector<32x128xf32>
    %c0_5 = arith.constant 0 : index
    %c0_6 = arith.constant 0 : index
    %6 = vector.load %arg4[%c0_5, %c0_6] : memref<32x128xf32, #tpu.memory_space<vmem>>, vector<32x128xf32>
    tpu.vector_store %arg4[%c0_5, %c0_6], %5 {strides = array<i32>} : memref<32x128xf32, #tpu.memory_space<vmem>>, vector<32x128xf32>,
    return
  }
  func.func @transform_0(%arg0: i32) -> (i32, i32) {
    %c0_i32 = arith.constant 0 : i32
    %c0_i32_0 = arith.constant 0 : i32
    return %arg0, %c0_i32 : i32, i32
  }
  func.func @transform_1(%arg0: i32) -> (i32, i32) {
    %c0_i32 = arith.constant 0 : i32
    %c0_i32_0 = arith.constant 0 : i32
    %c0_i32_1 = arith.constant 0 : i32
    return %c0_i32, %c0_i32_0 : i32, i32
  }
  func.func @transform_2(%arg0: i32) -> (i32, i32) {
    %c0_i32 = arith.constant 0 : i32
    %c0_i32_0 = arith.constant 0 : i32
    %c0_i32_1 = arith.constant 0 : i32
    return %c0_i32, %c0_i32_0 : i32, i32
  }
  func.func @transform_3(%arg0: i32) -> (i32, i32) {
    %c0_i32 = arith.constant 0 : i32
    %c0_i32_0 = arith.constant 0 : i32
    return %arg0, %c0_i32 : i32, i32
  }
}

module attributes {stable_mosaic.version = 11 : i64} {
  func.func @_mm_res_kernel(%arg0: i32, %arg1: memref<32x128xbf16, #tpu.memory_space<vmem>>, %arg2: memref<128x128xbf16, #tpu.memory_space<vmem>>, %arg3: memref<1x128xf32, #tpu.memory_space<vmem>>, %arg4: memref<32x128xf32, #tpu.memory_space<vmem>>, %arg5: memref<32x128xf32, #tpu.memory_space<vmem>>) attributes {dimension_semantics = [#tpu.dimension_semantics<parallel>], iteration_bounds = array<i64: 1>, scalar_prefetch = 0 : i64, scratch_operands = 0 : i64, tpu.core_type = #tpu.core_type<tc>, window_params = [{transform_indices = @transform_0, window_bounds = array<i64: 32, 128>}, {pipeline_mode = #tpu.pipeline_mode<synchronous>, transform_indices = @transform_1, window_bounds = array<i64: 128, 128>}, {pipeline_mode = #tpu.pipeline_mode<synchronous>, transform_indices = @transform_2, window_bounds = array<i64: 1, 128>}, {transform_indices = @transform_3, window_bounds = array<i64: 32, 128>}, {transform_indices = @transform_4, window_bounds = array<i64: 32, 128>}]} {
    %c0 = arith.constant 0 : index
    %c0_0 = arith.constant 0 : index
    %0 = vector.load %arg1[%c0, %c0_0] : memref<32x128xbf16, #tpu.memory_space<vmem>>, vector<32x128xbf16>
    %c0_1 = arith.constant 0 : index
    %c0_2 = arith.constant 0 : index
    %1 = vector.load %arg2[%c0_1, %c0_2] : memref<128x128xbf16, #tpu.memory_space<vmem>>, vector<128x128xbf16>
    %cst = arith.constant dense<0.000000e+00> : vector<32x128xf32>
    %2 = tpu.matmul %0, %1, %cst {dimension_numbers = #tpu.dot_dimension_numbers<[1], [0], [0], [1], [0, 0, 1, 1], [], []>} : vector<32x128xbf16>, vector<128x128xbf16>, vector<32x128xf32> -> vector<32x128xf32>
    %c0_3 = arith.constant 0 : index
    %c0_4 = arith.constant 0 : index
    %3 = vector.load %arg3[%c0_3, %c0_4] : memref<1x128xf32, #tpu.memory_space<vmem>>, vector<1x128xf32>
    %4 = vector.broadcast %3 : vector<1x128xf32> to vector<32x128xf32>
    %5 = arith.addf %2, %4 : vector<32x128xf32>
    %c0_5 = arith.constant 0 : index
    %c0_6 = arith.constant 0 : index
    %6 = vector.load %arg4[%c0_5, %c0_6] : memref<32x128xf32, #tpu.memory_space<vmem>>, vector<32x128xf32>
    %7 = arith.addf %5, %6 : vector<32x128xf32>
    %c0_7 = arith.constant 0 : index
    %c0_8 = arith.constant 0 : index
    %8 = vector.load %arg5[%c0_7, %c0_8] : memref<32x128xf32, #tpu.memory_space<vmem>>, vector<32x128xf32>
    tpu.vector_store %arg5[%c0_7, %c0_8], %7 {strides = array<i32>} : memref<32x128xf32, #tpu.memory_space<vmem>>, vector<32x128xf32>,
    return
  }
  func.func @transform_0(%arg0: i32) -> (i32, i32) {
    %c0_i32 = arith.constant 0 : i32
    %c0_i32_0 = arith.constant 0 : i32
    return %arg0, %c0_i32 : i32, i32
  }
  func.func @transform_1(%arg0: i32) -> (i32, i32) {
    %c0_i32 = arith.constant 0 : i32
    %c0_i32_0 = arith.constant 0 : i32
    %c0_i32_1 = arith.constant 0 : i32
    return %c0_i32, %c0_i32_0 : i32, i32
  }
  func.func @transform_2(%arg0: i32) -> (i32, i32) {
    %c0_i32 = arith.constant 0 : i32
    %c0_i32_0 = arith.constant 0 : i32
    %c0_i32_1 = arith.constant 0 : i32
    return %c0_i32, %c0_i32_0 : i32, i32
  }
  func.func @transform_3(%arg0: i32) -> (i32, i32) {
    %c0_i32 = arith.constant 0 : i32
    %c0_i32_0 = arith.constant 0 : i32
    return %arg0, %c0_i32 : i32, i32
  }
  func.func @transform_4(%arg0: i32) -> (i32, i32) {
    %c0_i32 = arith.constant 0 : i32
    %c0_i32_0 = arith.constant 0 : i32
    return %arg0, %c0_i32 : i32, i32
  }
}

module attributes {stable_mosaic.version = 11 : i64} {
  func.func @_mm_kernel(%arg0: i32, %arg1: memref<128x384xbf16, #tpu.memory_space<vmem>>, %arg2: memref<384x128xbf16, #tpu.memory_space<vmem>>, %arg3: memref<1x128xf32, #tpu.memory_space<vmem>>, %arg4: memref<128x128xf32, #tpu.memory_space<vmem>>) attributes {dimension_semantics = [#tpu.dimension_semantics<parallel>], iteration_bounds = array<i64: 1>, scalar_prefetch = 0 : i64, scratch_operands = 0 : i64, tpu.core_type = #tpu.core_type<tc>, window_params = [{transform_indices = @transform_0, window_bounds = array<i64: 128, 384>}, {pipeline_mode = #tpu.pipeline_mode<synchronous>, transform_indices = @transform_1, window_bounds = array<i64: 384, 128>}, {pipeline_mode = #tpu.pipeline_mode<synchronous>, transform_indices = @transform_2, window_bounds = array<i64: 1, 128>}, {transform_indices = @transform_3, window_bounds = array<i64: 128, 128>}]} {
    %c0 = arith.constant 0 : index
    %c0_0 = arith.constant 0 : index
    %0 = vector.load %arg1[%c0, %c0_0] : memref<128x384xbf16, #tpu.memory_space<vmem>>, vector<128x384xbf16>
    %c0_1 = arith.constant 0 : index
    %c0_2 = arith.constant 0 : index
    %1 = vector.load %arg2[%c0_1, %c0_2] : memref<384x128xbf16, #tpu.memory_space<vmem>>, vector<384x128xbf16>
    %cst = arith.constant dense<0.000000e+00> : vector<128x128xf32>
    %2 = tpu.matmul %0, %1, %cst {dimension_numbers = #tpu.dot_dimension_numbers<[1], [0], [0], [1], [0, 0, 1, 1], [], []>} : vector<128x384xbf16>, vector<384x128xbf16>, vector<128x128xf32> -> vector<128x128xf32>
    %c0_3 = arith.constant 0 : index
    %c0_4 = arith.constant 0 : index
    %3 = vector.load %arg3[%c0_3, %c0_4] : memref<1x128xf32, #tpu.memory_space<vmem>>, vector<1x128xf32>
    %4 = vector.broadcast %3 : vector<1x128xf32> to vector<128x128xf32>
    %5 = arith.addf %2, %4 : vector<128x128xf32>
    %c0_5 = arith.constant 0 : index
    %c0_6 = arith.constant 0 : index
    %6 = vector.load %arg4[%c0_5, %c0_6] : memref<128x128xf32, #tpu.memory_space<vmem>>, vector<128x128xf32>
    tpu.vector_store %arg4[%c0_5, %c0_6], %5 {strides = array<i32>} : memref<128x128xf32, #tpu.memory_space<vmem>>, vector<128x128xf32>,
    return
  }
  func.func @transform_0(%arg0: i32) -> (i32, i32) {
    %c0_i32 = arith.constant 0 : i32
    %c0_i32_0 = arith.constant 0 : i32
    return %arg0, %c0_i32 : i32, i32
  }
  func.func @transform_1(%arg0: i32) -> (i32, i32) {
    %c0_i32 = arith.constant 0 : i32
    %c0_i32_0 = arith.constant 0 : i32
    %c0_i32_1 = arith.constant 0 : i32
    return %c0_i32, %c0_i32_0 : i32, i32
  }
  func.func @transform_2(%arg0: i32) -> (i32, i32) {
    %c0_i32 = arith.constant 0 : i32
    %c0_i32_0 = arith.constant 0 : i32
    %c0_i32_1 = arith.constant 0 : i32
    return %c0_i32, %c0_i32_0 : i32, i32
  }
  func.func @transform_3(%arg0: i32) -> (i32, i32) {
    %c0_i32 = arith.constant 0 : i32
    %c0_i32_0 = arith.constant 0 : i32
    return %arg0, %c0_i32 : i32, i32
  }
}

module attributes {stable_mosaic.version = 11 : i64} {
  func.func @_mm_kernel(%arg0: i32, %arg1: memref<32x384xbf16, #tpu.memory_space<vmem>>, %arg2: memref<384x128xbf16, #tpu.memory_space<vmem>>, %arg3: memref<1x128xf32, #tpu.memory_space<vmem>>, %arg4: memref<32x128xf32, #tpu.memory_space<vmem>>) attributes {dimension_semantics = [#tpu.dimension_semantics<parallel>], iteration_bounds = array<i64: 1>, scalar_prefetch = 0 : i64, scratch_operands = 0 : i64, tpu.core_type = #tpu.core_type<tc>, window_params = [{transform_indices = @transform_0, window_bounds = array<i64: 32, 384>}, {pipeline_mode = #tpu.pipeline_mode<synchronous>, transform_indices = @transform_1, window_bounds = array<i64: 384, 128>}, {pipeline_mode = #tpu.pipeline_mode<synchronous>, transform_indices = @transform_2, window_bounds = array<i64: 1, 128>}, {transform_indices = @transform_3, window_bounds = array<i64: 32, 128>}]} {
    %c0 = arith.constant 0 : index
    %c0_0 = arith.constant 0 : index
    %0 = vector.load %arg1[%c0, %c0_0] : memref<32x384xbf16, #tpu.memory_space<vmem>>, vector<32x384xbf16>
    %c0_1 = arith.constant 0 : index
    %c0_2 = arith.constant 0 : index
    %1 = vector.load %arg2[%c0_1, %c0_2] : memref<384x128xbf16, #tpu.memory_space<vmem>>, vector<384x128xbf16>
    %cst = arith.constant dense<0.000000e+00> : vector<32x128xf32>
    %2 = tpu.matmul %0, %1, %cst {dimension_numbers = #tpu.dot_dimension_numbers<[1], [0], [0], [1], [0, 0, 1, 1], [], []>} : vector<32x384xbf16>, vector<384x128xbf16>, vector<32x128xf32> -> vector<32x128xf32>
    %c0_3 = arith.constant 0 : index
    %c0_4 = arith.constant 0 : index
    %3 = vector.load %arg3[%c0_3, %c0_4] : memref<1x128xf32, #tpu.memory_space<vmem>>, vector<1x128xf32>
    %4 = vector.broadcast %3 : vector<1x128xf32> to vector<32x128xf32>
    %5 = arith.addf %2, %4 : vector<32x128xf32>
    %c0_5 = arith.constant 0 : index
    %c0_6 = arith.constant 0 : index
    %6 = vector.load %arg4[%c0_5, %c0_6] : memref<32x128xf32, #tpu.memory_space<vmem>>, vector<32x128xf32>
    tpu.vector_store %arg4[%c0_5, %c0_6], %5 {strides = array<i32>} : memref<32x128xf32, #tpu.memory_space<vmem>>, vector<32x128xf32>,
    return
  }
  func.func @transform_0(%arg0: i32) -> (i32, i32) {
    %c0_i32 = arith.constant 0 : i32
    %c0_i32_0 = arith.constant 0 : i32
    return %arg0, %c0_i32 : i32, i32
  }
  func.func @transform_1(%arg0: i32) -> (i32, i32) {
    %c0_i32 = arith.constant 0 : i32
    %c0_i32_0 = arith.constant 0 : i32
    %c0_i32_1 = arith.constant 0 : i32
    return %c0_i32, %c0_i32_0 : i32, i32
  }
  func.func @transform_2(%arg0: i32) -> (i32, i32) {
    %c0_i32 = arith.constant 0 : i32
    %c0_i32_0 = arith.constant 0 : i32
    %c0_i32_1 = arith.constant 0 : i32
    return %c0_i32, %c0_i32_0 : i32, i32
  }
  func.func @transform_3(%arg0: i32) -> (i32, i32) {
    %c0_i32 = arith.constant 0 : i32
    %c0_i32_0 = arith.constant 0 : i32
    return %arg0, %c0_i32 : i32, i32
  }
}

module attributes {stable_mosaic.version = 11 : i64} {
  func.func @_mm_kernel(%arg0: i32, %arg1: memref<128x256xbf16, #tpu.memory_space<vmem>>, %arg2: memref<256x128xbf16, #tpu.memory_space<vmem>>, %arg3: memref<1x128xf32, #tpu.memory_space<vmem>>, %arg4: memref<128x128xf32, #tpu.memory_space<vmem>>) attributes {dimension_semantics = [#tpu.dimension_semantics<parallel>], iteration_bounds = array<i64: 1>, scalar_prefetch = 0 : i64, scratch_operands = 0 : i64, tpu.core_type = #tpu.core_type<tc>, window_params = [{transform_indices = @transform_0, window_bounds = array<i64: 128, 256>}, {pipeline_mode = #tpu.pipeline_mode<synchronous>, transform_indices = @transform_1, window_bounds = array<i64: 256, 128>}, {pipeline_mode = #tpu.pipeline_mode<synchronous>, transform_indices = @transform_2, window_bounds = array<i64: 1, 128>}, {transform_indices = @transform_3, window_bounds = array<i64: 128, 128>}]} {
    %c0 = arith.constant 0 : index
    %c0_0 = arith.constant 0 : index
    %0 = vector.load %arg1[%c0, %c0_0] : memref<128x256xbf16, #tpu.memory_space<vmem>>, vector<128x256xbf16>
    %c0_1 = arith.constant 0 : index
    %c0_2 = arith.constant 0 : index
    %1 = vector.load %arg2[%c0_1, %c0_2] : memref<256x128xbf16, #tpu.memory_space<vmem>>, vector<256x128xbf16>
    %cst = arith.constant dense<0.000000e+00> : vector<128x128xf32>
    %2 = tpu.matmul %0, %1, %cst {dimension_numbers = #tpu.dot_dimension_numbers<[1], [0], [0], [1], [0, 0, 1, 1], [], []>} : vector<128x256xbf16>, vector<256x128xbf16>, vector<128x128xf32> -> vector<128x128xf32>
    %c0_3 = arith.constant 0 : index
    %c0_4 = arith.constant 0 : index
    %3 = vector.load %arg3[%c0_3, %c0_4] : memref<1x128xf32, #tpu.memory_space<vmem>>, vector<1x128xf32>
    %4 = vector.broadcast %3 : vector<1x128xf32> to vector<128x128xf32>
    %5 = arith.addf %2, %4 : vector<128x128xf32>
    %c0_5 = arith.constant 0 : index
    %c0_6 = arith.constant 0 : index
    %6 = vector.load %arg4[%c0_5, %c0_6] : memref<128x128xf32, #tpu.memory_space<vmem>>, vector<128x128xf32>
    tpu.vector_store %arg4[%c0_5, %c0_6], %5 {strides = array<i32>} : memref<128x128xf32, #tpu.memory_space<vmem>>, vector<128x128xf32>,
    return
  }
  func.func @transform_0(%arg0: i32) -> (i32, i32) {
    %c0_i32 = arith.constant 0 : i32
    %c0_i32_0 = arith.constant 0 : i32
    return %arg0, %c0_i32 : i32, i32
  }
  func.func @transform_1(%arg0: i32) -> (i32, i32) {
    %c0_i32 = arith.constant 0 : i32
    %c0_i32_0 = arith.constant 0 : i32
    %c0_i32_1 = arith.constant 0 : i32
    return %c0_i32, %c0_i32_0 : i32, i32
  }
  func.func @transform_2(%arg0: i32) -> (i32, i32) {
    %c0_i32 = arith.constant 0 : i32
    %c0_i32_0 = arith.constant 0 : i32
    %c0_i32_1 = arith.constant 0 : i32
    return %c0_i32, %c0_i32_0 : i32, i32
  }
  func.func @transform_3(%arg0: i32) -> (i32, i32) {
    %c0_i32 = arith.constant 0 : i32
    %c0_i32_0 = arith.constant 0 : i32
    return %arg0, %c0_i32 : i32, i32
  }
}

</mosaic_0001>

<bundles_post_ra>
// kernel: _lambda_.40
= control target key start
LH: loop header
LB: loop body
LE: loop exit
PB: predicated region body
PF: predicated region fallthrough
CT: control target
= control target key end

     0   :  { %s807_s12 = smov 0   ;;  %s941_s0 = inlined_call_operand.vmem [shape: bf16[512,128], index: 0, kind: input, shape index: {}]   ;;  %s942_s1 = inlined_call_operand.vmem [shape: bf16[128,128], index: 1, kind: input, shape index: {}]   ;;  %s943_s2 = inlined_call_operand.vmem [shape: f32[1,128], index: 2, kind: input, shape index: {}]   ;;  %s944_s3 = inlined_call_operand.vmem [shape: f32[512,128], index: 3, kind: output, shape index: {}]  }
   0x1 LB: > { %s623_s13 = sadd.s32 4294967295, %s785_s12   ;;  %p627_p0 = scmp.ge.s32.totalorder %s785_s12, 1  ;;  %s785_s12 = sphi %s807_s12, %s13_s12  }
   0x2   : > { %p138_p1 = scmp.lt.s32.totalorder %s785_s12, 3 }
   0x4   : > { %p139_p2 = pnand %p627_p0, %p138_p1 }
   0x5   : > { %v755_v0 = vld [vmem:[%s942_s1] sm:$0xff] (!%p139_p2)   ;;  %s628_s16 = sshll.u32 (!%p139_p2), %s623_s13, 5  ;;  %v756_v1 = vld [vmem:[%s942_s1 + $0x8] sm:$0xff] (!%p139_p2)   ;;  %v757_v2 = vld [vmem:[%s942_s1 + $0x10] sm:$0xff] (!%p139_p2)  }
   0x6   : > { %142 = sbr.rel (%p139_p2) target bundleno = 280 (0x118), region = 32  ;;  %p163_p3 = scmp.lt.s32.totalorder (!%p139_p2), %s628_s16, 63  ;;  %683 = vmatprep.subr.bf16.mxu0 (!%p139_p2), %v755_v0  ;;  %731 = vmatprep.subr.bf16.mxu1 (!%p139_p2), %v755_v0  ;;  %v758_v3 = vld [vmem:[%s942_s1 + $0x18] sm:$0xff] (!%p139_p2)   ;;  %v759_v6 = vld [vmem:[%s942_s1 + $0x20] sm:$0xff] (!%p139_p2)   ;;  %v760_v7 = vld [vmem:[%s942_s1 + $0x28] sm:$0xff] (!%p139_p2)  }
   0x7   : > { %684 = vmatpush3.bf16.msra.mxu0 (!%p139_p2), %v755_v0  ;;  %739 = vmatpush3.bf16.msra.mxu1 (!%p139_p2), %v755_v0  ;;  %v761_v8 = vld [vmem:[%s942_s1 + $0x30] sm:$0xff] (!%p139_p2)   ;;  %v762_v9 = vld [vmem:[%s942_s1 + $0x38] sm:$0xff] (!%p139_p2)   ;;  %v867_v24 = vld [vmem:[%s943_s2] ss:$0 sm:$0xff] (!%p139_p2) }
   0x8   : > { %685 = vmatprep.subr.bf16.mxu0 (!%p139_p2), %v756_v1  ;;  %732 = vmatprep.subr.bf16.mxu1 (!%p139_p2), %v756_v1 }
   0xb   : > { %686 = vmatpush3.bf16.msra.mxu0 (!%p139_p2), %v756_v1  ;;  %740 = vmatpush3.bf16.msra.mxu1 (!%p139_p2), %v756_v1 }
   0xc   : > { %687 = vmatprep.subr.bf16.mxu0 (!%p139_p2), %v757_v2  ;;  %733 = vmatprep.subr.bf16.mxu1 (!%p139_p2), %v757_v2 }
   0xd   : > { %s946_s16 = smov (!%p163_p3, %s628_s16), 63 }
   0xe   : > { %s629_s21 = sshll.u32 %s946_s16, 2  ;;  %s631_s8 = sshll.u32 %s946_s16, 3 }
   0xf   : > { %s830_s24 = scalar_lea.vmem %s941_s0, %s629_s21  ;;  %688 = vmatpush3.bf16.msra.mxu0 %v757_v2  ;;  %741 = vmatpush3.bf16.msra.mxu1 %v757_v2  ;;  %s872_s14 = scalar_lea.vmem %s944_s3, %s631_s8 }
  0x10   : > { %v763_v4 = vld [vmem:[%s830_s24] sm:$0xff]   ;;  %689 = vmatprep.subr.bf16.mxu0 %v758_v3  ;;  %734 = vmatprep.subr.bf16.mxu1 %v758_v3  ;;  %v765_v10 = vld [vmem:[%s830_s24 + $0x8] sm:$0xff]   ;;  %v767_v12 = vld [vmem:[%s830_s24 + $0x10] sm:$0xff]  }
  0x11   : > { %v764_v5 = vld [vmem:[%s830_s24 + $0x40] sm:$0xff]   ;;  %699 = vmatprep.mubr.bf16.mxu0 %v763_v4  ;;  %v766_v11 = vld [vmem:[%s830_s24 + $0x48] sm:$0xff]   ;;  %v768_v13 = vld [vmem:[%s830_s24 + $0x50] sm:$0xff]  }
  0x12   : > { %715 = vmatprep.mubr.bf16.mxu1 %v764_v5  ;;  %v769_v14 = vld [vmem:[%s830_s24 + $0x18] sm:$0xff]   ;;  %v771_v16 = vld [vmem:[%s830_s24 + $0x20] sm:$0xff]   ;;  %v773_v18 = vld [vmem:[%s830_s24 + $0x28] sm:$0xff]  }
  0x13   : > { %690 = vmatpush3.bf16.msra.mxu0 %v758_v3  ;;  %742 = vmatpush3.bf16.msra.mxu1 %v758_v3  ;;  %v770_v15 = vld [vmem:[%s830_s24 + $0x58] sm:$0xff]   ;;  %v772_v17 = vld [vmem:[%s830_s24 + $0x60] sm:$0xff]   ;;  %v774_v19 = vld [vmem:[%s830_s24 + $0x68] sm:$0xff]  }
  0x14   : > { %691 = vmatprep.subr.bf16.mxu0 %v759_v6  ;;  %735 = vmatprep.subr.bf16.mxu1 %v759_v6  ;;  %v775_v20 = vld [vmem:[%s830_s24 + $0x30] sm:$0xff]   ;;  %v777_v22 = vld [vmem:[%s830_s24 + $0x38] sm:$0xff]  }
  0x15   : > { %v776_v21 = vld [vmem:[%s830_s24 + $0x70] sm:$0xff]   ;;  %v778_v23 = vld [vmem:[%s830_s24 + $0x78] sm:$0xff]  }
  0x17   : > { %692 = vmatpush3.bf16.msra.mxu0 %v759_v6  ;;  %743 = vmatpush3.bf16.msra.mxu1 %v759_v6 }
  0x18   : > { %693 = vmatprep.subr.bf16.mxu0 %v760_v7  ;;  %736 = vmatprep.subr.bf16.mxu1 %v760_v7 }
  0x1b   : > { %694 = vmatpush3.bf16.msra.mxu0 %v760_v7  ;;  %744 = vmatpush3.bf16.msra.mxu1 %v760_v7 }
  0x1c   : > { %695 = vmatprep.subr.bf16.mxu0 %v761_v8  ;;  %737 = vmatprep.subr.bf16.mxu1 %v761_v8 }
  0x1f   : > { %696 = vmatpush3.bf16.msra.mxu0 %v761_v8  ;;  %745 = vmatpush3.bf16.msra.mxu1 %v761_v8 }
  0x20   : > { %697 = vmatprep.subr.bf16.mxu0 %v762_v9  ;;  %738 = vmatprep.subr.bf16.mxu1 %v762_v9 }
  0x23   : > { %698 = vmatpush3.bf16.msra.mxu0 %v762_v9  ;;  %746 = vmatpush3.bf16.msra.mxu1 %v762_v9 }
  0x26   : > { %700 = vmatmul.mubr.bf16.vlgmr.msra.gmra.mrb[0].mxu0 %v765_v10  ;;  %716 = vmatmul.mubr.bf16.vlgmr.msra.gmra.mrb[0].mxu1 %v766_v11 }
  0x27   : > { %703 = vmatprep.mubr.bf16.mxu0 %v767_v12  ;;  %719 = vmatprep.mubr.bf16.mxu1 %v768_v13 }
  0x2e   : > { %704 = vmatmul.mubr.bf16.gmra.mrb[4].mxu0 %v769_v14  ;;  %720 = vmatmul.mubr.bf16.gmra.mrb[4].mxu1 %v770_v15 }
  0x2f   : > { %707 = vmatprep.mubr.bf16.mxu0 %v771_v16  ;;  %723 = vmatprep.mubr.bf16.mxu1 %v772_v17 }
  0x36   : > { %708 = vmatmul.mubr.bf16.gmra.mrb[8].mxu0 %v773_v18  ;;  %724 = vmatmul.mubr.bf16.gmra.mrb[8].mxu1 %v774_v19 }
  0x37   : > { %711 = vmatprep.mubr.bf16.mxu0 %v775_v20  ;;  %727 = vmatprep.mubr.bf16.mxu1 %v776_v21 }
  0x3e   : > { %712 = vmatmul.mubr.bf16.gmra.mrb[12].mxu0 %v777_v22  ;;  %728 = vmatmul.mubr.bf16.gmra.mrb[12].mxu1 %v778_v23 }
  0xf9   : > { %v701_v25 = vpop.f32.mrb[0].mxu0  ;;  %v717_v26 = vpop.f32.mrb[0].mxu1 }
  0xfa   : > { %v417_v27 = vadd.f32 %v701_v25, %v867_v24  ;;  %v481_v28 = vadd.f32 %v717_v26, %v867_v24  ;;  %v408_v29 = vpop.f32.mrb[1].mxu0  ;;  %v472_v30 = vpop.f32.mrb[1].mxu1 }
  0xfb   : > { %v409_v31 = vadd.f32 %v867_v24, %v408_v29  ;;  %v473_v32 = vadd.f32 %v867_v24, %v472_v30  ;;  %v702_v33 = vpop.f32.mrb[2].mxu0  ;;  %v718_v34 = vpop.f32.mrb[2].mxu1 }
  0xfc   : > { %537 = vst [vmem:[%s872_s14 + $0x10] sm:$0xff] %v417_v27  ;;  %553 = vst [vmem:[%s872_s14 + $0x90] sm:$0xff] %v481_v28  ;;  %v420_v35 = vadd.f32 %v702_v33, %v867_v24  ;;  %v484_v36 = vadd.f32 %v718_v34, %v867_v24  ;;  %v411_v37 = vpop.f32.mrb[3].mxu0  ;;  %v475_v38 = vpop.f32.mrb[3].mxu1 }
  0xfd   : > { %535 = vst [vmem:[%s872_s14] sm:$0xff] %v409_v31  ;;  %551 = vst [vmem:[%s872_s14 + $0x80] sm:$0xff] %v473_v32  ;;  %v412_v39 = vadd.f32 %v867_v24, %v411_v37  ;;  %v476_v40 = vadd.f32 %v867_v24, %v475_v38 }
  0xfe   : > { %538 = vst [vmem:[%s872_s14 + $0x18] sm:$0xff] %v420_v35  ;;  %554 = vst [vmem:[%s872_s14 + $0x98] sm:$0xff] %v484_v36 }
  0xff   : > { %536 = vst [vmem:[%s872_s14 + $0x8] sm:$0xff] %v412_v39  ;;  %552 = vst [vmem:[%s872_s14 + $0x88] sm:$0xff] %v476_v40 }
 0x101   : > { %v705_v41 = vpop.f32.mrb[4].mxu0  ;;  %v721_v42 = vpop.f32.mrb[4].mxu1 }
 0x102   : > { %v433_v43 = vadd.f32 %v705_v41, %v867_v24  ;;  %v497_v44 = vadd.f32 %v721_v42, %v867_v24  ;;  %v424_v45 = vpop.f32.mrb[5].mxu0  ;;  %v488_v46 = vpop.f32.mrb[5].mxu1 }
 0x103   : > { %v425_v47 = vadd.f32 %v867_v24, %v424_v45  ;;  %v489_v48 = vadd.f32 %v867_v24, %v488_v46  ;;  %v706_v49 = vpop.f32.mrb[6].mxu0  ;;  %v722_v50 = vpop.f32.mrb[6].mxu1 }
 0x104   : > { %541 = vst [vmem:[%s872_s14 + $0x30] sm:$0xff] %v433_v43  ;;  %557 = vst [vmem:[%s872_s14 + $0xb0] sm:$0xff] %v497_v44  ;;  %v436_v51 = vadd.f32 %v706_v49, %v867_v24  ;;  %v500_v52 = vadd.f32 %v722_v50, %v867_v24  ;;  %v427_v53 = vpop.f32.mrb[7].mxu0  ;;  %v491_v54 = vpop.f32.mrb[7].mxu1 }
 0x105   : > { %539 = vst [vmem:[%s872_s14 + $0x20] sm:$0xff] %v425_v47  ;;  %555 = vst [vmem:[%s872_s14 + $0xa0] sm:$0xff] %v489_v48  ;;  %v428_v55 = vadd.f32 %v867_v24, %v427_v53  ;;  %v492_v56 = vadd.f32 %v867_v24, %v491_v54 }
 0x106   : > { %542 = vst [vmem:[%s872_s14 + $0x38] sm:$0xff] %v436_v51  ;;  %558 = vst [vmem:[%s872_s14 + $0xb8] sm:$0xff] %v500_v52 }
 0x107   : > { %540 = vst [vmem:[%s872_s14 + $0x28] sm:$0xff] %v428_v55  ;;  %556 = vst [vmem:[%s872_s14 + $0xa8] sm:$0xff] %v492_v56 }
 0x109   : > { %v709_v57 = vpop.f32.mrb[8].mxu0  ;;  %v725_v58 = vpop.f32.mrb[8].mxu1 }
 0x10a   : > { %v449_v59 = vadd.f32 %v709_v57, %v867_v24  ;;  %v513_v60 = vadd.f32 %v725_v58, %v867_v24  ;;  %v440_v61 = vpop.f32.mrb[9].mxu0  ;;  %v504_v62 = vpop.f32.mrb[9].mxu1 }
 0x10b   : > { %v441_v63 = vadd.f32 %v867_v24, %v440_v61  ;;  %v505_v0 = vadd.f32 %v867_v24, %v504_v62  ;;  %v710_v1 = vpop.f32.mrb[10].mxu0  ;;  %v726_v2 = vpop.f32.mrb[10].mxu1 }
 0x10c   : > { %545 = vst [vmem:[%s872_s14 + $0x50] sm:$0xff] %v449_v59  ;;  %561 = vst [vmem:[%s872_s14 + $0xd0] sm:$0xff] %v513_v60  ;;  %v452_v3 = vadd.f32 %v710_v1, %v867_v24  ;;  %v516_v4 = vadd.f32 %v726_v2, %v867_v24  ;;  %v443_v5 = vpop.f32.mrb[11].mxu0  ;;  %v507_v6 = vpop.f32.mrb[11].mxu1 }
 0x10d   : > { %543 = vst [vmem:[%s872_s14 + $0x40] sm:$0xff] %v441_v63  ;;  %559 = vst [vmem:[%s872_s14 + $0xc0] sm:$0xff] %v505_v0  ;;  %v444_v7 = vadd.f32 %v867_v24, %v443_v5  ;;  %v508_v8 = vadd.f32 %v867_v24, %v507_v6 }
 0x10e   : > { %546 = vst [vmem:[%s872_s14 + $0x58] sm:$0xff] %v452_v3  ;;  %562 = vst [vmem:[%s872_s14 + $0xd8] sm:$0xff] %v516_v4 }
 0x10f   : > { %544 = vst [vmem:[%s872_s14 + $0x48] sm:$0xff] %v444_v7  ;;  %560 = vst [vmem:[%s872_s14 + $0xc8] sm:$0xff] %v508_v8 }
 0x111   : > { %v713_v9 = vpop.f32.mrb[12].mxu0  ;;  %v729_v10 = vpop.f32.mrb[12].mxu1 }
 0x112   : > { %v465_v11 = vadd.f32 %v713_v9, %v867_v24  ;;  %v529_v12 = vadd.f32 %v729_v10, %v867_v24  ;;  %v456_v13 = vpop.f32.mrb[13].mxu0  ;;  %v520_v14 = vpop.f32.mrb[13].mxu1 }
 0x113   : > { %v457_v15 = vadd.f32 %v867_v24, %v456_v13  ;;  %v521_v16 = vadd.f32 %v867_v24, %v520_v14  ;;  %v714_v17 = vpop.f32.mrb[14].mxu0  ;;  %v730_v18 = vpop.f32.mrb[14].mxu1 }
 0x114   : > { %549 = vst [vmem:[%s872_s14 + $0x70] sm:$0xff] %v465_v11  ;;  %565 = vst [vmem:[%s872_s14 + $0xf0] sm:$0xff] %v529_v12  ;;  %v468_v19 = vadd.f32 %v714_v17, %v867_v24  ;;  %v532_v20 = vadd.f32 %v730_v18, %v867_v24  ;;  %v459_v21 = vpop.f32.mrb[15].mxu0  ;;  %v523_v22 = vpop.f32.mrb[15].mxu1 }
 0x115   : > { %547 = vst [vmem:[%s872_s14 + $0x60] sm:$0xff] %v457_v15  ;;  %563 = vst [vmem:[%s872_s14 + $0xe0] sm:$0xff] %v521_v16  ;;  %v460_v23 = vadd.f32 %v867_v24, %v459_v21  ;;  %v524_v25 = vadd.f32 %v867_v24, %v523_v22 }
 0x116   : > { %550 = vst [vmem:[%s872_s14 + $0x78] sm:$0xff] %v468_v19  ;;  %566 = vst [vmem:[%s872_s14 + $0xf8] sm:$0xff] %v532_v20 }
 0x117   : > { %548 = vst [vmem:[%s872_s14 + $0x68] sm:$0xff] %v460_v23  ;;  %564 = vst [vmem:[%s872_s14 + $0xe8] sm:$0xff] %v524_v25 }
 0x118 PF: > { %s13_s12 = sadd.s32 1, %s785_s12  }
 0x119   : > { %p10_p4 = scmp.ge.s32.totalorder %s13_s12, 4  }
 0x11b   :  { %12 = sbr.rel (!%p10_p4) target bundleno = 1 (0x1), region = 62 }

// kernel: _lambda_.41
= control target key start
LH: loop header
LB: loop body
LE: loop exit
PB: predicated region body
PF: predicated region fallthrough
CT: control target
= control target key end

     0   :  { %s483_s1 = inlined_call_operand.vmem [shape: bf16[128,128], index: 1, kind: input, shape index: {}]   ;;  %s484_s0 = inlined_call_operand.vmem [shape: bf16[128,128], index: 0, kind: input, shape index: {}]   ;;  %s485_s2 = inlined_call_operand.vmem [shape: f32[1,128], index: 2, kind: input, shape index: {}]   ;;  %s486_s3 = inlined_call_operand.vmem [shape: f32[128,128], index: 3, kind: output, shape index: {}]  }
   0x1   :  { %v348_v0 = vld [vmem:[%s483_s1] sm:$0xff]   ;;  %v349_v1 = vld [vmem:[%s483_s1 + $0x8] sm:$0xff]   ;;  %v350_v2 = vld [vmem:[%s483_s1 + $0x10] sm:$0xff]  }
   0x2   :  { %300 = vmatprep.subr.bf16.mxu0 %v348_v0  ;;  %332 = vmatprep.subr.bf16.mxu1 %v348_v0  ;;  %v351_v3 = vld [vmem:[%s483_s1 + $0x18] sm:$0xff]   ;;  %v356_v4 = vld [vmem:[%s484_s0] sm:$0xff]   ;;  %v353_v7 = vld [vmem:[%s483_s1 + $0x28] sm:$0xff]  }
   0x3   :  { %301 = vmatpush3.bf16.msra.mxu0 %v348_v0  ;;  %340 = vmatpush3.bf16.msra.mxu1 %v348_v0  ;;  %v357_v5 = vld [vmem:[%s484_s0 + $0x20] sm:$0xff]   ;;  %v354_v8 = vld [vmem:[%s483_s1 + $0x30] sm:$0xff]   ;;  %v355_v9 = vld [vmem:[%s483_s1 + $0x38] sm:$0xff]  }
   0x4   :  { %302 = vmatprep.subr.bf16.mxu0 %v349_v1  ;;  %333 = vmatprep.subr.bf16.mxu1 %v349_v1  ;;  %v352_v6 = vld [vmem:[%s483_s1 + $0x20] sm:$0xff]   ;;  %v358_v10 = vld [vmem:[%s484_s0 + $0x8] sm:$0xff]   ;;  %v360_v12 = vld [vmem:[%s484_s0 + $0x10] sm:$0xff]  }
   0x5   :  { %316 = vmatprep.mubr.bf16.mxu0 %v356_v4  ;;  %324 = vmatprep.mubr.bf16.mxu1 %v357_v5  ;;  %v359_v11 = vld [vmem:[%s484_s0 + $0x28] sm:$0xff]   ;;  %v361_v13 = vld [vmem:[%s484_s0 + $0x30] sm:$0xff]   ;;  %v362_v14 = vld [vmem:[%s484_s0 + $0x18] sm:$0xff]  }
   0x6   :  { %v363_v15 = vld [vmem:[%s484_s0 + $0x38] sm:$0xff]   ;;  %v267_v16 = vld [vmem:[%s485_s2] ss:$0 sm:$0xff] }
   0x7   :  { %303 = vmatpush3.bf16.msra.mxu0 %v349_v1  ;;  %341 = vmatpush3.bf16.msra.mxu1 %v349_v1 }
   0x8   :  { %304 = vmatprep.subr.bf16.mxu0 %v350_v2  ;;  %334 = vmatprep.subr.bf16.mxu1 %v350_v2 }
   0xb   :  { %305 = vmatpush3.bf16.msra.mxu0 %v350_v2  ;;  %342 = vmatpush3.bf16.msra.mxu1 %v350_v2 }
   0xc   :  { %306 = vmatprep.subr.bf16.mxu0 %v351_v3  ;;  %335 = vmatprep.subr.bf16.mxu1 %v351_v3 }
   0xf   :  { %307 = vmatpush3.bf16.msra.mxu0 %v351_v3  ;;  %343 = vmatpush3.bf16.msra.mxu1 %v351_v3 }
  0x10   :  { %308 = vmatprep.subr.bf16.mxu0 %v352_v6  ;;  %336 = vmatprep.subr.bf16.mxu1 %v352_v6 }
  0x13   :  { %309 = vmatpush3.bf16.msra.mxu0 %v352_v6  ;;  %344 = vmatpush3.bf16.msra.mxu1 %v352_v6 }
  0x14   :  { %310 = vmatprep.subr.bf16.mxu0 %v353_v7  ;;  %337 = vmatprep.subr.bf16.mxu1 %v353_v7 }
  0x17   :  { %311 = vmatpush3.bf16.msra.mxu0 %v353_v7  ;;  %345 = vmatpush3.bf16.msra.mxu1 %v353_v7 }
  0x18   :  { %312 = vmatprep.subr.bf16.mxu0 %v354_v8  ;;  %338 = vmatprep.subr.bf16.mxu1 %v354_v8 }
  0x1b   :  { %313 = vmatpush3.bf16.msra.mxu0 %v354_v8  ;;  %346 = vmatpush3.bf16.msra.mxu1 %v354_v8 }
  0x1c   :  { %314 = vmatprep.subr.bf16.mxu0 %v355_v9  ;;  %339 = vmatprep.subr.bf16.mxu1 %v355_v9 }
  0x1f   :  { %315 = vmatpush3.bf16.msra.mxu0 %v355_v9  ;;  %347 = vmatpush3.bf16.msra.mxu1 %v355_v9 }
  0x22   :  { %317 = vmatmul.mubr.bf16.vlgmr.msra.gmra.mrb[0].mxu0 %v358_v10  ;;  %325 = vmatmul.mubr.bf16.vlgmr.msra.gmra.mrb[0].mxu1 %v359_v11 }
  0x23   :  { %320 = vmatprep.mubr.bf16.mxu0 %v360_v12  ;;  %328 = vmatprep.mubr.bf16.mxu1 %v361_v13 }
  0x2a   :  { %321 = vmatmul.mubr.bf16.gmra.mrb[4].mxu0 %v362_v14  ;;  %329 = vmatmul.mubr.bf16.gmra.mrb[4].mxu1 %v363_v15 }
  0xf5   :  { %v318_v17 = vpop.f32.mrb[0].mxu0  ;;  %v326_v18 = vpop.f32.mrb[0].mxu1 }
  0xf6   :  { %v193_v19 = vadd.f32 %v318_v17, %v267_v16  ;;  %v225_v20 = vadd.f32 %v326_v18, %v267_v16  ;;  %v184_v21 = vpop.f32.mrb[1].mxu0  ;;  %v216_v22 = vpop.f32.mrb[1].mxu1 }
  0xf7   :  { %v185_v23 = vadd.f32 %v267_v16, %v184_v21  ;;  %v217_v24 = vadd.f32 %v267_v16, %v216_v22  ;;  %v319_v25 = vpop.f32.mrb[2].mxu0  ;;  %v327_v26 = vpop.f32.mrb[2].mxu1 }
  0xf8   :  { %249 = vst [vmem:[%s486_s3 + $0x10] sm:$0xff] %v193_v19  ;;  %257 = vst [vmem:[%s486_s3 + $0x50] sm:$0xff] %v225_v20  ;;  %v196_v27 = vadd.f32 %v319_v25, %v267_v16  ;;  %v228_v28 = vadd.f32 %v327_v26, %v267_v16  ;;  %v187_v29 = vpop.f32.mrb[3].mxu0  ;;  %v219_v30 = vpop.f32.mrb[3].mxu1 }
  0xf9   :  { %247 = vst [vmem:[%s486_s3] sm:$0xff] %v185_v23  ;;  %255 = vst [vmem:[%s486_s3 + $0x40] sm:$0xff] %v217_v24  ;;  %v188_v31 = vadd.f32 %v267_v16, %v187_v29  ;;  %v220_v32 = vadd.f32 %v267_v16, %v219_v30 }
  0xfa   :  { %250 = vst [vmem:[%s486_s3 + $0x18] sm:$0xff] %v196_v27  ;;  %258 = vst [vmem:[%s486_s3 + $0x58] sm:$0xff] %v228_v28 }
  0xfb   :  { %248 = vst [vmem:[%s486_s3 + $0x8] sm:$0xff] %v188_v31  ;;  %256 = vst [vmem:[%s486_s3 + $0x48] sm:$0xff] %v220_v32 }
  0xfd   :  { %v322_v33 = vpop.f32.mrb[4].mxu0  ;;  %v330_v34 = vpop.f32.mrb[4].mxu1 }
  0xfe   :  { %v209_v35 = vadd.f32 %v322_v33, %v267_v16  ;;  %v241_v36 = vadd.f32 %v330_v34, %v267_v16  ;;  %v200_v37 = vpop.f32.mrb[5].mxu0  ;;  %v232_v38 = vpop.f32.mrb[5].mxu1 }
  0xff   :  { %v201_v39 = vadd.f32 %v267_v16, %v200_v37  ;;  %v233_v40 = vadd.f32 %v267_v16, %v232_v38  ;;  %v323_v41 = vpop.f32.mrb[6].mxu0  ;;  %v331_v42 = vpop.f32.mrb[6].mxu1 }
 0x100   :  { %253 = vst [vmem:[%s486_s3 + $0x30] sm:$0xff] %v209_v35  ;;  %261 = vst [vmem:[%s486_s3 + $0x70] sm:$0xff] %v241_v36  ;;  %v212_v43 = vadd.f32 %v323_v41, %v267_v16  ;;  %v244_v44 = vadd.f32 %v331_v42, %v267_v16  ;;  %v203_v45 = vpop.f32.mrb[7].mxu0  ;;  %v235_v46 = vpop.f32.mrb[7].mxu1 }
 0x101   :  { %251 = vst [vmem:[%s486_s3 + $0x20] sm:$0xff] %v201_v39  ;;  %259 = vst [vmem:[%s486_s3 + $0x60] sm:$0xff] %v233_v40  ;;  %v204_v47 = vadd.f32 %v267_v16, %v203_v45  ;;  %v236_v48 = vadd.f32 %v267_v16, %v235_v46 }
 0x102   :  { %254 = vst [vmem:[%s486_s3 + $0x38] sm:$0xff] %v212_v43  ;;  %262 = vst [vmem:[%s486_s3 + $0x78] sm:$0xff] %v244_v44 }
 0x103   :  { %252 = vst [vmem:[%s486_s3 + $0x28] sm:$0xff] %v204_v47  ;;  %260 = vst [vmem:[%s486_s3 + $0x68] sm:$0xff] %v236_v48 }

// kernel: _lambda_.43
= control target key start
LH: loop header
LB: loop body
LE: loop exit
PB: predicated region body
PF: predicated region fallthrough
CT: control target
= control target key end

     0   :  { %s589_s1 = inlined_call_operand.vmem [shape: bf16[128,128], index: 1, kind: input, shape index: {}]   ;;  %s590_s0 = inlined_call_operand.vmem [shape: bf16[128,128], index: 0, kind: input, shape index: {}]   ;;  %s591_s2 = inlined_call_operand.vmem [shape: f32[1,128], index: 2, kind: input, shape index: {}]   ;;  %s592_s3 = inlined_call_operand.vmem [shape: f32[128,128], index: 3, kind: input, shape index: {}]   ;;  %s593_s4 = inlined_call_operand.vmem [shape: f32[128,128], index: 4, kind: output, shape index: {}]  }
   0x1   :  { %v383_v0 = vld [vmem:[%s589_s1] sm:$0xff]   ;;  %v384_v1 = vld [vmem:[%s589_s1 + $0x8] sm:$0xff]   ;;  %v385_v2 = vld [vmem:[%s589_s1 + $0x10] sm:$0xff]  }
   0x2   :  { %335 = vmatprep.subr.bf16.mxu0 %v383_v0  ;;  %367 = vmatprep.subr.bf16.mxu1 %v383_v0  ;;  %v386_v3 = vld [vmem:[%s589_s1 + $0x18] sm:$0xff]   ;;  %v391_v4 = vld [vmem:[%s590_s0] sm:$0xff]   ;;  %v388_v7 = vld [vmem:[%s589_s1 + $0x28] sm:$0xff]  }
   0x3   :  { %336 = vmatpush3.bf16.msra.mxu0 %v383_v0  ;;  %375 = vmatpush3.bf16.msra.mxu1 %v383_v0  ;;  %v392_v5 = vld [vmem:[%s590_s0 + $0x20] sm:$0xff]   ;;  %v389_v8 = vld [vmem:[%s589_s1 + $0x30] sm:$0xff]   ;;  %v390_v9 = vld [vmem:[%s589_s1 + $0x38] sm:$0xff]  }
   0x4   :  { %337 = vmatprep.subr.bf16.mxu0 %v384_v1  ;;  %368 = vmatprep.subr.bf16.mxu1 %v384_v1  ;;  %v387_v6 = vld [vmem:[%s589_s1 + $0x20] sm:$0xff]   ;;  %v393_v10 = vld [vmem:[%s590_s0 + $0x8] sm:$0xff]   ;;  %v395_v12 = vld [vmem:[%s590_s0 + $0x10] sm:$0xff]  }
   0x5   :  { %351 = vmatprep.mubr.bf16.mxu0 %v391_v4  ;;  %359 = vmatprep.mubr.bf16.mxu1 %v392_v5  ;;  %v394_v11 = vld [vmem:[%s590_s0 + $0x28] sm:$0xff]   ;;  %v396_v13 = vld [vmem:[%s590_s0 + $0x30] sm:$0xff]   ;;  %v397_v14 = vld [vmem:[%s590_s0 + $0x18] sm:$0xff]  }
   0x6   :  { %v398_v15 = vld [vmem:[%s590_s0 + $0x38] sm:$0xff]   ;;  %v475_v16 = vld [vmem:[%s591_s2] ss:$0 sm:$0xff]  ;;  %v252_v18 = vld [vmem:[%s592_s3 + $0x10] sm:$0xff] }
   0x7   :  { %338 = vmatpush3.bf16.msra.mxu0 %v384_v1  ;;  %376 = vmatpush3.bf16.msra.mxu1 %v384_v1  ;;  %v260_v20 = vld [vmem:[%s592_s3 + $0x50] sm:$0xff]  ;;  %v250_v24 = vld [vmem:[%s592_s3] sm:$0xff]  ;;  %v253_v30 = vld [vmem:[%s592_s3 + $0x18] sm:$0xff] }
   0x8   :  { %339 = vmatprep.subr.bf16.mxu0 %v385_v2  ;;  %369 = vmatprep.subr.bf16.mxu1 %v385_v2  ;;  %v258_v26 = vld [vmem:[%s592_s3 + $0x40] sm:$0xff]  ;;  %v261_v32 = vld [vmem:[%s592_s3 + $0x58] sm:$0xff]  ;;  %v251_v38 = vld [vmem:[%s592_s3 + $0x8] sm:$0xff] }
   0x9   :  { %v259_v40 = vld [vmem:[%s592_s3 + $0x48] sm:$0xff]  ;;  %v256_v50 = vld [vmem:[%s592_s3 + $0x30] sm:$0xff]  ;;  %v254_v56 = vld [vmem:[%s592_s3 + $0x20] sm:$0xff] }
   0xa   :  { %v264_v52 = vld [vmem:[%s592_s3 + $0x70] sm:$0xff]  ;;  %v262_v58 = vld [vmem:[%s592_s3 + $0x60] sm:$0xff]  ;;  %v257_v62 = vld [vmem:[%s592_s3 + $0x38] sm:$0xff] }
   0xb   :  { %340 = vmatpush3.bf16.msra.mxu0 %v385_v2  ;;  %377 = vmatpush3.bf16.msra.mxu1 %v385_v2  ;;  %v265_v0 = vld [vmem:[%s592_s3 + $0x78] sm:$0xff] }
   0xc   :  { %341 = vmatprep.subr.bf16.mxu0 %v386_v3  ;;  %370 = vmatprep.subr.bf16.mxu1 %v386_v3 }
   0xf   :  { %342 = vmatpush3.bf16.msra.mxu0 %v386_v3  ;;  %378 = vmatpush3.bf16.msra.mxu1 %v386_v3 }
  0x10   :  { %343 = vmatprep.subr.bf16.mxu0 %v387_v6  ;;  %371 = vmatprep.subr.bf16.mxu1 %v387_v6 }
  0x13   :  { %344 = vmatpush3.bf16.msra.mxu0 %v387_v6  ;;  %379 = vmatpush3.bf16.msra.mxu1 %v387_v6  ;;  %v255_v6 = vld [vmem:[%s592_s3 + $0x28] sm:$0xff] }
  0x14   :  { %345 = vmatprep.subr.bf16.mxu0 %v388_v7  ;;  %372 = vmatprep.subr.bf16.mxu1 %v388_v7 }
  0x17   :  { %346 = vmatpush3.bf16.msra.mxu0 %v388_v7  ;;  %380 = vmatpush3.bf16.msra.mxu1 %v388_v7 }
  0x18   :  { %347 = vmatprep.subr.bf16.mxu0 %v389_v8  ;;  %373 = vmatprep.subr.bf16.mxu1 %v389_v8 }
  0x1b   :  { %348 = vmatpush3.bf16.msra.mxu0 %v389_v8  ;;  %381 = vmatpush3.bf16.msra.mxu1 %v389_v8  ;;  %v263_v8 = vld [vmem:[%s592_s3 + $0x68] sm:$0xff] }
  0x1c   :  { %349 = vmatprep.subr.bf16.mxu0 %v390_v9  ;;  %374 = vmatprep.subr.bf16.mxu1 %v390_v9 }
  0x1f   :  { %350 = vmatpush3.bf16.msra.mxu0 %v390_v9  ;;  %382 = vmatpush3.bf16.msra.mxu1 %v390_v9 }
  0x22   :  { %352 = vmatmul.mubr.bf16.vlgmr.msra.gmra.mrb[0].mxu0 %v393_v10  ;;  %360 = vmatmul.mubr.bf16.vlgmr.msra.gmra.mrb[0].mxu1 %v394_v11 }
  0x23   :  { %355 = vmatprep.mubr.bf16.mxu0 %v395_v12  ;;  %363 = vmatprep.mubr.bf16.mxu1 %v396_v13 }
  0x2a   :  { %356 = vmatmul.mubr.bf16.gmra.mrb[4].mxu0 %v397_v14  ;;  %364 = vmatmul.mubr.bf16.gmra.mrb[4].mxu1 %v398_v15 }
  0xf5   :  { %v353_v17 = vpop.f32.mrb[0].mxu0  ;;  %v361_v19 = vpop.f32.mrb[0].mxu1 }
  0xf6   :  { %v196_v21 = vadd.f32 %v353_v17, %v475_v16  ;;  %v228_v22 = vadd.f32 %v361_v19, %v475_v16  ;;  %v187_v23 = vpop.f32.mrb[1].mxu0  ;;  %v219_v25 = vpop.f32.mrb[1].mxu1 }
  0xf7   :  { %v188_v27 = vadd.f32 %v475_v16, %v187_v23  ;;  %v220_v28 = vadd.f32 %v475_v16, %v219_v25  ;;  %v354_v29 = vpop.f32.mrb[2].mxu0  ;;  %v362_v31 = vpop.f32.mrb[2].mxu1 }
  0xf8   :  { %v268_v33 = vadd.f32 %v252_v18, %v196_v21  ;;  %v276_v34 = vadd.f32 %v260_v20, %v228_v22  ;;  %v199_v35 = vadd.f32 %v354_v29, %v475_v16  ;;  %v231_v36 = vadd.f32 %v362_v31, %v475_v16  ;;  %v190_v37 = vpop.f32.mrb[3].mxu0  ;;  %v222_v39 = vpop.f32.mrb[3].mxu1 }
  0xf9   :  { %v266_v41 = vadd.f32 %v250_v24, %v188_v27  ;;  %v274_v42 = vadd.f32 %v258_v26, %v220_v28  ;;  %v191_v43 = vadd.f32 %v475_v16, %v190_v37  ;;  %v223_v44 = vadd.f32 %v475_v16, %v222_v39 }
  0xfa   :  { %284 = vst [vmem:[%s593_s4 + $0x10] sm:$0xff] %v268_v33  ;;  %292 = vst [vmem:[%s593_s4 + $0x50] sm:$0xff] %v276_v34  ;;  %v269_v45 = vadd.f32 %v253_v30, %v199_v35  ;;  %v277_v46 = vadd.f32 %v261_v32, %v231_v36 }
  0xfb   :  { %282 = vst [vmem:[%s593_s4] sm:$0xff] %v266_v41  ;;  %290 = vst [vmem:[%s593_s4 + $0x40] sm:$0xff] %v274_v42  ;;  %v267_v47 = vadd.f32 %v251_v38, %v191_v43  ;;  %v275_v48 = vadd.f32 %v259_v40, %v223_v44 }
  0xfc   :  { %285 = vst [vmem:[%s593_s4 + $0x18] sm:$0xff] %v269_v45  ;;  %293 = vst [vmem:[%s593_s4 + $0x58] sm:$0xff] %v277_v46 }
  0xfd   :  { %283 = vst [vmem:[%s593_s4 + $0x8] sm:$0xff] %v267_v47  ;;  %291 = vst [vmem:[%s593_s4 + $0x48] sm:$0xff] %v275_v48  ;;  %v357_v49 = vpop.f32.mrb[4].mxu0  ;;  %v365_v51 = vpop.f32.mrb[4].mxu1 }
  0xfe   :  { %v212_v53 = vadd.f32 %v357_v49, %v475_v16  ;;  %v244_v54 = vadd.f32 %v365_v51, %v475_v16  ;;  %v203_v55 = vpop.f32.mrb[5].mxu0  ;;  %v235_v57 = vpop.f32.mrb[5].mxu1 }
  0xff   :  { %v204_v59 = vadd.f32 %v475_v16, %v203_v55  ;;  %v236_v60 = vadd.f32 %v475_v16, %v235_v57  ;;  %v358_v61 = vpop.f32.mrb[6].mxu0  ;;  %v366_v63 = vpop.f32.mrb[6].mxu1 }
 0x100   :  { %v272_v1 = vadd.f32 %v256_v50, %v212_v53  ;;  %v280_v2 = vadd.f32 %v264_v52, %v244_v54  ;;  %v215_v3 = vadd.f32 %v358_v61, %v475_v16  ;;  %v247_v4 = vadd.f32 %v366_v63, %v475_v16  ;;  %v206_v5 = vpop.f32.mrb[7].mxu0  ;;  %v238_v7 = vpop.f32.mrb[7].mxu1 }
 0x101   :  { %v270_v9 = vadd.f32 %v254_v56, %v204_v59  ;;  %v278_v10 = vadd.f32 %v262_v58, %v236_v60  ;;  %v207_v11 = vadd.f32 %v475_v16, %v206_v5  ;;  %v239_v12 = vadd.f32 %v475_v16, %v238_v7 }
 0x102   :  { %288 = vst [vmem:[%s593_s4 + $0x30] sm:$0xff] %v272_v1  ;;  %296 = vst [vmem:[%s593_s4 + $0x70] sm:$0xff] %v280_v2  ;;  %v273_v13 = vadd.f32 %v257_v62, %v215_v3  ;;  %v281_v14 = vadd.f32 %v265_v0, %v247_v4 }
 0x103   :  { %286 = vst [vmem:[%s593_s4 + $0x20] sm:$0xff] %v270_v9  ;;  %294 = vst [vmem:[%s593_s4 + $0x60] sm:$0xff] %v278_v10  ;;  %v271_v15 = vadd.f32 %v255_v6, %v207_v11  ;;  %v279_v16 = vadd.f32 %v263_v8, %v239_v12 }
 0x104   :  { %289 = vst [vmem:[%s593_s4 + $0x38] sm:$0xff] %v273_v13  ;;  %297 = vst [vmem:[%s593_s4 + $0x78] sm:$0xff] %v281_v14 }
 0x105   :  { %287 = vst [vmem:[%s593_s4 + $0x28] sm:$0xff] %v271_v15  ;;  %295 = vst [vmem:[%s593_s4 + $0x68] sm:$0xff] %v279_v16 }

// kernel: _lambda_.42
= control target key start
LH: loop header
LB: loop body
LE: loop exit
PB: predicated region body
PF: predicated region fallthrough
CT: control target
= control target key end

     0   :  { %s549_s1 = inlined_call_operand.vmem [shape: bf16[128,128], index: 1, kind: input, shape index: {}]   ;;  %s550_s0 = inlined_call_operand.vmem [shape: bf16[128,128], index: 0, kind: input, shape index: {}]   ;;  %s551_s2 = inlined_call_operand.vmem [shape: f32[1,128], index: 2, kind: input, shape index: {}]   ;;  %s552_s3 = inlined_call_operand.vmem [shape: f32[128,128], index: 3, kind: output, shape index: {}]  }
   0x1   :  { %v396_v0 = vld [vmem:[%s549_s1] sm:$0xff]   ;;  %v397_v1 = vld [vmem:[%s549_s1 + $0x8] sm:$0xff]   ;;  %v398_v2 = vld [vmem:[%s549_s1 + $0x10] sm:$0xff]  }
   0x2   :  { %348 = vmatprep.subr.bf16.mxu0 %v396_v0  ;;  %380 = vmatprep.subr.bf16.mxu1 %v396_v0  ;;  %v399_v3 = vld [vmem:[%s549_s1 + $0x18] sm:$0xff]   ;;  %v404_v4 = vld [vmem:[%s550_s0] sm:$0xff]   ;;  %v401_v7 = vld [vmem:[%s549_s1 + $0x28] sm:$0xff]  }
   0x3   :  { %349 = vmatpush3.bf16.msra.mxu0 %v396_v0  ;;  %388 = vmatpush3.bf16.msra.mxu1 %v396_v0  ;;  %v405_v5 = vld [vmem:[%s550_s0 + $0x20] sm:$0xff]   ;;  %v402_v8 = vld [vmem:[%s549_s1 + $0x30] sm:$0xff]   ;;  %v403_v9 = vld [vmem:[%s549_s1 + $0x38] sm:$0xff]  }
   0x4   :  { %350 = vmatprep.subr.bf16.mxu0 %v397_v1  ;;  %381 = vmatprep.subr.bf16.mxu1 %v397_v1  ;;  %v400_v6 = vld [vmem:[%s549_s1 + $0x20] sm:$0xff]   ;;  %v406_v10 = vld [vmem:[%s550_s0 + $0x8] sm:$0xff]   ;;  %v408_v12 = vld [vmem:[%s550_s0 + $0x10] sm:$0xff]  }
   0x5   :  { %364 = vmatprep.mubr.bf16.mxu0 %v404_v4  ;;  %372 = vmatprep.mubr.bf16.mxu1 %v405_v5  ;;  %v407_v11 = vld [vmem:[%s550_s0 + $0x28] sm:$0xff]   ;;  %v409_v13 = vld [vmem:[%s550_s0 + $0x30] sm:$0xff]   ;;  %v410_v14 = vld [vmem:[%s550_s0 + $0x18] sm:$0xff]  }
   0x6   :  { %v411_v15 = vld [vmem:[%s550_s0 + $0x38] sm:$0xff]   ;;  %v483_v16 = vld [vmem:[%s551_s2] ss:$0 sm:$0xff] }
   0x7   :  { %351 = vmatpush3.bf16.msra.mxu0 %v397_v1  ;;  %389 = vmatpush3.bf16.msra.mxu1 %v397_v1 }
   0x8   :  { %352 = vmatprep.subr.bf16.mxu0 %v398_v2  ;;  %382 = vmatprep.subr.bf16.mxu1 %v398_v2 }
   0xb   :  { %353 = vmatpush3.bf16.msra.mxu0 %v398_v2  ;;  %390 = vmatpush3.bf16.msra.mxu1 %v398_v2 }
   0xc   :  { %354 = vmatprep.subr.bf16.mxu0 %v399_v3  ;;  %383 = vmatprep.subr.bf16.mxu1 %v399_v3 }
   0xf   :  { %355 = vmatpush3.bf16.msra.mxu0 %v399_v3  ;;  %391 = vmatpush3.bf16.msra.mxu1 %v399_v3 }
  0x10   :  { %356 = vmatprep.subr.bf16.mxu0 %v400_v6  ;;  %384 = vmatprep.subr.bf16.mxu1 %v400_v6 }
  0x13   :  { %357 = vmatpush3.bf16.msra.mxu0 %v400_v6  ;;  %392 = vmatpush3.bf16.msra.mxu1 %v400_v6 }
  0x14   :  { %358 = vmatprep.subr.bf16.mxu0 %v401_v7  ;;  %385 = vmatprep.subr.bf16.mxu1 %v401_v7 }
  0x17   :  { %359 = vmatpush3.bf16.msra.mxu0 %v401_v7  ;;  %393 = vmatpush3.bf16.msra.mxu1 %v401_v7 }
  0x18   :  { %360 = vmatprep.subr.bf16.mxu0 %v402_v8  ;;  %386 = vmatprep.subr.bf16.mxu1 %v402_v8 }
  0x1b   :  { %361 = vmatpush3.bf16.msra.mxu0 %v402_v8  ;;  %394 = vmatpush3.bf16.msra.mxu1 %v402_v8 }
  0x1c   :  { %362 = vmatprep.subr.bf16.mxu0 %v403_v9  ;;  %387 = vmatprep.subr.bf16.mxu1 %v403_v9 }
  0x1f   :  { %363 = vmatpush3.bf16.msra.mxu0 %v403_v9  ;;  %395 = vmatpush3.bf16.msra.mxu1 %v403_v9 }
  0x22   :  { %365 = vmatmul.mubr.bf16.vlgmr.msra.gmra.mrb[0].mxu0 %v406_v10  ;;  %373 = vmatmul.mubr.bf16.vlgmr.msra.gmra.mrb[0].mxu1 %v407_v11 }
  0x23   :  { %368 = vmatprep.mubr.bf16.mxu0 %v408_v12  ;;  %376 = vmatprep.mubr.bf16.mxu1 %v409_v13 }
  0x2a   :  { %369 = vmatmul.mubr.bf16.gmra.mrb[4].mxu0 %v410_v14  ;;  %377 = vmatmul.mubr.bf16.gmra.mrb[4].mxu1 %v411_v15 }
  0xf5   :  { %v366_v17 = vpop.f32.mrb[0].mxu0  ;;  %v374_v18 = vpop.f32.mrb[0].mxu1 }
  0xf6   :  { %v193_v19 = vadd.f32 %v366_v17, %v483_v16  ;;  %v225_v20 = vadd.f32 %v374_v18, %v483_v16  ;;  %v184_v21 = vpop.f32.mrb[1].mxu0  ;;  %v216_v22 = vpop.f32.mrb[1].mxu1 }
  0xf7   :  { %v185_v23 = vadd.f32 %v483_v16, %v184_v21  ;;  %v217_v24 = vadd.f32 %v483_v16, %v216_v22  ;;  %v367_v25 = vpop.f32.mrb[2].mxu0  ;;  %v375_v26 = vpop.f32.mrb[2].mxu1 }
  0xf8   :  { %vm249_vm0 = vcmp.ge.f32.partialorder %v193_v19, 0.0  ;;  %v265_v27 = vmul.f32 0.2, %v193_v19  ;;  %vm257_vm1 = vcmp.ge.f32.partialorder %v225_v20, 0.0  ;;  %v273_v28 = vmul.f32 0.2, %v225_v20 }
  0xf9   :  { %vm247_vm2 = vcmp.ge.f32.partialorder %v185_v23, 0.0  ;;  %v263_v29 = vmul.f32 0.2, %v185_v23  ;;  %vm255_vm3 = vcmp.ge.f32.partialorder %v217_v24, 0.0  ;;  %v271_v30 = vmul.f32 0.2, %v217_v24 }
  0xfa   :  { %v281_v31 = vsel %vm249_vm0, %v193_v19, %v265_v27  ;;  %v289_v32 = vsel %vm257_vm1, %v225_v20, %v273_v28  ;;  %v196_v33 = vadd.f32 %v367_v25, %v483_v16  ;;  %v228_v34 = vadd.f32 %v375_v26, %v483_v16  ;;  %v187_v35 = vpop.f32.mrb[3].mxu0  ;;  %v219_v36 = vpop.f32.mrb[3].mxu1 }
  0xfb   :  { %297 = vst [vmem:[%s552_s3 + $0x10] sm:$0xff] %v281_v31  ;;  %305 = vst [vmem:[%s552_s3 + $0x50] sm:$0xff] %v289_v32  ;;  %v279_v37 = vsel %vm247_vm2, %v185_v23, %v263_v29  ;;  %v287_v38 = vsel %vm255_vm3, %v217_v24, %v271_v30  ;;  %v188_v39 = vadd.f32 %v483_v16, %v187_v35 }
  0xfc   :  { %v220_v40 = vadd.f32 %v483_v16, %v219_v36  ;;  %295 = vst [vmem:[%s552_s3] sm:$0xff] %v279_v37  ;;  %303 = vst [vmem:[%s552_s3 + $0x40] sm:$0xff] %v287_v38  ;;  %vm250_vm4 = vcmp.ge.f32.partialorder %v196_v33, 0.0  ;;  %v266_v41 = vmul.f32 0.2, %v196_v33  ;;  %vm258_vm5 = vcmp.ge.f32.partialorder %v228_v34, 0.0 }
  0xfd   :  { %v274_v42 = vmul.f32 0.2, %v228_v34  ;;  %vm248_vm6 = vcmp.ge.f32.partialorder %v188_v39, 0.0  ;;  %v264_v43 = vmul.f32 0.2, %v188_v39  ;;  %v370_v47 = vpop.f32.mrb[4].mxu0 }
  0xfe   :  { %vm256_vm7 = vcmp.ge.f32.partialorder %v220_v40, 0.0  ;;  %v272_v44 = vmul.f32 0.2, %v220_v40  ;;  %v282_v45 = vsel %vm250_vm4, %v196_v33, %v266_v41  ;;  %v378_v48 = vpop.f32.mrb[4].mxu1  ;;  %v209_v51 = vadd.f32 %v370_v47, %v483_v16  ;;  %v200_v53 = vpop.f32.mrb[5].mxu0 }
  0xff   :  { %v290_v46 = vsel %vm258_vm5, %v228_v34, %v274_v42  ;;  %298 = vst [vmem:[%s552_s3 + $0x18] sm:$0xff] %v282_v45  ;;  %v280_v49 = vsel %vm248_vm6, %v188_v39, %v264_v43  ;;  %v241_v52 = vadd.f32 %v378_v48, %v483_v16  ;;  %v232_v54 = vpop.f32.mrb[5].mxu1  ;;  %v201_v55 = vadd.f32 %v483_v16, %v200_v53  ;;  %v371_v57 = vpop.f32.mrb[6].mxu0 }
 0x100   :  { %306 = vst [vmem:[%s552_s3 + $0x58] sm:$0xff] %v290_v46  ;;  %v288_v50 = vsel %vm256_vm7, %v220_v40, %v272_v44  ;;  %296 = vst [vmem:[%s552_s3 + $0x8] sm:$0xff] %v280_v49  ;;  %v233_v56 = vadd.f32 %v483_v16, %v232_v54  ;;  %v379_v58 = vpop.f32.mrb[6].mxu1  ;;  %vm253_vm8 = vcmp.ge.f32.partialorder %v209_v51, 0.0  ;;  %v269_v59 = vmul.f32 0.2, %v209_v51 }
 0x101   :  { %304 = vst [vmem:[%s552_s3 + $0x48] sm:$0xff] %v288_v50  ;;  %vm261_vm9 = vcmp.ge.f32.partialorder %v241_v52, 0.0  ;;  %v277_v60 = vmul.f32 0.2, %v241_v52  ;;  %vm251_vm10 = vcmp.ge.f32.partialorder %v201_v55, 0.0  ;;  %v212_v1 = vadd.f32 %v371_v57, %v483_v16  ;;  %v203_v3 = vpop.f32.mrb[7].mxu0 }
 0x102   :  { %v267_v61 = vmul.f32 0.2, %v201_v55  ;;  %vm259_vm11 = vcmp.ge.f32.partialorder %v233_v56, 0.0  ;;  %v275_v62 = vmul.f32 0.2, %v233_v56  ;;  %v285_v63 = vsel %vm253_vm8, %v209_v51, %v269_v59  ;;  %v235_v4 = vpop.f32.mrb[7].mxu1 }
 0x103   :  { %v293_v0 = vsel %vm261_vm9, %v241_v52, %v277_v60  ;;  %v244_v2 = vadd.f32 %v379_v58, %v483_v16  ;;  %301 = vst [vmem:[%s552_s3 + $0x30] sm:$0xff] %v285_v63  ;;  %v204_v7 = vadd.f32 %v483_v16, %v203_v3  ;;  %v236_v8 = vadd.f32 %v483_v16, %v235_v4 }
 0x104   :  { %309 = vst [vmem:[%s552_s3 + $0x70] sm:$0xff] %v293_v0  ;;  %v283_v5 = vsel %vm251_vm10, %v201_v55, %v267_v61  ;;  %v291_v6 = vsel %vm259_vm11, %v233_v56, %v275_v62  ;;  %vm254_vm12 = vcmp.ge.f32.partialorder %v212_v1, 0.0  ;;  %v270_v9 = vmul.f32 0.2, %v212_v1 }
 0x105   :  { %299 = vst [vmem:[%s552_s3 + $0x20] sm:$0xff] %v283_v5  ;;  %307 = vst [vmem:[%s552_s3 + $0x60] sm:$0xff] %v291_v6  ;;  %vm262_vm13 = vcmp.ge.f32.partialorder %v244_v2, 0.0  ;;  %v278_v10 = vmul.f32 0.2, %v244_v2  ;;  %vm252_vm14 = vcmp.ge.f32.partialorder %v204_v7, 0.0 }
 0x106   :  { %v268_v11 = vmul.f32 0.2, %v204_v7  ;;  %vm260_vm15 = vcmp.ge.f32.partialorder %v236_v8, 0.0  ;;  %v276_v12 = vmul.f32 0.2, %v236_v8  ;;  %v286_v13 = vsel %vm254_vm12, %v212_v1, %v270_v9 }
 0x107   :  { %v294_v14 = vsel %vm262_vm13, %v244_v2, %v278_v10  ;;  %302 = vst [vmem:[%s552_s3 + $0x38] sm:$0xff] %v286_v13 }
 0x108   :  { %310 = vst [vmem:[%s552_s3 + $0x78] sm:$0xff] %v294_v14  ;;  %v284_v15 = vsel %vm252_vm14, %v204_v7, %v268_v11  ;;  %v292_v16 = vsel %vm260_vm15, %v236_v8, %v276_v12 }
 0x109   :  { %300 = vst [vmem:[%s552_s3 + $0x28] sm:$0xff] %v284_v15  ;;  %308 = vst [vmem:[%s552_s3 + $0x68] sm:$0xff] %v292_v16 }

// kernel: mul.88
= control target key start
LH: loop header
LB: loop body
LE: loop exit
PB: predicated region body
PF: predicated region fallthrough
CT: control target
= control target key end

     0   :  { %s70_s0 = inlined_call_operand.vmem [shape: f32[2,16], index: 0, kind: input, shape index: {}]   ;;  %s71_s1 = inlined_call_operand.vmem [shape: f32[2,4,4,16], index: 1, kind: output, shape index: {}]  }
   0x1   :  { %v4_v0 = vld [vmem:[%s70_s0] ss:$0 sm:$0xff]  ;;  %v22_v1 = vld [vmem:[%s70_s0 + $0x1] ss:$0 sm:$0xff] }
   0x2   :  { %5 = vst [vmem:[%s71_s1] sm:$0xf] %v4_v0  ;;  %23 = vst [vmem:[%s71_s1 + $0x10] sm:$0xf] %v22_v1 }
   0x3   :  { %24 = vst [vmem:[%s71_s1 + $0x4] sm:$0xf] %v4_v0  ;;  %25 = vst [vmem:[%s71_s1 + $0x14] sm:$0xf] %v22_v1 }
   0x4   :  { %26 = vst [vmem:[%s71_s1 + $0x8] sm:$0xf] %v4_v0  ;;  %27 = vst [vmem:[%s71_s1 + $0x18] sm:$0xf] %v22_v1 }
   0x5   :  { %28 = vst [vmem:[%s71_s1 + $0xc] sm:$0xf] %v4_v0  ;;  %29 = vst [vmem:[%s71_s1 + $0x1c] sm:$0xf] %v22_v1 }

// kernel: _lambda_.44
= control target key start
LH: loop header
LB: loop body
LE: loop exit
PB: predicated region body
PF: predicated region fallthrough
CT: control target
= control target key end

     0   :  { %s275_s1 = inlined_call_operand.vmem [shape: bf16[128,128], index: 1, kind: input, shape index: {}]   ;;  %s276_s0 = inlined_call_operand.vmem [shape: bf16[32,128], index: 0, kind: input, shape index: {}]   ;;  %s277_s2 = inlined_call_operand.vmem [shape: f32[1,128], index: 2, kind: input, shape index: {}]   ;;  %s278_s3 = inlined_call_operand.vmem [shape: f32[32,128], index: 3, kind: output, shape index: {}]  }
   0x1   :  { %v200_v0 = vld [vmem:[%s275_s1] sm:$0xff]   ;;  %v201_v1 = vld [vmem:[%s275_s1 + $0x8] sm:$0xff]   ;;  %v202_v2 = vld [vmem:[%s275_s1 + $0x10] sm:$0xff]  }
   0x2   :  { %180 = vmatprep.subr.bf16.mxu0 %v200_v0  ;;  %v203_v3 = vld [vmem:[%s275_s1 + $0x18] sm:$0xff]   ;;  %v208_v4 = vld [vmem:[%s276_s0] sm:$0xff]   ;;  %v205_v6 = vld [vmem:[%s275_s1 + $0x28] sm:$0xff]  }
   0x3   :  { %181 = vmatpush3.bf16.msra.mxu0 %v200_v0  ;;  %196 = vmatprep.mubr.bf16.mxu0 %v208_v4  ;;  %v204_v5 = vld [vmem:[%s275_s1 + $0x20] sm:$0xff]   ;;  %v206_v7 = vld [vmem:[%s275_s1 + $0x30] sm:$0xff]   ;;  %v207_v8 = vld [vmem:[%s275_s1 + $0x38] sm:$0xff]  }
   0x4   :  { %182 = vmatprep.subr.bf16.mxu0 %v201_v1  ;;  %v209_v9 = vld [vmem:[%s276_s0 + $0x8] sm:$0xff]   ;;  %v159_v10 = vld [vmem:[%s277_s2] ss:$0 sm:$0xff] }
   0x7   :  { %183 = vmatpush3.bf16.msra.mxu0 %v201_v1 }
   0x8   :  { %184 = vmatprep.subr.bf16.mxu0 %v202_v2 }
   0xb   :  { %185 = vmatpush3.bf16.msra.mxu0 %v202_v2 }
   0xc   :  { %186 = vmatprep.subr.bf16.mxu0 %v203_v3 }
   0xf   :  { %187 = vmatpush3.bf16.msra.mxu0 %v203_v3 }
  0x10   :  { %188 = vmatprep.subr.bf16.mxu0 %v204_v5 }
  0x13   :  { %189 = vmatpush3.bf16.msra.mxu0 %v204_v5 }
  0x14   :  { %190 = vmatprep.subr.bf16.mxu0 %v205_v6 }
  0x17   :  { %191 = vmatpush3.bf16.msra.mxu0 %v205_v6 }
  0x18   :  { %192 = vmatprep.subr.bf16.mxu0 %v206_v7 }
  0x1b   :  { %193 = vmatpush3.bf16.msra.mxu0 %v206_v7 }
  0x1c   :  { %194 = vmatprep.subr.bf16.mxu0 %v207_v8 }
  0x1f   :  { %195 = vmatpush3.bf16.msra.mxu0 %v207_v8 }
  0x22   :  { %197 = vmatmul.mubr.bf16.vlgmr.msra.gmra.mrb[0].mxu0 %v209_v9 }
  0xf5   :  { %v198_v11 = vpop.f32.mrb[0].mxu0 }
  0xf6   :  { %v145_v12 = vadd.f32 %v198_v11, %v159_v10  ;;  %v136_v13 = vpop.f32.mrb[1].mxu0 }
  0xf7   :  { %v137_v14 = vadd.f32 %v159_v10, %v136_v13  ;;  %v199_v15 = vpop.f32.mrb[2].mxu0 }
  0xf8   :  { %153 = vst [vmem:[%s278_s3 + $0x10] sm:$0xff] %v145_v12  ;;  %v148_v16 = vadd.f32 %v199_v15, %v159_v10  ;;  %v139_v17 = vpop.f32.mrb[3].mxu0 }
  0xf9   :  { %151 = vst [vmem:[%s278_s3] sm:$0xff] %v137_v14  ;;  %v140_v18 = vadd.f32 %v159_v10, %v139_v17 }
  0xfa   :  { %154 = vst [vmem:[%s278_s3 + $0x18] sm:$0xff] %v148_v16 }
  0xfb   :  { %152 = vst [vmem:[%s278_s3 + $0x8] sm:$0xff] %v140_v18 }

// kernel: _lambda_.45
= control target key start
LH: loop header
LB: loop body
LE: loop exit
PB: predicated region body
PF: predicated region fallthrough
CT: control target
= control target key end

     0   :  { %s425_s1 = inlined_call_operand.vmem [shape: bf16[256,128], index: 1, kind: input, shape index: {}]   ;;  %s426_s0 = inlined_call_operand.vmem [shape: bf16[32,256], index: 0, kind: input, shape index: {}]   ;;  %s427_s2 = inlined_call_operand.vmem [shape: f32[1,128], index: 2, kind: input, shape index: {}]   ;;  %s428_s3 = inlined_call_operand.vmem [shape: f32[32,128], index: 3, kind: output, shape index: {}]  }
   0x1   :  { %v308_v0 = vld [vmem:[%s425_s1 + $0x40] sm:$0xff]   ;;  %v310_v2 = vld [vmem:[%s425_s1 + $0x48] sm:$0xff]   ;;  %v312_v4 = vld [vmem:[%s425_s1 + $0x50] sm:$0xff]  }
   0x2   :  { %v309_v1 = vld [vmem:[%s425_s1] sm:$0xff]   ;;  %264 = vmatprep.subr.bf16.mxu0 %v308_v0  ;;  %292 = vmatprep.subr.bf16.mxu1 %v308_v0  ;;  %v311_v3 = vld [vmem:[%s425_s1 + $0x8] sm:$0xff]   ;;  %v313_v5 = vld [vmem:[%s425_s1 + $0x10] sm:$0xff]  }
   0x3   :  { %265 = vmatpush3.bf16.msra.mxu0 %v309_v1  ;;  %300 = vmatpush3.bf16.msra.mxu1 %v309_v1  ;;  %v314_v6 = vld [vmem:[%s425_s1 + $0x58] sm:$0xff]   ;;  %v316_v8 = vld [vmem:[%s425_s1 + $0x60] sm:$0xff]   ;;  %v318_v10 = vld [vmem:[%s425_s1 + $0x68] sm:$0xff]  }
   0x4   :  { %266 = vmatprep.subr.bf16.mxu0 %v310_v2  ;;  %293 = vmatprep.subr.bf16.mxu1 %v310_v2  ;;  %v315_v7 = vld [vmem:[%s425_s1 + $0x18] sm:$0xff]   ;;  %v317_v9 = vld [vmem:[%s425_s1 + $0x20] sm:$0xff]   ;;  %v319_v13 = vld [vmem:[%s425_s1 + $0x28] sm:$0xff]  }
   0x5   :  { %v326_v11 = vld [vmem:[%s426_s0 + $0x4] ss:$8 sps:$4 sm:$0xff]   ;;  %v329_v12 = vld [vmem:[%s426_s0 + $0x14] ss:$8 sps:$4 sm:$0xff]   ;;  %v324_v18 = vld [vmem:[%s426_s0] ss:$8 sps:$4 sm:$0xff]  }
   0x6   :  { %v320_v14 = vld [vmem:[%s425_s1 + $0x70] sm:$0xff]   ;;  %206 = vmatprep.mubr.bf16.mxu0 %v326_v11  ;;  %214 = vmatprep.mubr.bf16.mxu1 %v329_v12  ;;  %v322_v16 = vld [vmem:[%s425_s1 + $0x78] sm:$0xff]   ;;  %v243_v22 = vld [vmem:[%s427_s2] ss:$0 sm:$0xff] }
   0x7   :  { %267 = vmatpush3.bf16.msra.mxu0 %v311_v3  ;;  %301 = vmatpush3.bf16.msra.mxu1 %v311_v3  ;;  %v321_v15 = vld [vmem:[%s425_s1 + $0x30] sm:$0xff]   ;;  %v323_v17 = vld [vmem:[%s425_s1 + $0x38] sm:$0xff]  }
   0x8   :  { %268 = vmatprep.subr.bf16.mxu0 %v312_v4  ;;  %294 = vmatprep.subr.bf16.mxu1 %v312_v4  ;;  %v327_v19 = vld [vmem:[%s426_s0 + $0x10] ss:$8 sps:$4 sm:$0xff]  }
   0xb   :  { %269 = vmatpush3.bf16.msra.mxu0 %v313_v5  ;;  %302 = vmatpush3.bf16.msra.mxu1 %v313_v5 }
   0xc   :  { %270 = vmatprep.subr.bf16.mxu0 %v314_v6  ;;  %295 = vmatprep.subr.bf16.mxu1 %v314_v6 }
   0xf   :  { %271 = vmatpush3.bf16.msra.mxu0 %v315_v7  ;;  %303 = vmatpush3.bf16.msra.mxu1 %v315_v7 }
  0x10   :  { %272 = vmatprep.subr.bf16.mxu0 %v316_v8  ;;  %296 = vmatprep.subr.bf16.mxu1 %v316_v8 }
  0x13   :  { %273 = vmatpush3.bf16.msra.mxu0 %v317_v9  ;;  %304 = vmatpush3.bf16.msra.mxu1 %v317_v9 }
  0x14   :  { %274 = vmatprep.subr.bf16.mxu0 %v318_v10  ;;  %297 = vmatprep.subr.bf16.mxu1 %v318_v10 }
  0x17   :  { %275 = vmatpush3.bf16.msra.mxu0 %v319_v13  ;;  %305 = vmatpush3.bf16.msra.mxu1 %v319_v13 }
  0x18   :  { %276 = vmatprep.subr.bf16.mxu0 %v320_v14  ;;  %298 = vmatprep.subr.bf16.mxu1 %v320_v14 }
  0x1b   :  { %277 = vmatpush3.bf16.msra.mxu0 %v321_v15  ;;  %306 = vmatpush3.bf16.msra.mxu1 %v321_v15 }
  0x1c   :  { %278 = vmatprep.subr.bf16.mxu0 %v322_v16  ;;  %299 = vmatprep.subr.bf16.mxu1 %v322_v16 }
  0x1f   :  { %279 = vmatpush3.bf16.msra.mxu0 %v323_v17  ;;  %307 = vmatpush3.bf16.msra.mxu1 %v323_v17 }
  0x22   :  { %207 = vmatmul.mubr.bf16.vlgmr.msra.gmra.mrb[0].mxu0 %v324_v18  ;;  %215 = vmatmul.mubr.bf16.vlgmr.msra.gmra.mrb[0].mxu1 %v327_v19 }
  0xf5   :  { %v280_v20 = vpop.f32.mrb[0].mxu0  ;;  %v286_v21 = vpop.f32.mrb[0].mxu1 }
  0xf6   :  { %v281_v23 = vpop.f32.mrb[1].mxu0  ;;  %v287_v24 = vpop.f32.mrb[1].mxu1 }
  0xf7   :  { %v282_v25 = vadd.f32 %v281_v23, %v280_v20  ;;  %v288_v26 = vadd.f32 %v287_v24, %v286_v21  ;;  %v283_v27 = vpop.f32.mrb[2].mxu0  ;;  %v289_v28 = vpop.f32.mrb[2].mxu1 }
  0xf8   :  { %v284_v29 = vpop.f32.mrb[3].mxu0  ;;  %v290_v30 = vpop.f32.mrb[3].mxu1 }
  0xf9   :  { %v209_v31 = vadd.f32 %v282_v25, %v243_v22  ;;  %v217_v32 = vadd.f32 %v288_v26, %v243_v22  ;;  %v285_v33 = vadd.f32 %v284_v29, %v283_v27  ;;  %v291_v34 = vadd.f32 %v290_v30, %v289_v28 }
  0xfb   :  { %vm223_vm0 = vcmp.ge.f32.partialorder %v209_v31, 0.0  ;;  %v227_v35 = vmul.f32 0.2, %v209_v31  ;;  %vm225_vm1 = vcmp.ge.f32.partialorder %v217_v32, 0.0  ;;  %v229_v36 = vmul.f32 0.2, %v217_v32 }
  0xfc   :  { %v212_v37 = vadd.f32 %v285_v33, %v243_v22  ;;  %v220_v38 = vadd.f32 %v291_v34, %v243_v22 }
  0xfd   :  { %v231_v39 = vsel %vm223_vm0, %v209_v31, %v227_v35  ;;  %v233_v40 = vsel %vm225_vm1, %v217_v32, %v229_v36 }
  0xfe   :  { %235 = vst [vmem:[%s428_s3] sm:$0xff] %v231_v39  ;;  %237 = vst [vmem:[%s428_s3 + $0x10] sm:$0xff] %v233_v40  ;;  %vm224_vm2 = vcmp.ge.f32.partialorder %v212_v37, 0.0  ;;  %v228_v41 = vmul.f32 0.2, %v212_v37  ;;  %vm226_vm3 = vcmp.ge.f32.partialorder %v220_v38, 0.0 }
  0xff   :  { %v230_v42 = vmul.f32 0.2, %v220_v38 }
 0x100   :  { %v232_v43 = vsel %vm224_vm2, %v212_v37, %v228_v41 }
 0x101   :  { %v234_v44 = vsel %vm226_vm3, %v220_v38, %v230_v42  ;;  %236 = vst [vmem:[%s428_s3 + $0x8] sm:$0xff] %v232_v43 }
 0x102   :  { %238 = vst [vmem:[%s428_s3 + $0x18] sm:$0xff] %v234_v44 }

// kernel: _lambda_.46
= control target key start
LH: loop header
LB: loop body
LE: loop exit
PB: predicated region body
PF: predicated region fallthrough
CT: control target
= control target key end

     0   :  { %s441_s1 = inlined_call_operand.vmem [shape: bf16[256,128], index: 1, kind: input, shape index: {}]   ;;  %s442_s0 = inlined_call_operand.vmem [shape: bf16[32,256], index: 0, kind: input, shape index: {}]   ;;  %s443_s2 = inlined_call_operand.vmem [shape: f32[1,128], index: 2, kind: input, shape index: {}]   ;;  %s444_s3 = inlined_call_operand.vmem [shape: f32[32,128], index: 3, kind: input, shape index: {}]   ;;  %s445_s4 = inlined_call_operand.vmem [shape: f32[32,128], index: 4, kind: output, shape index: {}]  }
   0x1   :  { %v307_v0 = vld [vmem:[%s441_s1 + $0x40] sm:$0xff]   ;;  %v309_v2 = vld [vmem:[%s441_s1 + $0x48] sm:$0xff]   ;;  %v311_v4 = vld [vmem:[%s441_s1 + $0x50] sm:$0xff]  }
   0x2   :  { %v308_v1 = vld [vmem:[%s441_s1] sm:$0xff]   ;;  %263 = vmatprep.subr.bf16.mxu0 %v307_v0  ;;  %291 = vmatprep.subr.bf16.mxu1 %v307_v0  ;;  %v310_v3 = vld [vmem:[%s441_s1 + $0x8] sm:$0xff]   ;;  %v312_v5 = vld [vmem:[%s441_s1 + $0x10] sm:$0xff]  }
   0x3   :  { %264 = vmatpush3.bf16.msra.mxu0 %v308_v1  ;;  %299 = vmatpush3.bf16.msra.mxu1 %v308_v1  ;;  %v313_v6 = vld [vmem:[%s441_s1 + $0x58] sm:$0xff]   ;;  %v315_v8 = vld [vmem:[%s441_s1 + $0x60] sm:$0xff]   ;;  %v317_v10 = vld [vmem:[%s441_s1 + $0x68] sm:$0xff]  }
   0x4   :  { %265 = vmatprep.subr.bf16.mxu0 %v309_v2  ;;  %292 = vmatprep.subr.bf16.mxu1 %v309_v2  ;;  %v314_v7 = vld [vmem:[%s441_s1 + $0x18] sm:$0xff]   ;;  %v316_v9 = vld [vmem:[%s441_s1 + $0x20] sm:$0xff]   ;;  %v318_v13 = vld [vmem:[%s441_s1 + $0x28] sm:$0xff]  }
   0x5   :  { %v325_v11 = vld [vmem:[%s442_s0 + $0x4] ss:$8 sps:$4 sm:$0xff]   ;;  %v328_v12 = vld [vmem:[%s442_s0 + $0x14] ss:$8 sps:$4 sm:$0xff]   ;;  %v323_v18 = vld [vmem:[%s442_s0] ss:$8 sps:$4 sm:$0xff]  }
   0x6   :  { %v319_v14 = vld [vmem:[%s441_s1 + $0x70] sm:$0xff]   ;;  %209 = vmatprep.mubr.bf16.mxu0 %v325_v11  ;;  %217 = vmatprep.mubr.bf16.mxu1 %v328_v12  ;;  %v321_v16 = vld [vmem:[%s441_s1 + $0x78] sm:$0xff]   ;;  %v242_v22 = vld [vmem:[%s443_s2] ss:$0 sm:$0xff] }
   0x7   :  { %266 = vmatpush3.bf16.msra.mxu0 %v310_v3  ;;  %300 = vmatpush3.bf16.msra.mxu1 %v310_v3  ;;  %v320_v15 = vld [vmem:[%s441_s1 + $0x30] sm:$0xff]   ;;  %v322_v17 = vld [vmem:[%s441_s1 + $0x38] sm:$0xff]   ;;  %v226_v29 = vld [vmem:[%s444_s3] sm:$0xff] }
   0x8   :  { %267 = vmatprep.subr.bf16.mxu0 %v311_v4  ;;  %293 = vmatprep.subr.bf16.mxu1 %v311_v4  ;;  %v326_v19 = vld [vmem:[%s442_s0 + $0x10] ss:$8 sps:$4 sm:$0xff]   ;;  %v227_v37 = vld [vmem:[%s444_s3 + $0x8] sm:$0xff] }
   0x9   :  { %v228_v30 = vld [vmem:[%s444_s3 + $0x10] sm:$0xff]  ;;  %v229_v38 = vld [vmem:[%s444_s3 + $0x18] sm:$0xff] }
   0xb   :  { %268 = vmatpush3.bf16.msra.mxu0 %v312_v5  ;;  %301 = vmatpush3.bf16.msra.mxu1 %v312_v5 }
   0xc   :  { %269 = vmatprep.subr.bf16.mxu0 %v313_v6  ;;  %294 = vmatprep.subr.bf16.mxu1 %v313_v6 }
   0xf   :  { %270 = vmatpush3.bf16.msra.mxu0 %v314_v7  ;;  %302 = vmatpush3.bf16.msra.mxu1 %v314_v7 }
  0x10   :  { %271 = vmatprep.subr.bf16.mxu0 %v315_v8  ;;  %295 = vmatprep.subr.bf16.mxu1 %v315_v8 }
  0x13   :  { %272 = vmatpush3.bf16.msra.mxu0 %v316_v9  ;;  %303 = vmatpush3.bf16.msra.mxu1 %v316_v9 }
  0x14   :  { %273 = vmatprep.subr.bf16.mxu0 %v317_v10  ;;  %296 = vmatprep.subr.bf16.mxu1 %v317_v10 }
  0x17   :  { %274 = vmatpush3.bf16.msra.mxu0 %v318_v13  ;;  %304 = vmatpush3.bf16.msra.mxu1 %v318_v13 }
  0x18   :  { %275 = vmatprep.subr.bf16.mxu0 %v319_v14  ;;  %297 = vmatprep.subr.bf16.mxu1 %v319_v14 }
  0x1b   :  { %276 = vmatpush3.bf16.msra.mxu0 %v320_v15  ;;  %305 = vmatpush3.bf16.msra.mxu1 %v320_v15 }
  0x1c   :  { %277 = vmatprep.subr.bf16.mxu0 %v321_v16  ;;  %298 = vmatprep.subr.bf16.mxu1 %v321_v16 }
  0x1f   :  { %278 = vmatpush3.bf16.msra.mxu0 %v322_v17  ;;  %306 = vmatpush3.bf16.msra.mxu1 %v322_v17 }
  0x22   :  { %210 = vmatmul.mubr.bf16.vlgmr.msra.gmra.mrb[0].mxu0 %v323_v18  ;;  %218 = vmatmul.mubr.bf16.vlgmr.msra.gmra.mrb[0].mxu1 %v326_v19 }
  0xf5   :  { %v279_v20 = vpop.f32.mrb[0].mxu0  ;;  %v285_v21 = vpop.f32.mrb[0].mxu1 }
  0xf6   :  { %v280_v23 = vpop.f32.mrb[1].mxu0  ;;  %v286_v24 = vpop.f32.mrb[1].mxu1 }
  0xf7   :  { %v281_v25 = vadd.f32 %v280_v23, %v279_v20  ;;  %v287_v26 = vadd.f32 %v286_v24, %v285_v21  ;;  %v282_v27 = vpop.f32.mrb[2].mxu0  ;;  %v288_v28 = vpop.f32.mrb[2].mxu1 }
  0xf8   :  { %v283_v31 = vpop.f32.mrb[3].mxu0  ;;  %v289_v32 = vpop.f32.mrb[3].mxu1 }
  0xf9   :  { %v212_v33 = vadd.f32 %v281_v25, %v242_v22  ;;  %v220_v34 = vadd.f32 %v287_v26, %v242_v22  ;;  %v284_v35 = vadd.f32 %v283_v31, %v282_v27  ;;  %v290_v36 = vadd.f32 %v289_v32, %v288_v28 }
  0xfb   :  { %v230_v39 = vadd.f32 %v226_v29, %v212_v33  ;;  %v232_v40 = vadd.f32 %v228_v30, %v220_v34  ;;  %v215_v41 = vadd.f32 %v284_v35, %v242_v22  ;;  %v223_v42 = vadd.f32 %v290_v36, %v242_v22 }
  0xfd   :  { %234 = vst [vmem:[%s445_s4] sm:$0xff] %v230_v39  ;;  %236 = vst [vmem:[%s445_s4 + $0x10] sm:$0xff] %v232_v40  ;;  %v231_v43 = vadd.f32 %v227_v37, %v215_v41  ;;  %v233_v44 = vadd.f32 %v229_v38, %v223_v42 }
  0xff   :  { %235 = vst [vmem:[%s445_s4 + $0x8] sm:$0xff] %v231_v43  ;;  %237 = vst [vmem:[%s445_s4 + $0x18] sm:$0xff] %v233_v44 }

// kernel: mul.80
= control target key start
LH: loop header
LB: loop body
LE: loop exit
PB: predicated region body
PF: predicated region fallthrough
CT: control target
= control target key end

     0   :  { %s118_s0 = inlined_call_operand.vmem [shape: f32[2,8], index: 0, kind: input, shape index: {}]   ;;  %s119_s1 = inlined_call_operand.vmem [shape: f32[2,8,8,8], index: 1, kind: output, shape index: {}]  }
   0x1   :  { %v4_v0 = vld [vmem:[%s118_s0] ss:$0 sm:$0xff]  ;;  %v38_v1 = vld [vmem:[%s118_s0 + $0x1] ss:$0 sm:$0xff] }
   0x2   :  { %5 = vst [vmem:[%s119_s1] sm:$0xff] %v4_v0  ;;  %39 = vst [vmem:[%s119_s1 + $0x40] sm:$0xff] %v38_v1 }
   0x3   :  { %40 = vst [vmem:[%s119_s1 + $0x8] sm:$0xff] %v4_v0  ;;  %41 = vst [vmem:[%s119_s1 + $0x48] sm:$0xff] %v38_v1 }
   0x4   :  { %42 = vst [vmem:[%s119_s1 + $0x10] sm:$0xff] %v4_v0  ;;  %43 = vst [vmem:[%s119_s1 + $0x50] sm:$0xff] %v38_v1 }
   0x5   :  { %44 = vst [vmem:[%s119_s1 + $0x18] sm:$0xff] %v4_v0  ;;  %45 = vst [vmem:[%s119_s1 + $0x58] sm:$0xff] %v38_v1 }
   0x6   :  { %46 = vst [vmem:[%s119_s1 + $0x20] sm:$0xff] %v4_v0  ;;  %47 = vst [vmem:[%s119_s1 + $0x60] sm:$0xff] %v38_v1 }
   0x7   :  { %48 = vst [vmem:[%s119_s1 + $0x28] sm:$0xff] %v4_v0  ;;  %49 = vst [vmem:[%s119_s1 + $0x68] sm:$0xff] %v38_v1 }
   0x8   :  { %50 = vst [vmem:[%s119_s1 + $0x30] sm:$0xff] %v4_v0  ;;  %51 = vst [vmem:[%s119_s1 + $0x70] sm:$0xff] %v38_v1 }
   0x9   :  { %52 = vst [vmem:[%s119_s1 + $0x38] sm:$0xff] %v4_v0  ;;  %53 = vst [vmem:[%s119_s1 + $0x78] sm:$0xff] %v38_v1 }

// kernel: _lambda_.51
= control target key start
LH: loop header
LB: loop body
LE: loop exit
PB: predicated region body
PF: predicated region fallthrough
CT: control target
= control target key end

     0   :  { %s937_s1 = inlined_call_operand.vmem [shape: bf16[640,128], index: 1, kind: input, shape index: {}]   ;;  %s938_s0 = inlined_call_operand.vmem [shape: bf16[32,640], index: 0, kind: input, shape index: {}]   ;;  %s939_s2 = inlined_call_operand.vmem [shape: f32[1,128], index: 2, kind: input, shape index: {}]   ;;  %s940_s3 = inlined_call_operand.vmem [shape: f32[32,128], index: 3, kind: output, shape index: {}]  }
   0x1   :  { %v698_v0 = vld [vmem:[%s937_s1 + $0x40] sm:$0xff]   ;;  %v702_v4 = vld [vmem:[%s937_s1 + $0x48] sm:$0xff]   ;;  %v706_v8 = vld [vmem:[%s937_s1 + $0x50] sm:$0xff]  }
   0x2   :  { %v699_v1 = vld [vmem:[%s937_s1] sm:$0xff]   ;;  %612 = vmatprep.subr.bf16.mxu0 %v698_v0  ;;  %v703_v5 = vld [vmem:[%s937_s1 + $0x8] sm:$0xff]   ;;  %v707_v9 = vld [vmem:[%s937_s1 + $0x10] sm:$0xff]  }
   0x3   :  { %v700_v2 = vld [vmem:[%s937_s1 + $0xc0] sm:$0xff]   ;;  %613 = vmatpush3.bf16.msra.mxu0 %v699_v1  ;;  %v704_v6 = vld [vmem:[%s937_s1 + $0xc8] sm:$0xff]   ;;  %v708_v10 = vld [vmem:[%s937_s1 + $0xd0] sm:$0xff]  }
   0x4   :  { %v701_v3 = vld [vmem:[%s937_s1 + $0x80] sm:$0xff]   ;;  %640 = vmatprep.subr.bf16.mxu1 %v700_v2  ;;  %614 = vmatprep.subr.bf16.mxu0 %v702_v4  ;;  %v705_v7 = vld [vmem:[%s937_s1 + $0x88] sm:$0xff]   ;;  %v709_v11 = vld [vmem:[%s937_s1 + $0x90] sm:$0xff]  }
   0x5   :  { %641 = vmatpush3.bf16.msra.mxu1 %v701_v3  ;;  %v710_v12 = vld [vmem:[%s937_s1 + $0x58] sm:$0xff]   ;;  %v714_v16 = vld [vmem:[%s937_s1 + $0x60] sm:$0xff]   ;;  %v718_v20 = vld [vmem:[%s937_s1 + $0x68] sm:$0xff]  }
   0x6   :  { %642 = vmatprep.subr.bf16.mxu1 %v704_v6  ;;  %v711_v13 = vld [vmem:[%s937_s1 + $0x18] sm:$0xff]   ;;  %v715_v17 = vld [vmem:[%s937_s1 + $0x20] sm:$0xff]   ;;  %v719_v21 = vld [vmem:[%s937_s1 + $0x28] sm:$0xff]  }
   0x7   :  { %615 = vmatpush3.bf16.msra.mxu0 %v703_v5  ;;  %v712_v14 = vld [vmem:[%s937_s1 + $0xd8] sm:$0xff]   ;;  %v716_v18 = vld [vmem:[%s937_s1 + $0xe0] sm:$0xff]   ;;  %v720_v22 = vld [vmem:[%s937_s1 + $0xe8] sm:$0xff]  }
   0x8   :  { %616 = vmatprep.subr.bf16.mxu0 %v706_v8  ;;  %v713_v15 = vld [vmem:[%s937_s1 + $0x98] sm:$0xff]   ;;  %v717_v19 = vld [vmem:[%s937_s1 + $0xa0] sm:$0xff]   ;;  %v721_v23 = vld [vmem:[%s937_s1 + $0xa8] sm:$0xff]  }
   0x9   :  { %643 = vmatpush3.bf16.msra.mxu1 %v705_v7  ;;  %v722_v24 = vld [vmem:[%s937_s1 + $0x70] sm:$0xff]   ;;  %v726_v28 = vld [vmem:[%s937_s1 + $0x78] sm:$0xff]   ;;  %v733_v34 = vld [vmem:[%s937_s1 + $0x100] sm:$0xff]  }
   0xa   :  { %644 = vmatprep.subr.bf16.mxu1 %v708_v10  ;;  %v723_v25 = vld [vmem:[%s937_s1 + $0x30] sm:$0xff]   ;;  %v727_v29 = vld [vmem:[%s937_s1 + $0x38] sm:$0xff]   ;;  %v736_v36 = vld [vmem:[%s938_s0 + $0xc] ss:$20 sps:$4 sm:$0xff]  }
   0xb   :  { %617 = vmatpush3.bf16.msra.mxu0 %v707_v9  ;;  %v724_v26 = vld [vmem:[%s937_s1 + $0xf0] sm:$0xff]   ;;  %v728_v30 = vld [vmem:[%s937_s1 + $0xf8] sm:$0xff]   ;;  %v737_v37 = vld [vmem:[%s937_s1 + $0x108] sm:$0xff]   ;;  %487 = vmatprep.mubr.bf16.mxu1 %v736_v36 }
   0xc   :  { %618 = vmatprep.subr.bf16.mxu0 %v710_v12  ;;  %v725_v27 = vld [vmem:[%s937_s1 + $0xb0] sm:$0xff]   ;;  %v731_v32 = vld [vmem:[%s938_s0 + $0x4] ss:$20 sps:$4 sm:$0xff]   ;;  %v734_v35 = vld [vmem:[%s938_s0 + $0x8] ss:$20 sps:$4 sm:$0xff]  }
   0xd   :  { %645 = vmatpush3.bf16.msra.mxu1 %v709_v11  ;;  %v729_v31 = vld [vmem:[%s938_s0] ss:$20 sps:$4 sm:$0xff]   ;;  %v732_v33 = vld [vmem:[%s937_s1 + $0xb8] sm:$0xff]   ;;  %438 = vmatprep.mubr.bf16.mxu0 %v731_v32  ;;  %v747_v43 = vld [vmem:[%s938_s0 + $0x30] ss:$20 sps:$4 sm:$0xff]  }
   0xe   :  { %646 = vmatprep.subr.bf16.mxu1 %v712_v14  ;;  %v738_v38 = vld [vmem:[%s937_s1 + $0x110] sm:$0xff]   ;;  %v741_v39 = vld [vmem:[%s938_s0 + $0x2c] ss:$20 sps:$4 sm:$0xff]   ;;  %v739_v40 = vld [vmem:[%s937_s1 + $0x118] sm:$0xff]  }
   0xf   :  { %619 = vmatpush3.bf16.msra.mxu0 %v711_v13  ;;  %v744_v41 = vld [vmem:[%s938_s0 + $0x28] ss:$20 sps:$4 sm:$0xff]   ;;  %v740_v44 = vld [vmem:[%s937_s1 + $0x120] sm:$0xff]   ;;  %v748_v47 = vld [vmem:[%s937_s1 + $0x130] sm:$0xff]  }
  0x10   :  { %620 = vmatprep.subr.bf16.mxu0 %v714_v16  ;;  %v745_v42 = vld [vmem:[%s938_s0 + $0x34] ss:$20 sps:$4 sm:$0xff]   ;;  %v750_v45 = vld [vmem:[%s938_s0 + $0x10] ss:$20 sps:$4 sm:$0xff]   ;;  %v749_v48 = vld [vmem:[%s937_s1 + $0x138] sm:$0xff]  }
  0x11   :  { %647 = vmatpush3.bf16.msra.mxu1 %v713_v15  ;;  %v743_v46 = vld [vmem:[%s937_s1 + $0x128] sm:$0xff]   ;;  %v561_v51 = vld [vmem:[%s939_s2] ss:$0 sm:$0xff] }
  0x12   :  { %648 = vmatprep.subr.bf16.mxu1 %v716_v18  ;;  %v751_v49 = vld [vmem:[%s938_s0 + $0x38] ss:$20 sps:$4 sm:$0xff]  }
  0x13   :  { %621 = vmatpush3.bf16.msra.mxu0 %v715_v17 }
  0x14   :  { %622 = vmatprep.subr.bf16.mxu0 %v718_v20 }
  0x15   :  { %649 = vmatpush3.bf16.msra.mxu1 %v717_v19 }
  0x16   :  { %650 = vmatprep.subr.bf16.mxu1 %v720_v22 }
  0x17   :  { %623 = vmatpush3.bf16.msra.mxu0 %v719_v21 }
  0x18   :  { %624 = vmatprep.subr.bf16.mxu0 %v722_v24 }
  0x19   :  { %651 = vmatpush3.bf16.msra.mxu1 %v721_v23 }
  0x1a   :  { %652 = vmatprep.subr.bf16.mxu1 %v724_v26 }
  0x1b   :  { %625 = vmatpush3.bf16.msra.mxu0 %v723_v25 }
  0x1c   :  { %626 = vmatprep.subr.bf16.mxu0 %v726_v28 }
  0x1d   :  { %653 = vmatpush3.bf16.msra.mxu1 %v725_v27 }
  0x1e   :  { %654 = vmatprep.subr.bf16.mxu1 %v728_v30 }
  0x1f   :  { %627 = vmatpush3.bf16.msra.mxu0 %v727_v29 }
  0x20   :  { %678 = vmatprep.subr.bf16.mxu0 %v733_v34 }
  0x21   :  { %655 = vmatpush3.bf16.msra.mxu1 %v732_v33 }
  0x22   :  { %439 = vmatmul.mubr.bf16.vlgmr.msra.gmra.mrb[0].mxu0 %v729_v31 }
  0x23   :  { %679 = vmatpush3.bf16.msra.mxu0 %v733_v34  ;;  %446 = vmatprep.mubr.bf16.mxu0 %v741_v39 }
  0x24   :  { %488 = vmatmul.mubr.bf16.vlgmr.msra.gmra.mrb[0].mxu1 %v734_v35  ;;  %680 = vmatprep.subr.bf16.mxu0 %v737_v37 }
  0x25   :  { %495 = vmatprep.mubr.bf16.mxu1 %v745_v42 }
  0x27   :  { %681 = vmatpush3.bf16.msra.mxu0 %v737_v37 }
  0x28   :  { %682 = vmatprep.subr.bf16.mxu0 %v738_v38 }
  0x2a   :  { %447 = vmatmul.mubr.bf16.gmra.mrb[4].mxu0 %v744_v41 }
  0x2b   :  { %683 = vmatpush3.bf16.msra.mxu0 %v738_v38  ;;  %694 = vmatprep.mubr.bf16.mxu0 %v750_v45 }
  0x2c   :  { %684 = vmatprep.subr.bf16.mxu0 %v739_v40  ;;  %496 = vmatmul.mubr.bf16.gmra.mrb[4].mxu1 %v747_v43 }
  0x2f   :  { %685 = vmatpush3.bf16.msra.mxu0 %v739_v40 }
  0x30   :  { %686 = vmatprep.subr.bf16.mxu0 %v740_v44 }
  0x33   :  { %687 = vmatpush3.bf16.msra.mxu0 %v740_v44 }
  0x34   :  { %688 = vmatprep.subr.bf16.mxu0 %v743_v46 }
  0x37   :  { %689 = vmatpush3.bf16.msra.mxu0 %v743_v46 }
  0x38   :  { %690 = vmatprep.subr.bf16.mxu0 %v748_v47 }
  0x3b   :  { %691 = vmatpush3.bf16.msra.mxu0 %v748_v47 }
  0x3c   :  { %692 = vmatprep.subr.bf16.mxu0 %v749_v48 }
  0x3f   :  { %693 = vmatpush3.bf16.msra.mxu0 %v749_v48 }
  0x42   :  { %695 = vmatmul.mubr.bf16.vlgmr.msra.gmra.mrb[8].mxu0 %v751_v49 }
  0xf5   :  { %v628_v50 = vpop.f32.mrb[0].mxu0 }
  0xf6   :  { %v629_v52 = vpop.f32.mrb[1].mxu0 }
  0xf7   :  { %v630_v53 = vadd.f32 %v629_v52, %v628_v50  ;;  %v631_v54 = vpop.f32.mrb[2].mxu0  ;;  %v656_v55 = vpop.f32.mrb[0].mxu1 }
  0xf8   :  { %v632_v56 = vpop.f32.mrb[3].mxu0  ;;  %v657_v59 = vpop.f32.mrb[1].mxu1 }
  0xf9   :  { %v441_v57 = vadd.f32 %v630_v53, %v561_v51  ;;  %v633_v58 = vadd.f32 %v632_v56, %v631_v54  ;;  %v658_v60 = vadd.f32 %v657_v59, %v656_v55  ;;  %v659_v61 = vpop.f32.mrb[2].mxu1 }
  0xfa   :  { %v660_v63 = vpop.f32.mrb[3].mxu1 }
  0xfb   :  { %v444_v62 = vadd.f32 %v633_v58, %v561_v51  ;;  %v661_v0 = vadd.f32 %v660_v63, %v659_v61  ;;  %v490_v1 = vadd.f32 %v658_v60, %v441_v57 }
  0xfd   :  { %v634_v2 = vpop.f32.mrb[4].mxu0  ;;  %v493_v4 = vadd.f32 %v661_v0, %v444_v62 }
  0xfe   :  { %v635_v3 = vpop.f32.mrb[5].mxu0 }
  0xff   :  { %v636_v5 = vadd.f32 %v635_v3, %v634_v2  ;;  %v637_v6 = vpop.f32.mrb[6].mxu0  ;;  %v662_v7 = vpop.f32.mrb[4].mxu1 }
 0x100   :  { %v638_v8 = vpop.f32.mrb[7].mxu0  ;;  %v663_v11 = vpop.f32.mrb[5].mxu1 }
 0x101   :  { %v449_v9 = vadd.f32 %v636_v5, %v561_v51  ;;  %v639_v10 = vadd.f32 %v638_v8, %v637_v6  ;;  %v664_v12 = vadd.f32 %v663_v11, %v662_v7  ;;  %v665_v13 = vpop.f32.mrb[6].mxu1 }
 0x102   :  { %v666_v15 = vpop.f32.mrb[7].mxu1 }
 0x103   :  { %v452_v14 = vadd.f32 %v639_v10, %v561_v51  ;;  %v667_v16 = vadd.f32 %v666_v15, %v665_v13  ;;  %v498_v17 = vadd.f32 %v664_v12, %v449_v9 }
 0x105   :  { %v501_v18 = vadd.f32 %v667_v16, %v452_v14 }
 0x115   :  { %v696_v19 = vpop.f32.mrb[8].mxu0 }
 0x116   :  { %v547_v20 = vadd.f32 %v696_v19, %v498_v17  ;;  %v538_v21 = vpop.f32.mrb[9].mxu0 }
 0x117   :  { %v539_v22 = vadd.f32 %v538_v21, %v490_v1  ;;  %v697_v23 = vpop.f32.mrb[10].mxu0 }
 0x118   :  { %555 = vst [vmem:[%s940_s3 + $0x10] sm:$0xff] %v547_v20  ;;  %v550_v24 = vadd.f32 %v697_v23, %v501_v18  ;;  %v541_v25 = vpop.f32.mrb[11].mxu0 }
 0x119   :  { %553 = vst [vmem:[%s940_s3] sm:$0xff] %v539_v22  ;;  %v542_v26 = vadd.f32 %v541_v25, %v493_v4 }
 0x11a   :  { %556 = vst [vmem:[%s940_s3 + $0x18] sm:$0xff] %v550_v24 }
 0x11b   :  { %554 = vst [vmem:[%s940_s3 + $0x8] sm:$0xff] %v542_v26 }

// kernel: _lambda_.52
= control target key start
LH: loop header
LB: loop body
LE: loop exit
PB: predicated region body
PF: predicated region fallthrough
CT: control target
= control target key end

     0   :  { %s303_s1 = inlined_call_operand.vmem [shape: bf16[128,128], index: 1, kind: input, shape index: {}]   ;;  %s304_s0 = inlined_call_operand.vmem [shape: bf16[32,128], index: 0, kind: input, shape index: {}]   ;;  %s305_s2 = inlined_call_operand.vmem [shape: f32[1,128], index: 2, kind: input, shape index: {}]   ;;  %s306_s3 = inlined_call_operand.vmem [shape: f32[32,128], index: 3, kind: input, shape index: {}]   ;;  %s307_s4 = inlined_call_operand.vmem [shape: f32[32,128], index: 4, kind: output, shape index: {}]  }
   0x1   :  { %v211_v0 = vld [vmem:[%s303_s1] sm:$0xff]   ;;  %v212_v1 = vld [vmem:[%s303_s1 + $0x8] sm:$0xff]   ;;  %v213_v2 = vld [vmem:[%s303_s1 + $0x10] sm:$0xff]  }
   0x2   :  { %191 = vmatprep.subr.bf16.mxu0 %v211_v0  ;;  %v214_v3 = vld [vmem:[%s303_s1 + $0x18] sm:$0xff]   ;;  %v219_v4 = vld [vmem:[%s304_s0] sm:$0xff]   ;;  %v216_v6 = vld [vmem:[%s303_s1 + $0x28] sm:$0xff]  }
   0x3   :  { %192 = vmatpush3.bf16.msra.mxu0 %v211_v0  ;;  %207 = vmatprep.mubr.bf16.mxu0 %v219_v4  ;;  %v215_v5 = vld [vmem:[%s303_s1 + $0x20] sm:$0xff]   ;;  %v217_v7 = vld [vmem:[%s303_s1 + $0x30] sm:$0xff]   ;;  %v218_v8 = vld [vmem:[%s303_s1 + $0x38] sm:$0xff]  }
   0x4   :  { %193 = vmatprep.subr.bf16.mxu0 %v212_v1  ;;  %v220_v9 = vld [vmem:[%s304_s0 + $0x8] sm:$0xff]   ;;  %v170_v10 = vld [vmem:[%s305_s2] ss:$0 sm:$0xff]  ;;  %v156_v12 = vld [vmem:[%s306_s3 + $0x10] sm:$0xff] }
   0x5   :  { %v154_v15 = vld [vmem:[%s306_s3] sm:$0xff]  ;;  %v157_v18 = vld [vmem:[%s306_s3 + $0x18] sm:$0xff]  ;;  %v155_v22 = vld [vmem:[%s306_s3 + $0x8] sm:$0xff] }
   0x7   :  { %194 = vmatpush3.bf16.msra.mxu0 %v212_v1 }
   0x8   :  { %195 = vmatprep.subr.bf16.mxu0 %v213_v2 }
   0xb   :  { %196 = vmatpush3.bf16.msra.mxu0 %v213_v2 }
   0xc   :  { %197 = vmatprep.subr.bf16.mxu0 %v214_v3 }
   0xf   :  { %198 = vmatpush3.bf16.msra.mxu0 %v214_v3 }
  0x10   :  { %199 = vmatprep.subr.bf16.mxu0 %v215_v5 }
  0x13   :  { %200 = vmatpush3.bf16.msra.mxu0 %v215_v5 }
  0x14   :  { %201 = vmatprep.subr.bf16.mxu0 %v216_v6 }
  0x17   :  { %202 = vmatpush3.bf16.msra.mxu0 %v216_v6 }
  0x18   :  { %203 = vmatprep.subr.bf16.mxu0 %v217_v7 }
  0x1b   :  { %204 = vmatpush3.bf16.msra.mxu0 %v217_v7 }
  0x1c   :  { %205 = vmatprep.subr.bf16.mxu0 %v218_v8 }
  0x1f   :  { %206 = vmatpush3.bf16.msra.mxu0 %v218_v8 }
  0x22   :  { %208 = vmatmul.mubr.bf16.vlgmr.msra.gmra.mrb[0].mxu0 %v220_v9 }
  0xf5   :  { %v209_v11 = vpop.f32.mrb[0].mxu0 }
  0xf6   :  { %v148_v13 = vadd.f32 %v209_v11, %v170_v10  ;;  %v139_v14 = vpop.f32.mrb[1].mxu0 }
  0xf7   :  { %v140_v16 = vadd.f32 %v170_v10, %v139_v14  ;;  %v210_v17 = vpop.f32.mrb[2].mxu0 }
  0xf8   :  { %v160_v19 = vadd.f32 %v156_v12, %v148_v13  ;;  %v151_v20 = vadd.f32 %v210_v17, %v170_v10  ;;  %v142_v21 = vpop.f32.mrb[3].mxu0 }
  0xf9   :  { %v158_v23 = vadd.f32 %v154_v15, %v140_v16  ;;  %v143_v24 = vadd.f32 %v170_v10, %v142_v21 }
  0xfa   :  { %164 = vst [vmem:[%s307_s4 + $0x10] sm:$0xff] %v160_v19  ;;  %v161_v25 = vadd.f32 %v157_v18, %v151_v20 }
  0xfb   :  { %162 = vst [vmem:[%s307_s4] sm:$0xff] %v158_v23  ;;  %v159_v26 = vadd.f32 %v155_v22, %v143_v24 }
  0xfc   :  { %165 = vst [vmem:[%s307_s4 + $0x18] sm:$0xff] %v161_v25 }
  0xfd   :  { %163 = vst [vmem:[%s307_s4 + $0x8] sm:$0xff] %v159_v26 }

// kernel: _lambda_.47
= control target key start
LH: loop header
LB: loop body
LE: loop exit
PB: predicated region body
PF: predicated region fallthrough
CT: control target
= control target key end

     0   :  { %s1038_s1 = inlined_call_operand.vmem [shape: bf16[384,128], index: 1, kind: input, shape index: {}]   ;;  %s1039_s0 = inlined_call_operand.vmem [shape: bf16[128,384], index: 0, kind: input, shape index: {}]   ;;  %s1040_s2 = inlined_call_operand.vmem [shape: f32[1,128], index: 2, kind: input, shape index: {}]   ;;  %s1041_s3 = inlined_call_operand.vmem [shape: f32[128,128], index: 3, kind: output, shape index: {}]  }
   0x1   :  { %v749_v0 = vld [vmem:[%s1038_s1 + $0x40] sm:$0xff]   ;;  %v751_v2 = vld [vmem:[%s1038_s1 + $0x48] sm:$0xff]   ;;  %v754_v5 = vld [vmem:[%s1038_s1 + $0x50] sm:$0xff]  }
   0x2   :  { %v750_v1 = vld [vmem:[%s1038_s1] sm:$0xff]   ;;  %637 = vmatprep.subr.bf16.mxu0 %v749_v0  ;;  %v753_v4 = vld [vmem:[%s1038_s1 + $0x8] sm:$0xff]   ;;  %v756_v7 = vld [vmem:[%s1038_s1 + $0x10] sm:$0xff]  }
   0x3   :  { %638 = vmatpush3.bf16.msra.mxu0 %v750_v1  ;;  %v752_v3 = vld [vmem:[%s1038_s1 + $0x80] sm:$0xff]   ;;  %v755_v6 = vld [vmem:[%s1038_s1 + $0x88] sm:$0xff]   ;;  %v757_v8 = vld [vmem:[%s1038_s1 + $0x58] sm:$0xff]  }
   0x4   :  { %639 = vmatprep.subr.bf16.mxu0 %v751_v2  ;;  %717 = vmatprep.subr.bf16.mxu1 %v752_v3  ;;  %v758_v9 = vld [vmem:[%s1038_s1 + $0x90] sm:$0xff]   ;;  %v759_v10 = vld [vmem:[%s1038_s1 + $0x18] sm:$0xff]   ;;  %v760_v11 = vld [vmem:[%s1038_s1 + $0x60] sm:$0xff]  }
   0x5   :  { %718 = vmatpush3.bf16.msra.mxu1 %v752_v3  ;;  %v761_v12 = vld [vmem:[%s1038_s1 + $0x98] sm:$0xff]   ;;  %v762_v13 = vld [vmem:[%s1038_s1 + $0x20] sm:$0xff]   ;;  %v763_v15 = vld [vmem:[%s1038_s1 + $0x68] sm:$0xff]  }
   0x6   :  { %719 = vmatprep.subr.bf16.mxu1 %v755_v6  ;;  %v764_v14 = vld [vmem:[%s1038_s1 + $0xa0] sm:$0xff]   ;;  %v765_v16 = vld [vmem:[%s1038_s1 + $0x28] sm:$0xff]   ;;  %v766_v18 = vld [vmem:[%s1038_s1 + $0x70] sm:$0xff]  }
   0x7   :  { %640 = vmatpush3.bf16.msra.mxu0 %v753_v4  ;;  %v767_v17 = vld [vmem:[%s1038_s1 + $0xa8] sm:$0xff]   ;;  %v768_v19 = vld [vmem:[%s1038_s1 + $0x30] sm:$0xff]   ;;  %v769_v20 = vld [vmem:[%s1038_s1 + $0x78] sm:$0xff]  }
   0x8   :  { %641 = vmatprep.subr.bf16.mxu0 %v754_v5  ;;  %v770_v21 = vld [vmem:[%s1038_s1 + $0xb0] sm:$0xff]   ;;  %v771_v23 = vld [vmem:[%s1038_s1 + $0x38] sm:$0xff]   ;;  %v772_v26 = vld [vmem:[%s1039_s0] ss:$12 sps:$4 sm:$0xff]  }
   0x9   :  { %720 = vmatpush3.bf16.msra.mxu1 %v755_v6  ;;  %v774_v22 = vld [vmem:[%s1039_s0 + $0x4] ss:$12 sps:$4 sm:$0xff]   ;;  %v776_v24 = vld [vmem:[%s1039_s0 + $0x8] ss:$12 sps:$4 sm:$0xff]   ;;  %v775_v25 = vld [vmem:[%s1038_s1 + $0xb8] sm:$0xff]  }
   0xa   :  { %721 = vmatprep.subr.bf16.mxu1 %v758_v9  ;;  %406 = vmatprep.mubr.bf16.mxu0 %v774_v22  ;;  %v778_v27 = vld [vmem:[%s1039_s0 + $0x1c] ss:$12 sps:$4 sm:$0xff]   ;;  %v777_v28 = vld [vmem:[%s1039_s0 + $0x20] ss:$12 sps:$4 sm:$0xff]   ;;  %v784_v29 = vld [vmem:[%s1039_s0 + $0x38] ss:$12 sps:$4 sm:$0xff]  }
   0xb   :  { %642 = vmatpush3.bf16.msra.mxu0 %v756_v7  ;;  %733 = vmatprep.mubr.bf16.mxu1 %v776_v24  ;;  %v780_v30 = vld [vmem:[%s1039_s0 + $0x18] ss:$12 sps:$4 sm:$0xff]   ;;  %v781_v31 = vld [vmem:[%s1039_s0 + $0x34] ss:$12 sps:$4 sm:$0xff]   ;;  %v785_v32 = vld [vmem:[%s1039_s0 + $0x50] ss:$12 sps:$4 sm:$0xff]  }
   0xc   :  { %643 = vmatprep.subr.bf16.mxu0 %v757_v8  ;;  %v792_v33 = vld [vmem:[%s1039_s0 + $0x68] ss:$12 sps:$4 sm:$0xff]   ;;  %v783_v34 = vld [vmem:[%s1039_s0 + $0x30] ss:$12 sps:$4 sm:$0xff]   ;;  %v786_v35 = vld [vmem:[%s1039_s0 + $0x4c] ss:$12 sps:$4 sm:$0xff]  }
   0xd   :  { %722 = vmatpush3.bf16.msra.mxu1 %v758_v9  ;;  %v793_v36 = vld [vmem:[%s1039_s0 + $0x80] ss:$12 sps:$4 sm:$0xff]   ;;  %v800_v37 = vld [vmem:[%s1039_s0 + $0x98] ss:$12 sps:$4 sm:$0xff]   ;;  %v788_v38 = vld [vmem:[%s1039_s0 + $0x48] ss:$12 sps:$4 sm:$0xff]  }
   0xe   :  { %723 = vmatprep.subr.bf16.mxu1 %v761_v12  ;;  %v789_v39 = vld [vmem:[%s1039_s0 + $0x64] ss:$12 sps:$4 sm:$0xff]   ;;  %v791_v41 = vld [vmem:[%s1039_s0 + $0x60] ss:$12 sps:$4 sm:$0xff]   ;;  %v794_v42 = vld [vmem:[%s1039_s0 + $0x7c] ss:$12 sps:$4 sm:$0xff]  }
   0xf   :  { %644 = vmatpush3.bf16.msra.mxu0 %v759_v10  ;;  %v801_v40 = vld [vmem:[%s1039_s0 + $0xb0] ss:$12 sps:$4 sm:$0xff]   ;;  %v796_v43 = vld [vmem:[%s1039_s0 + $0x78] ss:$12 sps:$4 sm:$0xff]   ;;  %v797_v44 = vld [vmem:[%s1039_s0 + $0x94] ss:$12 sps:$4 sm:$0xff]  }
  0x10   :  { %645 = vmatprep.subr.bf16.mxu0 %v760_v11  ;;  %v799_v45 = vld [vmem:[%s1039_s0 + $0x90] ss:$12 sps:$4 sm:$0xff]   ;;  %v802_v46 = vld [vmem:[%s1039_s0 + $0xac] ss:$12 sps:$4 sm:$0xff]   ;;  %v804_v47 = vld [vmem:[%s1039_s0 + $0xa8] ss:$12 sps:$4 sm:$0xff]  }
  0x11   :  { %724 = vmatpush3.bf16.msra.mxu1 %v761_v12  ;;  %v972_v50 = vld [vmem:[%s1040_s2] ss:$0 sm:$0xff] }
  0x12   :  { %725 = vmatprep.subr.bf16.mxu1 %v764_v14 }
  0x13   :  { %646 = vmatpush3.bf16.msra.mxu0 %v762_v13 }
  0x14   :  { %647 = vmatprep.subr.bf16.mxu0 %v763_v15 }
  0x15   :  { %726 = vmatpush3.bf16.msra.mxu1 %v764_v14 }
  0x16   :  { %727 = vmatprep.subr.bf16.mxu1 %v767_v17 }
  0x17   :  { %648 = vmatpush3.bf16.msra.mxu0 %v765_v16 }
  0x18   :  { %649 = vmatprep.subr.bf16.mxu0 %v766_v18 }
  0x19   :  { %728 = vmatpush3.bf16.msra.mxu1 %v767_v17 }
  0x1a   :  { %729 = vmatprep.subr.bf16.mxu1 %v770_v21 }
  0x1b   :  { %650 = vmatpush3.bf16.msra.mxu0 %v768_v19 }
  0x1c   :  { %651 = vmatprep.subr.bf16.mxu0 %v769_v20 }
  0x1d   :  { %730 = vmatpush3.bf16.msra.mxu1 %v770_v21 }
  0x1e   :  { %731 = vmatprep.subr.bf16.mxu1 %v775_v25 }
  0x1f   :  { %652 = vmatpush3.bf16.msra.mxu0 %v771_v23 }
  0x21   :  { %732 = vmatpush3.bf16.msra.mxu1 %v775_v25 }
  0x22   :  { %407 = vmatmul.mubr.bf16.vlgmr.msra.gmra.mrb[0].mxu0 %v772_v26 }
  0x23   :  { %414 = vmatprep.mubr.bf16.mxu0 %v778_v27 }
  0x24   :  { %734 = vmatmul.mubr.bf16.vlgmr.msra.gmra.mrb[0].mxu1 %v777_v28 }
  0x25   :  { %737 = vmatprep.mubr.bf16.mxu1 %v784_v29 }
  0x2a   :  { %415 = vmatmul.mubr.bf16.gmra.mrb[4].mxu0 %v780_v30 }
  0x2b   :  { %422 = vmatprep.mubr.bf16.mxu0 %v781_v31 }
  0x2c   :  { %738 = vmatmul.mubr.bf16.gmra.mrb[4].mxu1 %v785_v32 }
  0x2d   :  { %741 = vmatprep.mubr.bf16.mxu1 %v792_v33 }
  0x32   :  { %423 = vmatmul.mubr.bf16.gmra.mrb[8].mxu0 %v783_v34 }
  0x33   :  { %430 = vmatprep.mubr.bf16.mxu0 %v786_v35 }
  0x34   :  { %742 = vmatmul.mubr.bf16.gmra.mrb[8].mxu1 %v793_v36 }
  0x35   :  { %745 = vmatprep.mubr.bf16.mxu1 %v800_v37 }
  0x3a   :  { %431 = vmatmul.mubr.bf16.gmra.mrb[12].mxu0 %v788_v38 }
  0x3b   :  { %438 = vmatprep.mubr.bf16.mxu0 %v789_v39 }
  0x3c   :  { %746 = vmatmul.mubr.bf16.gmra.mrb[12].mxu1 %v801_v40 }
  0x42   :  { %439 = vmatmul.mubr.bf16.gmra.mrb[16].mxu0 %v791_v41 }
  0x43   :  { %446 = vmatprep.mubr.bf16.mxu0 %v794_v42 }
  0x4a   :  { %447 = vmatmul.mubr.bf16.gmra.mrb[20].mxu0 %v796_v43 }
  0x4b   :  { %454 = vmatprep.mubr.bf16.mxu0 %v797_v44 }
  0x52   :  { %455 = vmatmul.mubr.bf16.gmra.mrb[24].mxu0 %v799_v45 }
  0x53   :  { %462 = vmatprep.mubr.bf16.mxu0 %v802_v46 }
  0x5a   :  { %463 = vmatmul.mubr.bf16.gmra.mrb[28].mxu0 %v804_v47 }
  0xf5   :  { %v653_v48 = vpop.f32.mrb[0].mxu0 }
  0xf6   :  { %v654_v49 = vpop.f32.mrb[1].mxu0 }
  0xf7   :  { %v655_v51 = vadd.f32 %v654_v49, %v653_v48  ;;  %v656_v52 = vpop.f32.mrb[2].mxu0  ;;  %v735_v54 = vpop.f32.mrb[0].mxu1 }
  0xf8   :  { %v657_v53 = vpop.f32.mrb[3].mxu0  ;;  %v505_v57 = vpop.f32.mrb[1].mxu1 }
  0xf9   :  { %v658_v55 = vadd.f32 %v657_v53, %v656_v52  ;;  %v409_v56 = vadd.f32 %v655_v51, %v972_v50  ;;  %v736_v58 = vpop.f32.mrb[2].mxu1 }
  0xfa   :  { %v508_v61 = vpop.f32.mrb[3].mxu1 }
  0xfb   :  { %v506_v59 = vadd.f32 %v505_v57, %v409_v56  ;;  %v412_v60 = vadd.f32 %v658_v55, %v972_v50 }
  0xfd   :  { %568 = vst [vmem:[%s1041_s3] sm:$0xff] %v506_v59  ;;  %v509_v62 = vadd.f32 %v508_v61, %v412_v60  ;;  %v659_v63 = vpop.f32.mrb[4].mxu0 }
  0xfe   :  { %v660_v0 = vpop.f32.mrb[5].mxu0 }
  0xff   :  { %569 = vst [vmem:[%s1041_s3 + $0x8] sm:$0xff] %v509_v62  ;;  %v661_v1 = vadd.f32 %v660_v0, %v659_v63  ;;  %v662_v2 = vpop.f32.mrb[6].mxu0  ;;  %v739_v4 = vpop.f32.mrb[4].mxu1 }
 0x100   :  { %v663_v3 = vpop.f32.mrb[7].mxu0  ;;  %v521_v7 = vpop.f32.mrb[5].mxu1 }
 0x101   :  { %v417_v5 = vadd.f32 %v661_v1, %v972_v50  ;;  %v664_v6 = vadd.f32 %v663_v3, %v662_v2  ;;  %v740_v8 = vpop.f32.mrb[6].mxu1 }
 0x102   :  { %v524_v11 = vpop.f32.mrb[7].mxu1 }
 0x103   :  { %v514_v9 = vadd.f32 %v735_v54, %v417_v5  ;;  %v420_v10 = vadd.f32 %v664_v6, %v972_v50 }
 0x105   :  { %570 = vst [vmem:[%s1041_s3 + $0x10] sm:$0xff] %v514_v9  ;;  %v517_v12 = vadd.f32 %v736_v58, %v420_v10  ;;  %v665_v13 = vpop.f32.mrb[8].mxu0 }
 0x106   :  { %v666_v14 = vpop.f32.mrb[9].mxu0 }
 0x107   :  { %571 = vst [vmem:[%s1041_s3 + $0x18] sm:$0xff] %v517_v12  ;;  %v667_v15 = vadd.f32 %v666_v14, %v665_v13  ;;  %v668_v16 = vpop.f32.mrb[10].mxu0  ;;  %v743_v18 = vpop.f32.mrb[8].mxu1 }
 0x108   :  { %v669_v17 = vpop.f32.mrb[11].mxu0  ;;  %v537_v21 = vpop.f32.mrb[9].mxu1 }
 0x109   :  { %v670_v19 = vadd.f32 %v669_v17, %v668_v16  ;;  %v425_v20 = vadd.f32 %v667_v15, %v972_v50  ;;  %v744_v22 = vpop.f32.mrb[10].mxu1 }
 0x10a   :  { %v540_v25 = vpop.f32.mrb[11].mxu1 }
 0x10b   :  { %v522_v23 = vadd.f32 %v521_v7, %v425_v20  ;;  %v428_v24 = vadd.f32 %v670_v19, %v972_v50 }
 0x10d   :  { %572 = vst [vmem:[%s1041_s3 + $0x20] sm:$0xff] %v522_v23  ;;  %v525_v26 = vadd.f32 %v524_v11, %v428_v24  ;;  %v671_v27 = vpop.f32.mrb[12].mxu0 }
 0x10e   :  { %v672_v28 = vpop.f32.mrb[13].mxu0 }
 0x10f   :  { %573 = vst [vmem:[%s1041_s3 + $0x28] sm:$0xff] %v525_v26  ;;  %v673_v29 = vadd.f32 %v672_v28, %v671_v27  ;;  %v674_v30 = vpop.f32.mrb[14].mxu0  ;;  %v747_v32 = vpop.f32.mrb[12].mxu1 }
 0x110   :  { %v675_v31 = vpop.f32.mrb[15].mxu0  ;;  %v553_v35 = vpop.f32.mrb[13].mxu1 }
 0x111   :  { %v433_v33 = vadd.f32 %v673_v29, %v972_v50  ;;  %v676_v34 = vadd.f32 %v675_v31, %v674_v30  ;;  %v748_v36 = vpop.f32.mrb[14].mxu1 }
 0x112   :  { %v556_v39 = vpop.f32.mrb[15].mxu1 }
 0x113   :  { %v530_v37 = vadd.f32 %v739_v4, %v433_v33  ;;  %v436_v38 = vadd.f32 %v676_v34, %v972_v50 }
 0x115   :  { %574 = vst [vmem:[%s1041_s3 + $0x30] sm:$0xff] %v530_v37  ;;  %v533_v40 = vadd.f32 %v740_v8, %v436_v38  ;;  %v677_v41 = vpop.f32.mrb[16].mxu0 }
 0x116   :  { %v678_v42 = vpop.f32.mrb[17].mxu0 }
 0x117   :  { %575 = vst [vmem:[%s1041_s3 + $0x38] sm:$0xff] %v533_v40  ;;  %v679_v43 = vadd.f32 %v678_v42, %v677_v41  ;;  %v680_v44 = vpop.f32.mrb[18].mxu0 }
 0x118   :  { %v681_v45 = vpop.f32.mrb[19].mxu0 }
 0x119   :  { %v682_v46 = vadd.f32 %v681_v45, %v680_v44  ;;  %v441_v47 = vadd.f32 %v679_v43, %v972_v50 }
 0x11b   :  { %v538_v48 = vadd.f32 %v537_v21, %v441_v47  ;;  %v444_v49 = vadd.f32 %v682_v46, %v972_v50 }
 0x11d   :  { %576 = vst [vmem:[%s1041_s3 + $0x40] sm:$0xff] %v538_v48  ;;  %v541_v51 = vadd.f32 %v540_v25, %v444_v49  ;;  %v683_v52 = vpop.f32.mrb[20].mxu0 }
 0x11e   :  { %v684_v53 = vpop.f32.mrb[21].mxu0 }
 0x11f   :  { %577 = vst [vmem:[%s1041_s3 + $0x48] sm:$0xff] %v541_v51  ;;  %v685_v54 = vadd.f32 %v684_v53, %v683_v52  ;;  %v686_v55 = vpop.f32.mrb[22].mxu0 }
 0x120   :  { %v687_v56 = vpop.f32.mrb[23].mxu0 }
 0x121   :  { %v449_v57 = vadd.f32 %v685_v54, %v972_v50  ;;  %v688_v58 = vadd.f32 %v687_v56, %v686_v55 }
 0x123   :  { %v546_v59 = vadd.f32 %v743_v18, %v449_v57  ;;  %v452_v60 = vadd.f32 %v688_v58, %v972_v50 }
 0x125   :  { %578 = vst [vmem:[%s1041_s3 + $0x50] sm:$0xff] %v546_v59  ;;  %v549_v61 = vadd.f32 %v744_v22, %v452_v60  ;;  %v689_v62 = vpop.f32.mrb[24].mxu0 }
 0x126   :  { %v690_v63 = vpop.f32.mrb[25].mxu0 }
 0x127   :  { %579 = vst [vmem:[%s1041_s3 + $0x58] sm:$0xff] %v549_v61  ;;  %v691_v0 = vadd.f32 %v690_v63, %v689_v62  ;;  %v692_v1 = vpop.f32.mrb[26].mxu0 }
 0x128   :  { %v693_v2 = vpop.f32.mrb[27].mxu0 }
 0x129   :  { %v694_v3 = vadd.f32 %v693_v2, %v692_v1  ;;  %v457_v4 = vadd.f32 %v691_v0, %v972_v50 }
 0x12b   :  { %v554_v5 = vadd.f32 %v553_v35, %v457_v4  ;;  %v460_v6 = vadd.f32 %v694_v3, %v972_v50 }
 0x12d   :  { %580 = vst [vmem:[%s1041_s3 + $0x60] sm:$0xff] %v554_v5  ;;  %v557_v7 = vadd.f32 %v556_v39, %v460_v6  ;;  %v695_v8 = vpop.f32.mrb[28].mxu0 }
 0x12e   :  { %v696_v9 = vpop.f32.mrb[29].mxu0 }
 0x12f   :  { %581 = vst [vmem:[%s1041_s3 + $0x68] sm:$0xff] %v557_v7  ;;  %v697_v10 = vadd.f32 %v696_v9, %v695_v8  ;;  %v698_v11 = vpop.f32.mrb[30].mxu0 }
 0x130   :  { %v699_v12 = vpop.f32.mrb[31].mxu0 }
 0x131   :  { %v465_v13 = vadd.f32 %v697_v10, %v972_v50  ;;  %v700_v14 = vadd.f32 %v699_v12, %v698_v11 }
 0x133   :  { %v562_v15 = vadd.f32 %v747_v32, %v465_v13  ;;  %v468_v16 = vadd.f32 %v700_v14, %v972_v50 }
 0x135   :  { %582 = vst [vmem:[%s1041_s3 + $0x70] sm:$0xff] %v562_v15  ;;  %v565_v17 = vadd.f32 %v748_v36, %v468_v16 }
 0x137   :  { %583 = vst [vmem:[%s1041_s3 + $0x78] sm:$0xff] %v565_v17 }

// kernel: _lambda_.75
= control target key start
LH: loop header
LB: loop body
LE: loop exit
PB: predicated region body
PF: predicated region fallthrough
CT: control target
= control target key end

     0   :  { %s606_s1 = inlined_call_operand.vmem [shape: bf16[384,128], index: 1, kind: input, shape index: {}]   ;;  %s607_s0 = inlined_call_operand.vmem [shape: bf16[32,384], index: 0, kind: input, shape index: {}]   ;;  %s608_s2 = inlined_call_operand.vmem [shape: f32[1,128], index: 2, kind: input, shape index: {}]   ;;  %s609_s3 = inlined_call_operand.vmem [shape: f32[32,128], index: 3, kind: output, shape index: {}]  }
   0x1   :  { %v449_v0 = vld [vmem:[%s606_s1 + $0x40] sm:$0xff]   ;;  %v451_v2 = vld [vmem:[%s606_s1 + $0x48] sm:$0xff]   ;;  %v454_v5 = vld [vmem:[%s606_s1 + $0x50] sm:$0xff]  }
   0x2   :  { %v450_v1 = vld [vmem:[%s606_s1] sm:$0xff]   ;;  %391 = vmatprep.subr.bf16.mxu0 %v449_v0  ;;  %v453_v4 = vld [vmem:[%s606_s1 + $0x8] sm:$0xff]   ;;  %v456_v7 = vld [vmem:[%s606_s1 + $0x10] sm:$0xff]  }
   0x3   :  { %392 = vmatpush3.bf16.msra.mxu0 %v450_v1  ;;  %v452_v3 = vld [vmem:[%s606_s1 + $0x80] sm:$0xff]   ;;  %v455_v6 = vld [vmem:[%s606_s1 + $0x88] sm:$0xff]   ;;  %v457_v8 = vld [vmem:[%s606_s1 + $0x58] sm:$0xff]  }
   0x4   :  { %393 = vmatprep.subr.bf16.mxu0 %v451_v2  ;;  %429 = vmatprep.subr.bf16.mxu1 %v452_v3  ;;  %v458_v9 = vld [vmem:[%s606_s1 + $0x90] sm:$0xff]   ;;  %v459_v10 = vld [vmem:[%s606_s1 + $0x18] sm:$0xff]   ;;  %v460_v11 = vld [vmem:[%s606_s1 + $0x60] sm:$0xff]  }
   0x5   :  { %430 = vmatpush3.bf16.msra.mxu1 %v452_v3  ;;  %v461_v12 = vld [vmem:[%s606_s1 + $0x98] sm:$0xff]   ;;  %v462_v13 = vld [vmem:[%s606_s1 + $0x20] sm:$0xff]   ;;  %v463_v15 = vld [vmem:[%s606_s1 + $0x68] sm:$0xff]  }
   0x6   :  { %431 = vmatprep.subr.bf16.mxu1 %v455_v6  ;;  %v464_v14 = vld [vmem:[%s606_s1 + $0xa0] sm:$0xff]   ;;  %v465_v16 = vld [vmem:[%s606_s1 + $0x28] sm:$0xff]   ;;  %v466_v18 = vld [vmem:[%s606_s1 + $0x70] sm:$0xff]  }
   0x7   :  { %394 = vmatpush3.bf16.msra.mxu0 %v453_v4  ;;  %v467_v17 = vld [vmem:[%s606_s1 + $0xa8] sm:$0xff]   ;;  %v468_v19 = vld [vmem:[%s606_s1 + $0x30] sm:$0xff]   ;;  %v469_v20 = vld [vmem:[%s606_s1 + $0x78] sm:$0xff]  }
   0x8   :  { %395 = vmatprep.subr.bf16.mxu0 %v454_v5  ;;  %v470_v21 = vld [vmem:[%s606_s1 + $0xb0] sm:$0xff]   ;;  %v471_v23 = vld [vmem:[%s606_s1 + $0x38] sm:$0xff]   ;;  %v472_v26 = vld [vmem:[%s607_s0] ss:$12 sps:$4 sm:$0xff]  }
   0x9   :  { %432 = vmatpush3.bf16.msra.mxu1 %v455_v6  ;;  %v474_v22 = vld [vmem:[%s607_s0 + $0x4] ss:$12 sps:$4 sm:$0xff]   ;;  %v476_v24 = vld [vmem:[%s607_s0 + $0x8] ss:$12 sps:$4 sm:$0xff]   ;;  %v475_v25 = vld [vmem:[%s606_s1 + $0xb8] sm:$0xff]  }
   0xa   :  { %433 = vmatprep.subr.bf16.mxu1 %v458_v9  ;;  %286 = vmatprep.mubr.bf16.mxu0 %v474_v22  ;;  %v478_v27 = vld [vmem:[%s607_s0 + $0x1c] ss:$12 sps:$4 sm:$0xff]   ;;  %v477_v28 = vld [vmem:[%s607_s0 + $0x20] ss:$12 sps:$4 sm:$0xff]   ;;  %v480_v29 = vld [vmem:[%s607_s0 + $0x18] ss:$12 sps:$4 sm:$0xff]  }
   0xb   :  { %396 = vmatpush3.bf16.msra.mxu0 %v456_v7  ;;  %445 = vmatprep.mubr.bf16.mxu1 %v476_v24  ;;  %v360_v32 = vld [vmem:[%s608_s2] ss:$0 sm:$0xff] }
   0xc   :  { %397 = vmatprep.subr.bf16.mxu0 %v457_v8 }
   0xd   :  { %434 = vmatpush3.bf16.msra.mxu1 %v458_v9 }
   0xe   :  { %435 = vmatprep.subr.bf16.mxu1 %v461_v12 }
   0xf   :  { %398 = vmatpush3.bf16.msra.mxu0 %v459_v10 }
  0x10   :  { %399 = vmatprep.subr.bf16.mxu0 %v460_v11 }
  0x11   :  { %436 = vmatpush3.bf16.msra.mxu1 %v461_v12 }
  0x12   :  { %437 = vmatprep.subr.bf16.mxu1 %v464_v14 }
  0x13   :  { %400 = vmatpush3.bf16.msra.mxu0 %v462_v13 }
  0x14   :  { %401 = vmatprep.subr.bf16.mxu0 %v463_v15 }
  0x15   :  { %438 = vmatpush3.bf16.msra.mxu1 %v464_v14 }
  0x16   :  { %439 = vmatprep.subr.bf16.mxu1 %v467_v17 }
  0x17   :  { %402 = vmatpush3.bf16.msra.mxu0 %v465_v16 }
  0x18   :  { %403 = vmatprep.subr.bf16.mxu0 %v466_v18 }
  0x19   :  { %440 = vmatpush3.bf16.msra.mxu1 %v467_v17 }
  0x1a   :  { %441 = vmatprep.subr.bf16.mxu1 %v470_v21 }
  0x1b   :  { %404 = vmatpush3.bf16.msra.mxu0 %v468_v19 }
  0x1c   :  { %405 = vmatprep.subr.bf16.mxu0 %v469_v20 }
  0x1d   :  { %442 = vmatpush3.bf16.msra.mxu1 %v470_v21 }
  0x1e   :  { %443 = vmatprep.subr.bf16.mxu1 %v475_v25 }
  0x1f   :  { %406 = vmatpush3.bf16.msra.mxu0 %v471_v23 }
  0x21   :  { %444 = vmatpush3.bf16.msra.mxu1 %v475_v25 }
  0x22   :  { %287 = vmatmul.mubr.bf16.vlgmr.msra.gmra.mrb[0].mxu0 %v472_v26 }
  0x23   :  { %294 = vmatprep.mubr.bf16.mxu0 %v478_v27 }
  0x24   :  { %446 = vmatmul.mubr.bf16.vlgmr.msra.gmra.mrb[0].mxu1 %v477_v28 }
  0x2a   :  { %295 = vmatmul.mubr.bf16.gmra.mrb[4].mxu0 %v480_v29 }
  0xf5   :  { %v407_v30 = vpop.f32.mrb[0].mxu0 }
  0xf6   :  { %v408_v31 = vpop.f32.mrb[1].mxu0 }
  0xf7   :  { %v409_v33 = vadd.f32 %v408_v31, %v407_v30  ;;  %v410_v34 = vpop.f32.mrb[2].mxu0  ;;  %v447_v36 = vpop.f32.mrb[0].mxu1 }
  0xf8   :  { %v411_v35 = vpop.f32.mrb[3].mxu0  ;;  %v337_v39 = vpop.f32.mrb[1].mxu1 }
  0xf9   :  { %v412_v37 = vadd.f32 %v411_v35, %v410_v34  ;;  %v289_v38 = vadd.f32 %v409_v33, %v360_v32  ;;  %v448_v40 = vpop.f32.mrb[2].mxu1 }
  0xfa   :  { %v340_v43 = vpop.f32.mrb[3].mxu1 }
  0xfb   :  { %v338_v41 = vadd.f32 %v337_v39, %v289_v38  ;;  %v292_v42 = vadd.f32 %v412_v37, %v360_v32 }
  0xfd   :  { %352 = vst [vmem:[%s609_s3] sm:$0xff] %v338_v41  ;;  %v341_v44 = vadd.f32 %v340_v43, %v292_v42  ;;  %v413_v45 = vpop.f32.mrb[4].mxu0 }
  0xfe   :  { %v414_v46 = vpop.f32.mrb[5].mxu0 }
  0xff   :  { %353 = vst [vmem:[%s609_s3 + $0x8] sm:$0xff] %v341_v44  ;;  %v415_v47 = vadd.f32 %v414_v46, %v413_v45  ;;  %v416_v48 = vpop.f32.mrb[6].mxu0 }
 0x100   :  { %v417_v49 = vpop.f32.mrb[7].mxu0 }
 0x101   :  { %v297_v50 = vadd.f32 %v415_v47, %v360_v32  ;;  %v418_v51 = vadd.f32 %v417_v49, %v416_v48 }
 0x103   :  { %v346_v52 = vadd.f32 %v447_v36, %v297_v50  ;;  %v300_v53 = vadd.f32 %v418_v51, %v360_v32 }
 0x105   :  { %354 = vst [vmem:[%s609_s3 + $0x10] sm:$0xff] %v346_v52  ;;  %v349_v54 = vadd.f32 %v448_v40, %v300_v53 }
 0x107   :  { %355 = vst [vmem:[%s609_s3 + $0x18] sm:$0xff] %v349_v54 }

// kernel: _lambda_.70
= control target key start
LH: loop header
LB: loop body
LE: loop exit
PB: predicated region body
PF: predicated region fallthrough
CT: control target
= control target key end

     0   :  { %s701_s1 = inlined_call_operand.vmem [shape: bf16[256,128], index: 1, kind: input, shape index: {}]   ;;  %s702_s0 = inlined_call_operand.vmem [shape: bf16[128,256], index: 0, kind: input, shape index: {}]   ;;  %s703_s2 = inlined_call_operand.vmem [shape: f32[1,128], index: 2, kind: input, shape index: {}]   ;;  %s704_s3 = inlined_call_operand.vmem [shape: f32[128,128], index: 3, kind: output, shape index: {}]  }
   0x1   :  { %v476_v0 = vld [vmem:[%s701_s1 + $0x40] sm:$0xff]   ;;  %v478_v2 = vld [vmem:[%s701_s1 + $0x48] sm:$0xff]   ;;  %v480_v4 = vld [vmem:[%s701_s1 + $0x50] sm:$0xff]  }
   0x2   :  { %v477_v1 = vld [vmem:[%s701_s1] sm:$0xff]   ;;  %396 = vmatprep.subr.bf16.mxu0 %v476_v0  ;;  %460 = vmatprep.subr.bf16.mxu1 %v476_v0  ;;  %v479_v3 = vld [vmem:[%s701_s1 + $0x8] sm:$0xff]   ;;  %v481_v5 = vld [vmem:[%s701_s1 + $0x10] sm:$0xff]  }
   0x3   :  { %397 = vmatpush3.bf16.msra.mxu0 %v477_v1  ;;  %468 = vmatpush3.bf16.msra.mxu1 %v477_v1  ;;  %v482_v6 = vld [vmem:[%s701_s1 + $0x58] sm:$0xff]   ;;  %v484_v8 = vld [vmem:[%s701_s1 + $0x60] sm:$0xff]   ;;  %v486_v10 = vld [vmem:[%s701_s1 + $0x68] sm:$0xff]  }
   0x4   :  { %398 = vmatprep.subr.bf16.mxu0 %v478_v2  ;;  %461 = vmatprep.subr.bf16.mxu1 %v478_v2  ;;  %v483_v7 = vld [vmem:[%s701_s1 + $0x18] sm:$0xff]   ;;  %v485_v9 = vld [vmem:[%s701_s1 + $0x20] sm:$0xff]   ;;  %v487_v13 = vld [vmem:[%s701_s1 + $0x28] sm:$0xff]  }
   0x5   :  { %v494_v11 = vld [vmem:[%s702_s0 + $0x4] ss:$8 sps:$4 sm:$0xff]   ;;  %v488_v14 = vld [vmem:[%s701_s1 + $0x70] sm:$0xff]   ;;  %v490_v16 = vld [vmem:[%s701_s1 + $0x78] sm:$0xff]  }
   0x6   :  { %v497_v12 = vld [vmem:[%s702_s0 + $0x44] ss:$8 sps:$4 sm:$0xff]   ;;  %278 = vmatprep.mubr.bf16.mxu0 %v494_v11  ;;  %v489_v15 = vld [vmem:[%s701_s1 + $0x30] sm:$0xff]   ;;  %v491_v17 = vld [vmem:[%s701_s1 + $0x38] sm:$0xff]  }
   0x7   :  { %399 = vmatpush3.bf16.msra.mxu0 %v479_v3  ;;  %469 = vmatpush3.bf16.msra.mxu1 %v479_v3  ;;  %v492_v18 = vld [vmem:[%s702_s0] ss:$8 sps:$4 sm:$0xff]   ;;  %v498_v20 = vld [vmem:[%s702_s0 + $0x14] ss:$8 sps:$4 sm:$0xff]   ;;  %v502_v22 = vld [vmem:[%s702_s0 + $0x10] ss:$8 sps:$4 sm:$0xff]  }
   0x8   :  { %400 = vmatprep.subr.bf16.mxu0 %v480_v4  ;;  %462 = vmatprep.subr.bf16.mxu1 %v480_v4  ;;  %v495_v19 = vld [vmem:[%s702_s0 + $0x40] ss:$8 sps:$4 sm:$0xff]   ;;  %v500_v21 = vld [vmem:[%s702_s0 + $0x54] ss:$8 sps:$4 sm:$0xff]   ;;  %v503_v23 = vld [vmem:[%s702_s0 + $0x50] ss:$8 sps:$4 sm:$0xff]  }
   0x9   :  { %310 = vmatprep.mubr.bf16.mxu1 %v497_v12  ;;  %v504_v24 = vld [vmem:[%s702_s0 + $0x24] ss:$8 sps:$4 sm:$0xff]   ;;  %v508_v26 = vld [vmem:[%s702_s0 + $0x20] ss:$8 sps:$4 sm:$0xff]   ;;  %v510_v28 = vld [vmem:[%s702_s0 + $0x34] ss:$8 sps:$4 sm:$0xff]  }
   0xa   :  { %v506_v25 = vld [vmem:[%s702_s0 + $0x64] ss:$8 sps:$4 sm:$0xff]   ;;  %v509_v27 = vld [vmem:[%s702_s0 + $0x60] ss:$8 sps:$4 sm:$0xff]   ;;  %v512_v29 = vld [vmem:[%s702_s0 + $0x74] ss:$8 sps:$4 sm:$0xff]  }
   0xb   :  { %401 = vmatpush3.bf16.msra.mxu0 %v481_v5  ;;  %470 = vmatpush3.bf16.msra.mxu1 %v481_v5  ;;  %v514_v30 = vld [vmem:[%s702_s0 + $0x30] ss:$8 sps:$4 sm:$0xff]   ;;  %v635_v34 = vld [vmem:[%s703_s2] ss:$0 sm:$0xff] }
   0xc   :  { %402 = vmatprep.subr.bf16.mxu0 %v482_v6  ;;  %463 = vmatprep.subr.bf16.mxu1 %v482_v6  ;;  %v515_v31 = vld [vmem:[%s702_s0 + $0x70] ss:$8 sps:$4 sm:$0xff]  }
   0xf   :  { %403 = vmatpush3.bf16.msra.mxu0 %v483_v7  ;;  %471 = vmatpush3.bf16.msra.mxu1 %v483_v7 }
  0x10   :  { %404 = vmatprep.subr.bf16.mxu0 %v484_v8  ;;  %464 = vmatprep.subr.bf16.mxu1 %v484_v8 }
  0x13   :  { %405 = vmatpush3.bf16.msra.mxu0 %v485_v9  ;;  %472 = vmatpush3.bf16.msra.mxu1 %v485_v9 }
  0x14   :  { %406 = vmatprep.subr.bf16.mxu0 %v486_v10  ;;  %465 = vmatprep.subr.bf16.mxu1 %v486_v10 }
  0x17   :  { %407 = vmatpush3.bf16.msra.mxu0 %v487_v13  ;;  %473 = vmatpush3.bf16.msra.mxu1 %v487_v13 }
  0x18   :  { %408 = vmatprep.subr.bf16.mxu0 %v488_v14  ;;  %466 = vmatprep.subr.bf16.mxu1 %v488_v14 }
  0x1b   :  { %409 = vmatpush3.bf16.msra.mxu0 %v489_v15  ;;  %474 = vmatpush3.bf16.msra.mxu1 %v489_v15 }
  0x1c   :  { %410 = vmatprep.subr.bf16.mxu0 %v490_v16  ;;  %467 = vmatprep.subr.bf16.mxu1 %v490_v16 }
  0x1f   :  { %411 = vmatpush3.bf16.msra.mxu0 %v491_v17  ;;  %475 = vmatpush3.bf16.msra.mxu1 %v491_v17 }
  0x22   :  { %279 = vmatmul.mubr.bf16.vlgmr.msra.gmra.mrb[0].mxu0 %v492_v18  ;;  %311 = vmatmul.mubr.bf16.vlgmr.msra.gmra.mrb[0].mxu1 %v495_v19 }
  0x23   :  { %286 = vmatprep.mubr.bf16.mxu0 %v498_v20  ;;  %318 = vmatprep.mubr.bf16.mxu1 %v500_v21 }
  0x2a   :  { %287 = vmatmul.mubr.bf16.gmra.mrb[4].mxu0 %v502_v22  ;;  %319 = vmatmul.mubr.bf16.gmra.mrb[4].mxu1 %v503_v23 }
  0x2b   :  { %294 = vmatprep.mubr.bf16.mxu0 %v504_v24  ;;  %326 = vmatprep.mubr.bf16.mxu1 %v506_v25 }
  0x32   :  { %295 = vmatmul.mubr.bf16.gmra.mrb[8].mxu0 %v508_v26  ;;  %327 = vmatmul.mubr.bf16.gmra.mrb[8].mxu1 %v509_v27 }
  0x33   :  { %302 = vmatprep.mubr.bf16.mxu0 %v510_v28  ;;  %334 = vmatprep.mubr.bf16.mxu1 %v512_v29 }
  0x3a   :  { %303 = vmatmul.mubr.bf16.gmra.mrb[12].mxu0 %v514_v30  ;;  %335 = vmatmul.mubr.bf16.gmra.mrb[12].mxu1 %v515_v31 }
  0xf5   :  { %v412_v32 = vpop.f32.mrb[0].mxu0  ;;  %v436_v33 = vpop.f32.mrb[0].mxu1 }
  0xf6   :  { %v413_v35 = vpop.f32.mrb[1].mxu0  ;;  %v437_v36 = vpop.f32.mrb[1].mxu1 }
  0xf7   :  { %v414_v37 = vadd.f32 %v413_v35, %v412_v32  ;;  %v438_v38 = vadd.f32 %v437_v36, %v436_v33  ;;  %v415_v39 = vpop.f32.mrb[2].mxu0  ;;  %v439_v40 = vpop.f32.mrb[2].mxu1 }
  0xf8   :  { %v416_v41 = vpop.f32.mrb[3].mxu0  ;;  %v440_v42 = vpop.f32.mrb[3].mxu1 }
  0xf9   :  { %v281_v43 = vadd.f32 %v414_v37, %v635_v34  ;;  %v313_v44 = vadd.f32 %v438_v38, %v635_v34  ;;  %v417_v45 = vadd.f32 %v416_v41, %v415_v39  ;;  %v441_v46 = vadd.f32 %v440_v42, %v439_v40 }
  0xfb   :  { %343 = vst [vmem:[%s704_s3] sm:$0xff] %v281_v43  ;;  %351 = vst [vmem:[%s704_s3 + $0x40] sm:$0xff] %v313_v44  ;;  %v284_v47 = vadd.f32 %v417_v45, %v635_v34  ;;  %v316_v48 = vadd.f32 %v441_v46, %v635_v34 }
  0xfd   :  { %344 = vst [vmem:[%s704_s3 + $0x8] sm:$0xff] %v284_v47  ;;  %352 = vst [vmem:[%s704_s3 + $0x48] sm:$0xff] %v316_v48  ;;  %v418_v49 = vpop.f32.mrb[4].mxu0  ;;  %v442_v50 = vpop.f32.mrb[4].mxu1 }
  0xfe   :  { %v419_v51 = vpop.f32.mrb[5].mxu0  ;;  %v443_v52 = vpop.f32.mrb[5].mxu1 }
  0xff   :  { %v420_v53 = vadd.f32 %v419_v51, %v418_v49  ;;  %v444_v54 = vadd.f32 %v443_v52, %v442_v50  ;;  %v421_v55 = vpop.f32.mrb[6].mxu0  ;;  %v445_v56 = vpop.f32.mrb[6].mxu1 }
 0x100   :  { %v422_v57 = vpop.f32.mrb[7].mxu0  ;;  %v446_v58 = vpop.f32.mrb[7].mxu1 }
 0x101   :  { %v289_v59 = vadd.f32 %v420_v53, %v635_v34  ;;  %v321_v60 = vadd.f32 %v444_v54, %v635_v34  ;;  %v423_v61 = vadd.f32 %v422_v57, %v421_v55  ;;  %v447_v62 = vadd.f32 %v446_v58, %v445_v56 }
 0x103   :  { %345 = vst [vmem:[%s704_s3 + $0x10] sm:$0xff] %v289_v59  ;;  %353 = vst [vmem:[%s704_s3 + $0x50] sm:$0xff] %v321_v60  ;;  %v292_v63 = vadd.f32 %v423_v61, %v635_v34  ;;  %v324_v0 = vadd.f32 %v447_v62, %v635_v34 }
 0x105   :  { %346 = vst [vmem:[%s704_s3 + $0x18] sm:$0xff] %v292_v63  ;;  %354 = vst [vmem:[%s704_s3 + $0x58] sm:$0xff] %v324_v0  ;;  %v424_v1 = vpop.f32.mrb[8].mxu0  ;;  %v448_v2 = vpop.f32.mrb[8].mxu1 }
 0x106   :  { %v425_v3 = vpop.f32.mrb[9].mxu0  ;;  %v449_v4 = vpop.f32.mrb[9].mxu1 }
 0x107   :  { %v426_v5 = vadd.f32 %v425_v3, %v424_v1  ;;  %v450_v6 = vadd.f32 %v449_v4, %v448_v2  ;;  %v427_v7 = vpop.f32.mrb[10].mxu0  ;;  %v451_v8 = vpop.f32.mrb[10].mxu1 }
 0x108   :  { %v428_v9 = vpop.f32.mrb[11].mxu0  ;;  %v452_v10 = vpop.f32.mrb[11].mxu1 }
 0x109   :  { %v297_v11 = vadd.f32 %v426_v5, %v635_v34  ;;  %v329_v12 = vadd.f32 %v450_v6, %v635_v34  ;;  %v429_v13 = vadd.f32 %v428_v9, %v427_v7  ;;  %v453_v14 = vadd.f32 %v452_v10, %v451_v8 }
 0x10b   :  { %347 = vst [vmem:[%s704_s3 + $0x20] sm:$0xff] %v297_v11  ;;  %355 = vst [vmem:[%s704_s3 + $0x60] sm:$0xff] %v329_v12  ;;  %v300_v15 = vadd.f32 %v429_v13, %v635_v34  ;;  %v332_v16 = vadd.f32 %v453_v14, %v635_v34 }
 0x10d   :  { %348 = vst [vmem:[%s704_s3 + $0x28] sm:$0xff] %v300_v15  ;;  %356 = vst [vmem:[%s704_s3 + $0x68] sm:$0xff] %v332_v16  ;;  %v430_v17 = vpop.f32.mrb[12].mxu0  ;;  %v454_v18 = vpop.f32.mrb[12].mxu1 }
 0x10e   :  { %v431_v19 = vpop.f32.mrb[13].mxu0  ;;  %v455_v20 = vpop.f32.mrb[13].mxu1 }
 0x10f   :  { %v432_v21 = vadd.f32 %v431_v19, %v430_v17  ;;  %v456_v22 = vadd.f32 %v455_v20, %v454_v18  ;;  %v433_v23 = vpop.f32.mrb[14].mxu0  ;;  %v457_v24 = vpop.f32.mrb[14].mxu1 }
 0x110   :  { %v434_v25 = vpop.f32.mrb[15].mxu0  ;;  %v458_v26 = vpop.f32.mrb[15].mxu1 }
 0x111   :  { %v305_v27 = vadd.f32 %v432_v21, %v635_v34  ;;  %v337_v28 = vadd.f32 %v456_v22, %v635_v34  ;;  %v435_v29 = vadd.f32 %v434_v25, %v433_v23  ;;  %v459_v30 = vadd.f32 %v458_v26, %v457_v24 }
 0x113   :  { %349 = vst [vmem:[%s704_s3 + $0x30] sm:$0xff] %v305_v27  ;;  %357 = vst [vmem:[%s704_s3 + $0x70] sm:$0xff] %v337_v28  ;;  %v308_v31 = vadd.f32 %v435_v29, %v635_v34  ;;  %v340_v32 = vadd.f32 %v459_v30, %v635_v34 }
 0x115   :  { %350 = vst [vmem:[%s704_s3 + $0x38] sm:$0xff] %v308_v31  ;;  %358 = vst [vmem:[%s704_s3 + $0x78] sm:$0xff] %v340_v32 }

</bundles_post_ra>
